<compile_context>
chip_gen: v5e
topology: v5e:2x2
jax: 0.10.0
libtpu: 0.0.40
codegen_flags: <defaults>
</compile_context>

<pallas_src>
import functools

import jax
import jax.numpy as jnp
from jax.experimental import pallas as pl
from jax.experimental.pallas import tpu as pltpu

FEAT_CH = 16     # conv feature channels per branch (pp / vp)
HIDDEN = 64      # MLP hidden width per branch
N_OUT = 128      # lane-dense fused head output (63 xyz + 3 uvw + padding)


# ------------------------------ Pallas kernel ------------------------------

def _znb_fused_kernel(x_ref, hand_ref, w1c_ref, w2c_ref, w1h_ref, w2h_ref,
                      aux_ref, out_ref, pad_ref, p_ref, *, B, Ho, Wo, C):
    """Whole forward after the avg-pool, in one kernel.

    Refs:
      x_ref   : (Ho, Wo, B, C)    pooled input, (h, w, b, c) layout
      hand    : (B, 1)            hand_side scalar per sample
      w1c     : (9C, 32)   bf16   conv1 weight, pp|vp output channels
      w2c     : (288, 32)  bf16   conv2 block-diagonal weight
      w1h     : (HoWo*32, 128) bf16  MLP layer-1, rows (hw, c), cols pp|vp
      w2h     : (128, 128) bf16   MLP layer-2 / heads, lane-padded
      aux     : (8, 128)   f32    packed biases + hand rank-1 rows
      out     : (B, 128)   f32    [xyz(63) | ux uy uz | 0-pad]
      pad_ref : (Ho+2, Wo+2, B, 32) f32 scratch, zero-padded feature map
      p_ref   : (Ho*Wo*B, 288) f32 scratch, im2col rows ordered (h, w, b)
    """
    F2 = 2 * FEAT_CH            # 32 conv channels (pp | vp)
    H2 = 2 * HIDDEN             # 128 hidden lanes (pp | vp)
    M = Ho * Wo * B             # conv matmul rows
    aux = aux_ref[...]          # (8, 128)

    # Zero-padded working map; pooled input lives in lanes [:C] for conv1.
    pad_ref[...] = jnp.zeros(pad_ref.shape, pad_ref.dtype)
    for h in range(Ho):
        for w in range(Wo):
            pad_ref[h + 1, w + 1, :, 0:C] = x_ref[h, w, :, :]

    def im2col(nlane):
        # Assemble (M, 9*nlane) im2col rows into p_ref with 9-way lane concats
        # of per-pixel (B, nlane) tiles (all 2-D values, no reshapes).
        tiles = {}
        for i in range(Ho + 2):
            for j in range(Wo + 2):
                tiles[(i, j)] = pad_ref[i, j, :, 0:nlane]        # (B, nlane)
        for h in range(Ho):
            for w in range(Wo):
                row = jnp.concatenate(
                    [tiles[(h + dy, w + dx)]
                     for dy in range(3) for dx in range(3)], axis=-1)
                r = (h * Wo + w) * B
                p_ref[r:r + B, 0:9 * nlane] = row
        return p_ref[:, 0:9 * nlane].astype(jnp.bfloat16)        # (M, 9*nlane)

    # conv1 (+bias+ReLU): pp and vp as one matmul on shared patches.
    f1 = jnp.dot(im2col(C), w1c_ref[...], preferred_element_type=jnp.float32)
    f1 = jnp.maximum(f1 + aux[0:1, 0:F2], 0.0)                   # (M, 32) f32

    # Write f1 back into the padded map for the second im2col (border stays 0).
    for h in range(Ho):
        for w in range(Wo):
            r = (h * Wo + w) * B
            pad_ref[h + 1, w + 1, :, :] = f1[r:r + B, :]

    # conv2 (+bias+ReLU): block-diagonal weight keeps the branches separate.
    f2 = jnp.dot(im2col(F2), w2c_ref[...], preferred_element_type=jnp.float32)
    f2 = jnp.maximum(f2 + aux[1:2, 0:F2], 0.0).astype(jnp.bfloat16)  # (M, 32)

    # MLP layer 1: contract over (pixel, channel) while batch stays in rows.
    # hand_side is a rank-1 term (hand * w_hand) instead of a K+1 concat.
    h1 = jnp.zeros((B, H2), jnp.float32)
    for hw in range(Ho * Wo):
        h1 = h1 + jnp.dot(f2[hw * B:(hw + 1) * B, :],
                          w1h_ref[hw * F2:(hw + 1) * F2, :],
                          preferred_element_type=jnp.float32)
    h1 = h1 + hand_ref[...] * aux[3:4, :] + aux[2:3, :]
    h1 = jnp.maximum(h1, 0.0)                                    # (B, 128)

    # MLP layer 2: 63 xyz outputs + ux/uy/uz heads, one lane-dense store.
    out = jnp.dot(h1.astype(jnp.bfloat16), w2h_ref[...],
                  preferred_element_type=jnp.float32)
    out_ref[...] = out + aux[4:5, :]


def _full_spec(shape):
    zeros = (0,) * len(shape)
    return pl.BlockSpec(shape, lambda i, _z=zeros: _z)


def znb_lift_fused(x_pooled_hwbc, hand, params):
    """Single pallas_call: conv stack + both MLP branches + all heads."""
    Ho, Wo, B, C = x_pooled_hwbc.shape
    F2 = 2 * FEAT_CH
    M = Ho * Wo * B
    kernel = functools.partial(_znb_fused_kernel, B=B, Ho=Ho, Wo=Wo, C=C)
    args = (x_pooled_hwbc, hand, params["w1c"], params["w2c"],
            params["w1h"], params["w2h"], params["aux"])
    return pl.pallas_call(
        kernel,
        out_shape=jax.ShapeDtypeStruct((B, N_OUT), jnp.float32),
        grid=(1,),
        in_specs=[_full_spec(a.shape) for a in args],
        out_specs=_full_spec((B, N_OUT)),
        scratch_shapes=[
            pltpu.VMEM((Ho + 2, Wo + 2, B, F2), jnp.float32),    # padded map
            pltpu.VMEM((M, 9 * F2), jnp.float32),                # im2col rows
        ],
        compiler_params=pltpu.CompilerParams(
            dimension_semantics=("arbitrary",)),
    )(*args)


# ------------------------------ glue (XLA) ---------------------------------

def avg_pool2d_8s8p1(x_nchw):
    """nn.AvgPool2d(kernel_size=8, stride=8, padding=1), count_include_pad=True.

    k == s, so the pool is a pad + crop + reshape-mean (cheap XLA, no Pallas).
    """
    B, C, H, W = x_nchw.shape
    k, s, p = 8, 8, 1
    Ho = (H + 2 * p - k) // s + 1
    Wo = (W + 2 * p - k) // s + 1
    xp = jnp.pad(x_nchw, ((0, 0), (0, 0), (p, p), (p, p)))
    xc = xp[:, :, :Ho * s, :Wo * s]
    return xc.reshape(B, C, Ho, k, Wo, k).mean(axis=(3, 5))


def znb_lift_net_forward(params, x_nchw, hand_side):
    B = x_nchw.shape[0]
    x = avg_pool2d_8s8p1(x_nchw)                        # (B, C, Ho, Wo)
    hand = hand_side.reshape(B, 1).astype(jnp.float32)  # == unsqueeze(1)
    # (h, w, b, c) layout: the kernel's im2col only touches untiled leading
    # dims, and conv rows group by pixel (batch contiguous) for the heads.
    x_hwbc = jnp.transpose(x, (2, 3, 0, 1))
    out = znb_lift_fused(x_hwbc, hand, params)          # (B, 128) lane-dense
    pred_xyz_canon = out[:, :63].reshape(B, 21, 3)
    ux, uy, uz = out[:, 63:64], out[:, 64:65], out[:, 65:66]
    return pred_xyz_canon, ux, uy, uz


# ------------------------------ parameters ---------------------------------

def _dense_init(key, fan_in, fan_out):
    kw, kb = jax.random.split(key)
    w = jax.random.normal(kw, (fan_in, fan_out), jnp.float32) / jnp.sqrt(
        jnp.float32(fan_in))
    b = jax.random.normal(kb, (fan_out,), jnp.float32) * 0.01
    return w, b


def _block_diag_conv2(w_pp, w_vp, cin_pp, cin_vp):
    """Block-diagonal im2col weight so pp/vp conv2 run as one matmul."""
    co_pp, co_vp = w_pp.shape[1], w_vp.shape[1]
    blocks = []
    for k in range(9):
        top = jnp.concatenate(
            [w_pp[k * cin_pp:(k + 1) * cin_pp],
             jnp.zeros((cin_pp, co_vp), jnp.float32)], axis=1)
        bot = jnp.concatenate(
            [jnp.zeros((cin_vp, co_pp), jnp.float32),
             w_vp[k * cin_vp:(k + 1) * cin_vp]], axis=1)
        blocks.append(jnp.concatenate([top, bot], axis=0))
    return jnp.concatenate(blocks, axis=0)   # (9*(cin_pp+cin_vp), co_pp+co_vp)


def init_znb_lift_params(in_channels, pooled_hw, key):
    """Returns (packed kernel params, raw per-layer f32 weights)."""
    Ho, Wo = pooled_hw
    HoWo = Ho * Wo
    flat = FEAT_CH * HoWo
    F2, H2 = 2 * FEAT_CH, 2 * HIDDEN
    keys = jax.random.split(key, 10)

    pp_c1_w, pp_c1_b = _dense_init(keys[0], 9 * in_channels, FEAT_CH)
    pp_c2_w, pp_c2_b = _dense_init(keys[1], 9 * FEAT_CH, FEAT_CH)
    vp_c1_w, vp_c1_b = _dense_init(keys[2], 9 * in_channels, FEAT_CH)
    vp_c2_w, vp_c2_b = _dense_init(keys[3], 9 * FEAT_CH, FEAT_CH)
    pp_l1_w, pp_l1_b = _dense_init(keys[4], flat + 1, HIDDEN)   # [feat | hand]
    pp_l2_w, pp_l2_b = _dense_init(keys[5], HIDDEN, 63)
    vp_l1_w, vp_l1_b = _dense_init(keys[6], flat + 1, HIDDEN)
    ux_w, ux_b = _dense_init(keys[7], HIDDEN, 1)
    uy_w, uy_b = _dense_init(keys[8], HIDDEN, 1)
    uz_w, uz_b = _dense_init(keys[9], HIDDEN, 1)

    # conv1: shared im2col patches -> concatenated output channels (pp | vp).
    w1c = jnp.concatenate([pp_c1_w, vp_c1_w], axis=1)            # (9C, 32)
    # conv2: block-diagonal so both branches run as one matmul.
    w2c = _block_diag_conv2(pp_c2_w, vp_c2_w, FEAT_CH, FEAT_CH)  # (288, 32)

    # MLP layer 1: permute rows torch-NCHW (c*HoWo + hw) -> kernel (hw, c)
    # order and build a block-structured (HoWo*32, 128) slab (no transposes
    # are needed in the wrapper at run time).
    def to_hw_c(w_feat):
        return w_feat.reshape(FEAT_CH, HoWo, HIDDEN).transpose(1, 0, 2)

    pp3 = to_hw_c(pp_l1_w[:flat])
    vp3 = to_hw_c(vp_l1_w[:flat])
    z3 = jnp.zeros((HoWo, FEAT_CH, HIDDEN), jnp.float32)
    w1h = jnp.concatenate(
        [jnp.concatenate([pp3, z3], axis=-1),       # pp channels -> pp hidden
         jnp.concatenate([z3, vp3], axis=-1)],      # vp channels -> vp hidden
        axis=1).reshape(HoWo * F2, H2)

    # MLP layer 2 / heads: pp->63 xyz outputs, vp->ux/uy/uz; lane-pad to 128.
    w2h = jnp.zeros((H2, N_OUT), jnp.float32)
    w2h = w2h.at[:HIDDEN, 0:63].set(pp_l2_w)
    w2h = w2h.at[HIDDEN:, 63:64].set(ux_w)
    w2h = w2h.at[HIDDEN:, 64:65].set(uy_w)
    w2h = w2h.at[HIDDEN:, 65:66].set(uz_w)

    # Small-vector slab: all biases + rank-1 hand rows in one lane-dense tile.
    aux = jnp.zeros((8, 128), jnp.float32)
    aux = aux.at[0, :F2].set(jnp.concatenate([pp_c1_b, vp_c1_b]))
    aux = aux.at[1, :F2].set(jnp.concatenate([pp_c2_b, vp_c2_b]))
    aux = aux.at[2, :H2].set(jnp.concatenate([pp_l1_b, vp_l1_b]))
    aux = aux.at[3, :H2].set(jnp.concatenate([pp_l1_w[flat], vp_l1_w[flat]]))
    aux = aux.at[4, 0:63].set(pp_l2_b)
    aux = aux.at[4, 63:66].set(jnp.concatenate([ux_b, uy_b, uz_b]))

    params = {
        "w1c": w1c.astype(jnp.bfloat16),
        "w2c": w2c.astype(jnp.bfloat16),
        "w1h": w1h.astype(jnp.bfloat16),
        "w2h": w2h.astype(jnp.bfloat16),
        "aux": aux,
    }
    raw = dict(pp_c1_w=pp_c1_w, pp_c1_b=pp_c1_b, pp_c2_w=pp_c2_w,
               pp_c2_b=pp_c2_b, vp_c1_w=vp_c1_w, vp_c1_b=vp_c1_b,
               vp_c2_w=vp_c2_w, vp_c2_b=vp_c2_b, pp_l1_w=pp_l1_w,
               pp_l1_b=pp_l1_b, pp_l2_w=pp_l2_w, pp_l2_b=pp_l2_b,
               vp_l1_w=vp_l1_w, vp_l1_b=vp_l1_b, ux_w=ux_w, ux_b=ux_b,
               uy_w=uy_w, uy_b=uy_b, uz_w=uz_w, uz_b=uz_b)
    return params, raw


# ------------------------- pure-JAX f32 reference ---------------------------

def _reference_forward(raw, x_nchw, hand_side):
    B = x_nchw.shape[0]
    x = avg_pool2d_8s8p1(x_nchw)
    _, _, Ho, Wo = x.shape

    def conv3x3_relu(x_in, w, b):   # w rows ordered (k*Cin + c)
        Bn, Cin, Hn, Wn = x_in.shape
        xp = jnp.pad(x_in, ((0, 0), (0, 0), (1, 1), (1, 1)))
        cols = [xp[:, :, dy:dy + Hn, dx:dx + Wn]
                for dy in range(3) for dx in range(3)]
        patches = jnp.concatenate(cols, axis=1)           # (B, 9Cin, H, W)
        patches = patches.transpose(0, 2, 3, 1).reshape(Bn * Hn * Wn, 9 * Cin)
        y = jnp.maximum(patches @ w + b, 0.0)
        return y.reshape(Bn, Hn, Wn, -1).transpose(0, 3, 1, 2)

    def branch(c1w, c1b, c2w, c2b):
        y = conv3x3_relu(x, c1w, c1b)
        y = conv3x3_relu(y, c2w, c2b)
        return y.reshape(B, -1)                            # NCHW flatten

    hand = hand_side.reshape(B, 1).astype(jnp.float32)
    pp_in = jnp.concatenate(
        [branch(raw["pp_c1_w"], raw["pp_c1_b"], raw["pp_c2_w"], raw["pp_c2_b"]),
         hand], axis=1)
    h = jnp.maximum(pp_in @ raw["pp_l1_w"] + raw["pp_l1_b"], 0.0)
    xyz = (h @ raw["pp_l2_w"] + raw["pp_l2_b"]).reshape(B, 21, 3)

    vp_in = jnp.concatenate(
        [branch(raw["vp_c1_w"], raw["vp_c1_b"], raw["vp_c2_w"], raw["vp_c2_b"]),
         hand], axis=1)
    hv = jnp.maximum(vp_in @ raw["vp_l1_w"] + raw["vp_l1_b"], 0.0)
    ux = hv @ raw["ux_w"] + raw["ux_b"]
    uy = hv @ raw["uy_w"] + raw["uy_b"]
    uz = hv @ raw["uz_w"] + raw["uz_b"]
    return xyz, ux, uy, uz


# --------------------------------- main --------------------------------------

if __name__ == "__main__":
    key = jax.random.PRNGKey(0)
    kx, kh = jax.random.split(key)

    # NCHW at the module boundary, matching the PyTorch reference.
    B, C, H, W = 2, 8, 32, 32
    x = jax.random.normal(kx, (B, C, H, W), jnp.float32)
    hand_side = (jax.random.uniform(kh, (B,)) > 0.5).astype(jnp.float32)

    Ho = (H + 2 * 1 - 8) // 8 + 1
    Wo = (W + 2 * 1 - 8) // 8 + 1
    params, raw = init_znb_lift_params(C, (Ho, Wo), jax.random.PRNGKey(42))

    fwd = jax.jit(functools.partial(znb_lift_net_forward, params))
    pred_xyz_canon, ux, uy, uz = fwd(x, hand_side)
    jax.block_until_ready((pred_xyz_canon, ux, uy, uz))

    assert pred_xyz_canon.shape == (B, 21, 3)
    assert ux.shape == (B, 1) and uy.shape == (B, 1) and uz.shape == (B, 1)
    assert bool(jnp.all(jnp.isfinite(pred_xyz_canon)))
    assert bool(jnp.all(jnp.isfinite(ux)))
    assert bool(jnp.all(jnp.isfinite(uy)))
    assert bool(jnp.all(jnp.isfinite(uz)))

    # Loose check against a pure-JAX f32 reference (kernel uses bf16 MXU
    # operands with f32 accumulation, so exact bit-match is not expected).
    xyz_r, ux_r, uy_r, uz_r = _reference_forward(raw, x, hand_side)
    uvw = jnp.concatenate([ux, uy, uz], axis=1)
    uvw_r = jnp.concatenate([ux_r, uy_r, uz_r], axis=1)
    rel_xyz = jnp.linalg.norm(pred_xyz_canon - xyz_r) / (
        jnp.linalg.norm(xyz_r) + 1e-6)
    rel_uvw = jnp.linalg.norm(uvw - uvw_r) / (jnp.linalg.norm(uvw_r) + 1e-6)
    assert float(rel_xyz) < 0.1, f"xyz mismatch: rel err {float(rel_xyz)}"
    assert float(rel_uvw) < 0.1, f"uvw mismatch: rel err {float(rel_uvw)}"

    print("KERNEL_OK")
</pallas_src>

<mosaic_0001>
module attributes {stable_mosaic.version = 11 : i64} {
  func.func @_znb_fused_kernel(%arg0: i32, %arg1: memref<4x4x2x8xf32, #tpu.memory_space<vmem>>, %arg2: memref<2x1xf32, #tpu.memory_space<vmem>>, %arg3: memref<72x32xbf16, #tpu.memory_space<vmem>>, %arg4: memref<288x32xbf16, #tpu.memory_space<vmem>>, %arg5: memref<512x128xbf16, #tpu.memory_space<vmem>>, %arg6: memref<128x128xbf16, #tpu.memory_space<vmem>>, %arg7: memref<8x128xf32, #tpu.memory_space<vmem>>, %arg8: memref<2x128xf32, #tpu.memory_space<vmem>>, %arg9: memref<6x6x2x32xf32, #tpu.memory_space<vmem>>, %arg10: memref<32x288xf32, #tpu.memory_space<vmem>>) attributes {dimension_semantics = [#tpu.dimension_semantics<arbitrary>], iteration_bounds = array<i64: 1>, scalar_prefetch = 0 : i64, scratch_operands = 2 : i64, tpu.core_type = #tpu.core_type<tc>, window_params = [{pipeline_mode = #tpu.pipeline_mode<synchronous>, transform_indices = @transform_0, window_bounds = array<i64: 4, 4, 2, 8>}, {pipeline_mode = #tpu.pipeline_mode<synchronous>, transform_indices = @transform_1, window_bounds = array<i64: 2, 1>}, {pipeline_mode = #tpu.pipeline_mode<synchronous>, transform_indices = @transform_2, window_bounds = array<i64: 72, 32>}, {pipeline_mode = #tpu.pipeline_mode<synchronous>, transform_indices = @transform_3, window_bounds = array<i64: 288, 32>}, {pipeline_mode = #tpu.pipeline_mode<synchronous>, transform_indices = @transform_4, window_bounds = array<i64: 512, 128>}, {pipeline_mode = #tpu.pipeline_mode<synchronous>, transform_indices = @transform_5, window_bounds = array<i64: 128, 128>}, {pipeline_mode = #tpu.pipeline_mode<synchronous>, transform_indices = @transform_6, window_bounds = array<i64: 8, 128>}, {pipeline_mode = #tpu.pipeline_mode<synchronous>, transform_indices = @transform_7, window_bounds = array<i64: 2, 128>}]} {
    %c0 = arith.constant 0 : index
    %c0_0 = arith.constant 0 : index
    %0 = vector.load %arg7[%c0, %c0_0] : memref<8x128xf32, #tpu.memory_space<vmem>>, vector<8x128xf32>
    %cst = arith.constant 0.000000e+00 : f32
    %1 = vector.broadcast %cst : f32 to vector<6x6x2x32xf32>
    %c0_1 = arith.constant 0 : index
    %c0_2 = arith.constant 0 : index
    %c0_3 = arith.constant 0 : index
    %c0_4 = arith.constant 0 : index
    %2 = vector.load %arg9[%c0_1, %c0_2, %c0_3, %c0_4] : memref<6x6x2x32xf32, #tpu.memory_space<vmem>>, vector<6x6x2x32xf32>
    tpu.vector_store %arg9[%c0_1, %c0_2, %c0_3, %c0_4], %1 {strides = array<i32>} : memref<6x6x2x32xf32, #tpu.memory_space<vmem>>, vector<6x6x2x32xf32>,
    %c0_5 = arith.constant 0 : index
    %c0_6 = arith.constant 0 : index
    %c0_7 = arith.constant 0 : index
    %c0_8 = arith.constant 0 : index
    %3 = vector.load %arg1[%c0_5, %c0_6, %c0_7, %c0_8] : memref<4x4x2x8xf32, #tpu.memory_space<vmem>>, vector<1x1x2x8xf32>
    %4 = vector.shape_cast %3 : vector<1x1x2x8xf32> to vector<2x8xf32>
    %c1 = arith.constant 1 : index
    %c1_9 = arith.constant 1 : index
    %c0_10 = arith.constant 0 : index
    %c0_11 = arith.constant 0 : index
    %5 = vector.load %arg9[%c1, %c1_9, %c0_10, %c0_11] : memref<6x6x2x32xf32, #tpu.memory_space<vmem>>, vector<1x1x2x8xf32>
    %6 = vector.shape_cast %5 : vector<1x1x2x8xf32> to vector<2x8xf32>
    %7 = vector.shape_cast %4 : vector<2x8xf32> to vector<1x1x2x8xf32>
    tpu.vector_store %arg9[%c1, %c1_9, %c0_10, %c0_11], %7 {strides = array<i32>} : memref<6x6x2x32xf32, #tpu.memory_space<vmem>>, vector<1x1x2x8xf32>,
    %c0_12 = arith.constant 0 : index
    %c1_13 = arith.constant 1 : index
    %c0_14 = arith.constant 0 : index
    %c0_15 = arith.constant 0 : index
    %8 = vector.load %arg1[%c0_12, %c1_13, %c0_14, %c0_15] : memref<4x4x2x8xf32, #tpu.memory_space<vmem>>, vector<1x1x2x8xf32>
    %9 = vector.shape_cast %8 : vector<1x1x2x8xf32> to vector<2x8xf32>
    %c1_16 = arith.constant 1 : index
    %c2 = arith.constant 2 : index
    %c0_17 = arith.constant 0 : index
    %c0_18 = arith.constant 0 : index
    %10 = vector.load %arg9[%c1_16, %c2, %c0_17, %c0_18] : memref<6x6x2x32xf32, #tpu.memory_space<vmem>>, vector<1x1x2x8xf32>
    %11 = vector.shape_cast %10 : vector<1x1x2x8xf32> to vector<2x8xf32>
    %12 = vector.shape_cast %9 : vector<2x8xf32> to vector<1x1x2x8xf32>
    tpu.vector_store %arg9[%c1_16, %c2, %c0_17, %c0_18], %12 {strides = array<i32>} : memref<6x6x2x32xf32, #tpu.memory_space<vmem>>, vector<1x1x2x8xf32>,
    %c0_19 = arith.constant 0 : index
    %c2_20 = arith.constant 2 : index
    %c0_21 = arith.constant 0 : index
    %c0_22 = arith.constant 0 : index
    %13 = vector.load %arg1[%c0_19, %c2_20, %c0_21, %c0_22] : memref<4x4x2x8xf32, #tpu.memory_space<vmem>>, vector<1x1x2x8xf32>
    %14 = vector.shape_cast %13 : vector<1x1x2x8xf32> to vector<2x8xf32>
    %c1_23 = arith.constant 1 : index
    %c3 = arith.constant 3 : index
    %c0_24 = arith.constant 0 : index
    %c0_25 = arith.constant 0 : index
    %15 = vector.load %arg9[%c1_23, %c3, %c0_24, %c0_25] : memref<6x6x2x32xf32, #tpu.memory_space<vmem>>, vector<1x1x2x8xf32>
    %16 = vector.shape_cast %15 : vector<1x1x2x8xf32> to vector<2x8xf32>
    %17 = vector.shape_cast %14 : vector<2x8xf32> to vector<1x1x2x8xf32>
    tpu.vector_store %arg9[%c1_23, %c3, %c0_24, %c0_25], %17 {strides = array<i32>} : memref<6x6x2x32xf32, #tpu.memory_space<vmem>>, vector<1x1x2x8xf32>,
    %c0_26 = arith.constant 0 : index
    %c3_27 = arith.constant 3 : index
    %c0_28 = arith.constant 0 : index
    %c0_29 = arith.constant 0 : index
    %18 = vector.load %arg1[%c0_26, %c3_27, %c0_28, %c0_29] : memref<4x4x2x8xf32, #tpu.memory_space<vmem>>, vector<1x1x2x8xf32>
    %19 = vector.shape_cast %18 : vector<1x1x2x8xf32> to vector<2x8xf32>
    %c1_30 = arith.constant 1 : index
    %c4 = arith.constant 4 : index
    %c0_31 = arith.constant 0 : index
    %c0_32 = arith.constant 0 : index
    %20 = vector.load %arg9[%c1_30, %c4, %c0_31, %c0_32] : memref<6x6x2x32xf32, #tpu.memory_space<vmem>>, vector<1x1x2x8xf32>
    %21 = vector.shape_cast %20 : vector<1x1x2x8xf32> to vector<2x8xf32>
    %22 = vector.shape_cast %19 : vector<2x8xf32> to vector<1x1x2x8xf32>
    tpu.vector_store %arg9[%c1_30, %c4, %c0_31, %c0_32], %22 {strides = array<i32>} : memref<6x6x2x32xf32, #tpu.memory_space<vmem>>, vector<1x1x2x8xf32>,
    %c1_33 = arith.constant 1 : index
    %c0_34 = arith.constant 0 : index
    %c0_35 = arith.constant 0 : index
    %c0_36 = arith.constant 0 : index
    %23 = vector.load %arg1[%c1_33, %c0_34, %c0_35, %c0_36] : memref<4x4x2x8xf32, #tpu.memory_space<vmem>>, vector<1x1x2x8xf32>
    %24 = vector.shape_cast %23 : vector<1x1x2x8xf32> to vector<2x8xf32>
    %c2_37 = arith.constant 2 : index
    %c1_38 = arith.constant 1 : index
    %c0_39 = arith.constant 0 : index
    %c0_40 = arith.constant 0 : index
    %25 = vector.load %arg9[%c2_37, %c1_38, %c0_39, %c0_40] : memref<6x6x2x32xf32, #tpu.memory_space<vmem>>, vector<1x1x2x8xf32>
    %26 = vector.shape_cast %25 : vector<1x1x2x8xf32> to vector<2x8xf32>
    %27 = vector.shape_cast %24 : vector<2x8xf32> to vector<1x1x2x8xf32>
    tpu.vector_store %arg9[%c2_37, %c1_38, %c0_39, %c0_40], %27 {strides = array<i32>} : memref<6x6x2x32xf32, #tpu.memory_space<vmem>>, vector<1x1x2x8xf32>,
    %c1_41 = arith.constant 1 : index
    %c1_42 = arith.constant 1 : index
    %c0_43 = arith.constant 0 : index
    %c0_44 = arith.constant 0 : index
    %28 = vector.load %arg1[%c1_41, %c1_42, %c0_43, %c0_44] : memref<4x4x2x8xf32, #tpu.memory_space<vmem>>, vector<1x1x2x8xf32>
    %29 = vector.shape_cast %28 : vector<1x1x2x8xf32> to vector<2x8xf32>
    %c2_45 = arith.constant 2 : index
    %c2_46 = arith.constant 2 : index
    %c0_47 = arith.constant 0 : index
    %c0_48 = arith.constant 0 : index
    %30 = vector.load %arg9[%c2_45, %c2_46, %c0_47, %c0_48] : memref<6x6x2x32xf32, #tpu.memory_space<vmem>>, vector<1x1x2x8xf32>
    %31 = vector.shape_cast %30 : vector<1x1x2x8xf32> to vector<2x8xf32>
    %32 = vector.shape_cast %29 : vector<2x8xf32> to vector<1x1x2x8xf32>
    tpu.vector_store %arg9[%c2_45, %c2_46, %c0_47, %c0_48], %32 {strides = array<i32>} : memref<6x6x2x32xf32, #tpu.memory_space<vmem>>, vector<1x1x2x8xf32>,
    %c1_49 = arith.constant 1 : index
    %c2_50 = arith.constant 2 : index
    %c0_51 = arith.constant 0 : index
    %c0_52 = arith.constant 0 : index
    %33 = vector.load %arg1[%c1_49, %c2_50, %c0_51, %c0_52] : memref<4x4x2x8xf32, #tpu.memory_space<vmem>>, vector<1x1x2x8xf32>
    %34 = vector.shape_cast %33 : vector<1x1x2x8xf32> to vector<2x8xf32>
    %c2_53 = arith.constant 2 : index
    %c3_54 = arith.constant 3 : index
    %c0_55 = arith.constant 0 : index
    %c0_56 = arith.constant 0 : index
    %35 = vector.load %arg9[%c2_53, %c3_54, %c0_55, %c0_56] : memref<6x6x2x32xf32, #tpu.memory_space<vmem>>, vector<1x1x2x8xf32>
    %36 = vector.shape_cast %35 : vector<1x1x2x8xf32> to vector<2x8xf32>
    %37 = vector.shape_cast %34 : vector<2x8xf32> to vector<1x1x2x8xf32>
    tpu.vector_store %arg9[%c2_53, %c3_54, %c0_55, %c0_56], %37 {strides = array<i32>} : memref<6x6x2x32xf32, #tpu.memory_space<vmem>>, vector<1x1x2x8xf32>,
    %c1_57 = arith.constant 1 : index
    %c3_58 = arith.constant 3 : index
    %c0_59 = arith.constant 0 : index
    %c0_60 = arith.constant 0 : index
    %38 = vector.load %arg1[%c1_57, %c3_58, %c0_59, %c0_60] : memref<4x4x2x8xf32, #tpu.memory_space<vmem>>, vector<1x1x2x8xf32>
    %39 = vector.shape_cast %38 : vector<1x1x2x8xf32> to vector<2x8xf32>
    %c2_61 = arith.constant 2 : index
    %c4_62 = arith.constant 4 : index
    %c0_63 = arith.constant 0 : index
    %c0_64 = arith.constant 0 : index
    %40 = vector.load %arg9[%c2_61, %c4_62, %c0_63, %c0_64] : memref<6x6x2x32xf32, #tpu.memory_space<vmem>>, vector<1x1x2x8xf32>
    %41 = vector.shape_cast %40 : vector<1x1x2x8xf32> to vector<2x8xf32>
    %42 = vector.shape_cast %39 : vector<2x8xf32> to vector<1x1x2x8xf32>
    tpu.vector_store %arg9[%c2_61, %c4_62, %c0_63, %c0_64], %42 {strides = array<i32>} : memref<6x6x2x32xf32, #tpu.memory_space<vmem>>, vector<1x1x2x8xf32>,
    %c2_65 = arith.constant 2 : index
    %c0_66 = arith.constant 0 : index
    %c0_67 = arith.constant 0 : index
    %c0_68 = arith.constant 0 : index
    %43 = vector.load %arg1[%c2_65, %c0_66, %c0_67, %c0_68] : memref<4x4x2x8xf32, #tpu.memory_space<vmem>>, vector<1x1x2x8xf32>
    %44 = vector.shape_cast %43 : vector<1x1x2x8xf32> to vector<2x8xf32>
    %c3_69 = arith.constant 3 : index
    %c1_70 = arith.constant 1 : index
    %c0_71 = arith.constant 0 : index
    %c0_72 = arith.constant 0 : index
    %45 = vector.load %arg9[%c3_69, %c1_70, %c0_71, %c0_72] : memref<6x6x2x32xf32, #tpu.memory_space<vmem>>, vector<1x1x2x8xf32>
    %46 = vector.shape_cast %45 : vector<1x1x2x8xf32> to vector<2x8xf32>
    %47 = vector.shape_cast %44 : vector<2x8xf32> to vector<1x1x2x8xf32>
    tpu.vector_store %arg9[%c3_69, %c1_70, %c0_71, %c0_72], %47 {strides = array<i32>} : memref<6x6x2x32xf32, #tpu.memory_space<vmem>>, vector<1x1x2x8xf32>,
    %c2_73 = arith.constant 2 : index
    %c1_74 = arith.constant 1 : index
    %c0_75 = arith.constant 0 : index
    %c0_76 = arith.constant 0 : index
    %48 = vector.load %arg1[%c2_73, %c1_74, %c0_75, %c0_76] : memref<4x4x2x8xf32, #tpu.memory_space<vmem>>, vector<1x1x2x8xf32>
    %49 = vector.shape_cast %48 : vector<1x1x2x8xf32> to vector<2x8xf32>
    %c3_77 = arith.constant 3 : index
    %c2_78 = arith.constant 2 : index
    %c0_79 = arith.constant 0 : index
    %c0_80 = arith.constant 0 : index
    %50 = vector.load %arg9[%c3_77, %c2_78, %c0_79, %c0_80] : memref<6x6x2x32xf32, #tpu.memory_space<vmem>>, vector<1x1x2x8xf32>
    %51 = vector.shape_cast %50 : vector<1x1x2x8xf32> to vector<2x8xf32>
    %52 = vector.shape_cast %49 : vector<2x8xf32> to vector<1x1x2x8xf32>
    tpu.vector_store %arg9[%c3_77, %c2_78, %c0_79, %c0_80], %52 {strides = array<i32>} : memref<6x6x2x32xf32, #tpu.memory_space<vmem>>, vector<1x1x2x8xf32>,
    %c2_81 = arith.constant 2 : index
    %c2_82 = arith.constant 2 : index
    %c0_83 = arith.constant 0 : index
    %c0_84 = arith.constant 0 : index
    %53 = vector.load %arg1[%c2_81, %c2_82, %c0_83, %c0_84] : memref<4x4x2x8xf32, #tpu.memory_space<vmem>>, vector<1x1x2x8xf32>
    %54 = vector.shape_cast %53 : vector<1x1x2x8xf32> to vector<2x8xf32>
    %c3_85 = arith.constant 3 : index
    %c3_86 = arith.constant 3 : index
    %c0_87 = arith.constant 0 : index
    %c0_88 = arith.constant 0 : index
    %55 = vector.load %arg9[%c3_85, %c3_86, %c0_87, %c0_88] : memref<6x6x2x32xf32, #tpu.memory_space<vmem>>, vector<1x1x2x8xf32>
    %56 = vector.shape_cast %55 : vector<1x1x2x8xf32> to vector<2x8xf32>
    %57 = vector.shape_cast %54 : vector<2x8xf32> to vector<1x1x2x8xf32>
    tpu.vector_store %arg9[%c3_85, %c3_86, %c0_87, %c0_88], %57 {strides = array<i32>} : memref<6x6x2x32xf32, #tpu.memory_space<vmem>>, vector<1x1x2x8xf32>,
    %c2_89 = arith.constant 2 : index
    %c3_90 = arith.constant 3 : index
    %c0_91 = arith.constant 0 : index
    %c0_92 = arith.constant 0 : index
    %58 = vector.load %arg1[%c2_89, %c3_90, %c0_91, %c0_92] : memref<4x4x2x8xf32, #tpu.memory_space<vmem>>, vector<1x1x2x8xf32>
    %59 = vector.shape_cast %58 : vector<1x1x2x8xf32> to vector<2x8xf32>
    %c3_93 = arith.constant 3 : index
    %c4_94 = arith.constant 4 : index
    %c0_95 = arith.constant 0 : index
    %c0_96 = arith.constant 0 : index
    %60 = vector.load %arg9[%c3_93, %c4_94, %c0_95, %c0_96] : memref<6x6x2x32xf32, #tpu.memory_space<vmem>>, vector<1x1x2x8xf32>
    %61 = vector.shape_cast %60 : vector<1x1x2x8xf32> to vector<2x8xf32>
    %62 = vector.shape_cast %59 : vector<2x8xf32> to vector<1x1x2x8xf32>
    tpu.vector_store %arg9[%c3_93, %c4_94, %c0_95, %c0_96], %62 {strides = array<i32>} : memref<6x6x2x32xf32, #tpu.memory_space<vmem>>, vector<1x1x2x8xf32>,
    %c3_97 = arith.constant 3 : index
    %c0_98 = arith.constant 0 : index
    %c0_99 = arith.constant 0 : index
    %c0_100 = arith.constant 0 : index
    %63 = vector.load %arg1[%c3_97, %c0_98, %c0_99, %c0_100] : memref<4x4x2x8xf32, #tpu.memory_space<vmem>>, vector<1x1x2x8xf32>
    %64 = vector.shape_cast %63 : vector<1x1x2x8xf32> to vector<2x8xf32>
    %c4_101 = arith.constant 4 : index
    %c1_102 = arith.constant 1 : index
    %c0_103 = arith.constant 0 : index
    %c0_104 = arith.constant 0 : index
    %65 = vector.load %arg9[%c4_101, %c1_102, %c0_103, %c0_104] : memref<6x6x2x32xf32, #tpu.memory_space<vmem>>, vector<1x1x2x8xf32>
    %66 = vector.shape_cast %65 : vector<1x1x2x8xf32> to vector<2x8xf32>
    %67 = vector.shape_cast %64 : vector<2x8xf32> to vector<1x1x2x8xf32>
    tpu.vector_store %arg9[%c4_101, %c1_102, %c0_103, %c0_104], %67 {strides = array<i32>} : memref<6x6x2x32xf32, #tpu.memory_space<vmem>>, vector<1x1x2x8xf32>,
    %c3_105 = arith.constant 3 : index
    %c1_106 = arith.constant 1 : index
    %c0_107 = arith.constant 0 : index
    %c0_108 = arith.constant 0 : index
    %68 = vector.load %arg1[%c3_105, %c1_106, %c0_107, %c0_108] : memref<4x4x2x8xf32, #tpu.memory_space<vmem>>, vector<1x1x2x8xf32>
    %69 = vector.shape_cast %68 : vector<1x1x2x8xf32> to vector<2x8xf32>
    %c4_109 = arith.constant 4 : index
    %c2_110 = arith.constant 2 : index
    %c0_111 = arith.constant 0 : index
    %c0_112 = arith.constant 0 : index
    %70 = vector.load %arg9[%c4_109, %c2_110, %c0_111, %c0_112] : memref<6x6x2x32xf32, #tpu.memory_space<vmem>>, vector<1x1x2x8xf32>
    %71 = vector.shape_cast %70 : vector<1x1x2x8xf32> to vector<2x8xf32>
    %72 = vector.shape_cast %69 : vector<2x8xf32> to vector<1x1x2x8xf32>
    tpu.vector_store %arg9[%c4_109, %c2_110, %c0_111, %c0_112], %72 {strides = array<i32>} : memref<6x6x2x32xf32, #tpu.memory_space<vmem>>, vector<1x1x2x8xf32>,
    %c3_113 = arith.constant 3 : index
    %c2_114 = arith.constant 2 : index
    %c0_115 = arith.constant 0 : index
    %c0_116 = arith.constant 0 : index
    %73 = vector.load %arg1[%c3_113, %c2_114, %c0_115, %c0_116] : memref<4x4x2x8xf32, #tpu.memory_space<vmem>>, vector<1x1x2x8xf32>
    %74 = vector.shape_cast %73 : vector<1x1x2x8xf32> to vector<2x8xf32>
    %c4_117 = arith.constant 4 : index
    %c3_118 = arith.constant 3 : index
    %c0_119 = arith.constant 0 : index
    %c0_120 = arith.constant 0 : index
    %75 = vector.load %arg9[%c4_117, %c3_118, %c0_119, %c0_120] : memref<6x6x2x32xf32, #tpu.memory_space<vmem>>, vector<1x1x2x8xf32>
    %76 = vector.shape_cast %75 : vector<1x1x2x8xf32> to vector<2x8xf32>
    %77 = vector.shape_cast %74 : vector<2x8xf32> to vector<1x1x2x8xf32>
    tpu.vector_store %arg9[%c4_117, %c3_118, %c0_119, %c0_120], %77 {strides = array<i32>} : memref<6x6x2x32xf32, #tpu.memory_space<vmem>>, vector<1x1x2x8xf32>,
    %c3_121 = arith.constant 3 : index
    %c3_122 = arith.constant 3 : index
    %c0_123 = arith.constant 0 : index
    %c0_124 = arith.constant 0 : index
    %78 = vector.load %arg1[%c3_121, %c3_122, %c0_123, %c0_124] : memref<4x4x2x8xf32, #tpu.memory_space<vmem>>, vector<1x1x2x8xf32>
    %79 = vector.shape_cast %78 : vector<1x1x2x8xf32> to vector<2x8xf32>
    %c4_125 = arith.constant 4 : index
    %c4_126 = arith.constant 4 : index
    %c0_127 = arith.constant 0 : index
    %c0_128 = arith.constant 0 : index
    %80 = vector.load %arg9[%c4_125, %c4_126, %c0_127, %c0_128] : memref<6x6x2x32xf32, #tpu.memory_space<vmem>>, vector<1x1x2x8xf32>
    %81 = vector.shape_cast %80 : vector<1x1x2x8xf32> to vector<2x8xf32>
    %82 = vector.shape_cast %79 : vector<2x8xf32> to vector<1x1x2x8xf32>
    tpu.vector_store %arg9[%c4_125, %c4_126, %c0_127, %c0_128], %82 {strides = array<i32>} : memref<6x6x2x32xf32, #tpu.memory_space<vmem>>, vector<1x1x2x8xf32>,
    %c0_129 = arith.constant 0 : index
    %c0_130 = arith.constant 0 : index
    %c0_131 = arith.constant 0 : index
    %c0_132 = arith.constant 0 : index
    %83 = vector.load %arg9[%c0_129, %c0_130, %c0_131, %c0_132] : memref<6x6x2x32xf32, #tpu.memory_space<vmem>>, vector<1x1x2x8xf32>
    %84 = vector.shape_cast %83 : vector<1x1x2x8xf32> to vector<2x8xf32>
    %c0_133 = arith.constant 0 : index
    %c1_134 = arith.constant 1 : index
    %c0_135 = arith.constant 0 : index
    %c0_136 = arith.constant 0 : index
    %85 = vector.load %arg9[%c0_133, %c1_134, %c0_135, %c0_136] : memref<6x6x2x32xf32, #tpu.memory_space<vmem>>, vector<1x1x2x8xf32>
    %86 = vector.shape_cast %85 : vector<1x1x2x8xf32> to vector<2x8xf32>
    %c0_137 = arith.constant 0 : index
    %c2_138 = arith.constant 2 : index
    %c0_139 = arith.constant 0 : index
    %c0_140 = arith.constant 0 : index
    %87 = vector.load %arg9[%c0_137, %c2_138, %c0_139, %c0_140] : memref<6x6x2x32xf32, #tpu.memory_space<vmem>>, vector<1x1x2x8xf32>
    %88 = vector.shape_cast %87 : vector<1x1x2x8xf32> to vector<2x8xf32>
    %c0_141 = arith.constant 0 : index
    %c3_142 = arith.constant 3 : index
    %c0_143 = arith.constant 0 : index
    %c0_144 = arith.constant 0 : index
    %89 = vector.load %arg9[%c0_141, %c3_142, %c0_143, %c0_144] : memref<6x6x2x32xf32, #tpu.memory_space<vmem>>, vector<1x1x2x8xf32>
    %90 = vector.shape_cast %89 : vector<1x1x2x8xf32> to vector<2x8xf32>
    %c0_145 = arith.constant 0 : index
    %c4_146 = arith.constant 4 : index
    %c0_147 = arith.constant 0 : index
    %c0_148 = arith.constant 0 : index
    %91 = vector.load %arg9[%c0_145, %c4_146, %c0_147, %c0_148] : memref<6x6x2x32xf32, #tpu.memory_space<vmem>>, vector<1x1x2x8xf32>
    %92 = vector.shape_cast %91 : vector<1x1x2x8xf32> to vector<2x8xf32>
    %c0_149 = arith.constant 0 : index
    %c5 = arith.constant 5 : index
    %c0_150 = arith.constant 0 : index
    %c0_151 = arith.constant 0 : index
    %93 = vector.load %arg9[%c0_149, %c5, %c0_150, %c0_151] : memref<6x6x2x32xf32, #tpu.memory_space<vmem>>, vector<1x1x2x8xf32>
    %94 = vector.shape_cast %93 : vector<1x1x2x8xf32> to vector<2x8xf32>
    %c1_152 = arith.constant 1 : index
    %c0_153 = arith.constant 0 : index
    %c0_154 = arith.constant 0 : index
    %c0_155 = arith.constant 0 : index
    %95 = vector.load %arg9[%c1_152, %c0_153, %c0_154, %c0_155] : memref<6x6x2x32xf32, #tpu.memory_space<vmem>>, vector<1x1x2x8xf32>
    %96 = vector.shape_cast %95 : vector<1x1x2x8xf32> to vector<2x8xf32>
    %c1_156 = arith.constant 1 : index
    %c1_157 = arith.constant 1 : index
    %c0_158 = arith.constant 0 : index
    %c0_159 = arith.constant 0 : index
    %97 = vector.load %arg9[%c1_156, %c1_157, %c0_158, %c0_159] : memref<6x6x2x32xf32, #tpu.memory_space<vmem>>, vector<1x1x2x8xf32>
    %98 = vector.shape_cast %97 : vector<1x1x2x8xf32> to vector<2x8xf32>
    %c1_160 = arith.constant 1 : index
    %c2_161 = arith.constant 2 : index
    %c0_162 = arith.constant 0 : index
    %c0_163 = arith.constant 0 : index
    %99 = vector.load %arg9[%c1_160, %c2_161, %c0_162, %c0_163] : memref<6x6x2x32xf32, #tpu.memory_space<vmem>>, vector<1x1x2x8xf32>
    %100 = vector.shape_cast %99 : vector<1x1x2x8xf32> to vector<2x8xf32>
    %c1_164 = arith.constant 1 : index
    %c3_165 = arith.constant 3 : index
    %c0_166 = arith.constant 0 : index
    %c0_167 = arith.constant 0 : index
    %101 = vector.load %arg9[%c1_164, %c3_165, %c0_166, %c0_167] : memref<6x6x2x32xf32, #tpu.memory_space<vmem>>, vector<1x1x2x8xf32>
    %102 = vector.shape_cast %101 : vector<1x1x2x8xf32> to vector<2x8xf32>
    %c1_168 = arith.constant 1 : index
    %c4_169 = arith.constant 4 : index
    %c0_170 = arith.constant 0 : index
    %c0_171 = arith.constant 0 : index
    %103 = vector.load %arg9[%c1_168, %c4_169, %c0_170, %c0_171] : memref<6x6x2x32xf32, #tpu.memory_space<vmem>>, vector<1x1x2x8xf32>
    %104 = vector.shape_cast %103 : vector<1x1x2x8xf32> to vector<2x8xf32>
    %c1_172 = arith.constant 1 : index
    %c5_173 = arith.constant 5 : index
    %c0_174 = arith.constant 0 : index
    %c0_175 = arith.constant 0 : index
    %105 = vector.load %arg9[%c1_172, %c5_173, %c0_174, %c0_175] : memref<6x6x2x32xf32, #tpu.memory_space<vmem>>, vector<1x1x2x8xf32>
    %106 = vector.shape_cast %105 : vector<1x1x2x8xf32> to vector<2x8xf32>
    %c2_176 = arith.constant 2 : index
    %c0_177 = arith.constant 0 : index
    %c0_178 = arith.constant 0 : index
    %c0_179 = arith.constant 0 : index
    %107 = vector.load %arg9[%c2_176, %c0_177, %c0_178, %c0_179] : memref<6x6x2x32xf32, #tpu.memory_space<vmem>>, vector<1x1x2x8xf32>
    %108 = vector.shape_cast %107 : vector<1x1x2x8xf32> to vector<2x8xf32>
    %c2_180 = arith.constant 2 : index
    %c1_181 = arith.constant 1 : index
    %c0_182 = arith.constant 0 : index
    %c0_183 = arith.constant 0 : index
    %109 = vector.load %arg9[%c2_180, %c1_181, %c0_182, %c0_183] : memref<6x6x2x32xf32, #tpu.memory_space<vmem>>, vector<1x1x2x8xf32>
    %110 = vector.shape_cast %109 : vector<1x1x2x8xf32> to vector<2x8xf32>
    %c2_184 = arith.constant 2 : index
    %c2_185 = arith.constant 2 : index
    %c0_186 = arith.constant 0 : index
    %c0_187 = arith.constant 0 : index
    %111 = vector.load %arg9[%c2_184, %c2_185, %c0_186, %c0_187] : memref<6x6x2x32xf32, #tpu.memory_space<vmem>>, vector<1x1x2x8xf32>
    %112 = vector.shape_cast %111 : vector<1x1x2x8xf32> to vector<2x8xf32>
    %c2_188 = arith.constant 2 : index
    %c3_189 = arith.constant 3 : index
    %c0_190 = arith.constant 0 : index
    %c0_191 = arith.constant 0 : index
    %113 = vector.load %arg9[%c2_188, %c3_189, %c0_190, %c0_191] : memref<6x6x2x32xf32, #tpu.memory_space<vmem>>, vector<1x1x2x8xf32>
    %114 = vector.shape_cast %113 : vector<1x1x2x8xf32> to vector<2x8xf32>
    %c2_192 = arith.constant 2 : index
    %c4_193 = arith.constant 4 : index
    %c0_194 = arith.constant 0 : index
    %c0_195 = arith.constant 0 : index
    %115 = vector.load %arg9[%c2_192, %c4_193, %c0_194, %c0_195] : memref<6x6x2x32xf32, #tpu.memory_space<vmem>>, vector<1x1x2x8xf32>
    %116 = vector.shape_cast %115 : vector<1x1x2x8xf32> to vector<2x8xf32>
    %c2_196 = arith.constant 2 : index
    %c5_197 = arith.constant 5 : index
    %c0_198 = arith.constant 0 : index
    %c0_199 = arith.constant 0 : index
    %117 = vector.load %arg9[%c2_196, %c5_197, %c0_198, %c0_199] : memref<6x6x2x32xf32, #tpu.memory_space<vmem>>, vector<1x1x2x8xf32>
    %118 = vector.shape_cast %117 : vector<1x1x2x8xf32> to vector<2x8xf32>
    %c3_200 = arith.constant 3 : index
    %c0_201 = arith.constant 0 : index
    %c0_202 = arith.constant 0 : index
    %c0_203 = arith.constant 0 : index
    %119 = vector.load %arg9[%c3_200, %c0_201, %c0_202, %c0_203] : memref<6x6x2x32xf32, #tpu.memory_space<vmem>>, vector<1x1x2x8xf32>
    %120 = vector.shape_cast %119 : vector<1x1x2x8xf32> to vector<2x8xf32>
    %c3_204 = arith.constant 3 : index
    %c1_205 = arith.constant 1 : index
    %c0_206 = arith.constant 0 : index
    %c0_207 = arith.constant 0 : index
    %121 = vector.load %arg9[%c3_204, %c1_205, %c0_206, %c0_207] : memref<6x6x2x32xf32, #tpu.memory_space<vmem>>, vector<1x1x2x8xf32>
    %122 = vector.shape_cast %121 : vector<1x1x2x8xf32> to vector<2x8xf32>
    %c3_208 = arith.constant 3 : index
    %c2_209 = arith.constant 2 : index
    %c0_210 = arith.constant 0 : index
    %c0_211 = arith.constant 0 : index
    %123 = vector.load %arg9[%c3_208, %c2_209, %c0_210, %c0_211] : memref<6x6x2x32xf32, #tpu.memory_space<vmem>>, vector<1x1x2x8xf32>
    %124 = vector.shape_cast %123 : vector<1x1x2x8xf32> to vector<2x8xf32>
    %c3_212 = arith.constant 3 : index
    %c3_213 = arith.constant 3 : index
    %c0_214 = arith.constant 0 : index
    %c0_215 = arith.constant 0 : index
    %125 = vector.load %arg9[%c3_212, %c3_213, %c0_214, %c0_215] : memref<6x6x2x32xf32, #tpu.memory_space<vmem>>, vector<1x1x2x8xf32>
    %126 = vector.shape_cast %125 : vector<1x1x2x8xf32> to vector<2x8xf32>
    %c3_216 = arith.constant 3 : index
    %c4_217 = arith.constant 4 : index
    %c0_218 = arith.constant 0 : index
    %c0_219 = arith.constant 0 : index
    %127 = vector.load %arg9[%c3_216, %c4_217, %c0_218, %c0_219] : memref<6x6x2x32xf32, #tpu.memory_space<vmem>>, vector<1x1x2x8xf32>
    %128 = vector.shape_cast %127 : vector<1x1x2x8xf32> to vector<2x8xf32>
    %c3_220 = arith.constant 3 : index
    %c5_221 = arith.constant 5 : index
    %c0_222 = arith.constant 0 : index
    %c0_223 = arith.constant 0 : index
    %129 = vector.load %arg9[%c3_220, %c5_221, %c0_222, %c0_223] : memref<6x6x2x32xf32, #tpu.memory_space<vmem>>, vector<1x1x2x8xf32>
    %130 = vector.shape_cast %129 : vector<1x1x2x8xf32> to vector<2x8xf32>
    %c4_224 = arith.constant 4 : index
    %c0_225 = arith.constant 0 : index
    %c0_226 = arith.constant 0 : index
    %c0_227 = arith.constant 0 : index
    %131 = vector.load %arg9[%c4_224, %c0_225, %c0_226, %c0_227] : memref<6x6x2x32xf32, #tpu.memory_space<vmem>>, vector<1x1x2x8xf32>
    %132 = vector.shape_cast %131 : vector<1x1x2x8xf32> to vector<2x8xf32>
    %c4_228 = arith.constant 4 : index
    %c1_229 = arith.constant 1 : index
    %c0_230 = arith.constant 0 : index
    %c0_231 = arith.constant 0 : index
    %133 = vector.load %arg9[%c4_228, %c1_229, %c0_230, %c0_231] : memref<6x6x2x32xf32, #tpu.memory_space<vmem>>, vector<1x1x2x8xf32>
    %134 = vector.shape_cast %133 : vector<1x1x2x8xf32> to vector<2x8xf32>
    %c4_232 = arith.constant 4 : index
    %c2_233 = arith.constant 2 : index
    %c0_234 = arith.constant 0 : index
    %c0_235 = arith.constant 0 : index
    %135 = vector.load %arg9[%c4_232, %c2_233, %c0_234, %c0_235] : memref<6x6x2x32xf32, #tpu.memory_space<vmem>>, vector<1x1x2x8xf32>
    %136 = vector.shape_cast %135 : vector<1x1x2x8xf32> to vector<2x8xf32>
    %c4_236 = arith.constant 4 : index
    %c3_237 = arith.constant 3 : index
    %c0_238 = arith.constant 0 : index
    %c0_239 = arith.constant 0 : index
    %137 = vector.load %arg9[%c4_236, %c3_237, %c0_238, %c0_239] : memref<6x6x2x32xf32, #tpu.memory_space<vmem>>, vector<1x1x2x8xf32>
    %138 = vector.shape_cast %137 : vector<1x1x2x8xf32> to vector<2x8xf32>
    %c4_240 = arith.constant 4 : index
    %c4_241 = arith.constant 4 : index
    %c0_242 = arith.constant 0 : index
    %c0_243 = arith.constant 0 : index
    %139 = vector.load %arg9[%c4_240, %c4_241, %c0_242, %c0_243] : memref<6x6x2x32xf32, #tpu.memory_space<vmem>>, vector<1x1x2x8xf32>
    %140 = vector.shape_cast %139 : vector<1x1x2x8xf32> to vector<2x8xf32>
    %c4_244 = arith.constant 4 : index
    %c5_245 = arith.constant 5 : index
    %c0_246 = arith.constant 0 : index
    %c0_247 = arith.constant 0 : index
    %141 = vector.load %arg9[%c4_244, %c5_245, %c0_246, %c0_247] : memref<6x6x2x32xf32, #tpu.memory_space<vmem>>, vector<1x1x2x8xf32>
    %142 = vector.shape_cast %141 : vector<1x1x2x8xf32> to vector<2x8xf32>
    %c5_248 = arith.constant 5 : index
    %c0_249 = arith.constant 0 : index
    %c0_250 = arith.constant 0 : index
    %c0_251 = arith.constant 0 : index
    %143 = vector.load %arg9[%c5_248, %c0_249, %c0_250, %c0_251] : memref<6x6x2x32xf32, #tpu.memory_space<vmem>>, vector<1x1x2x8xf32>
    %144 = vector.shape_cast %143 : vector<1x1x2x8xf32> to vector<2x8xf32>
    %c5_252 = arith.constant 5 : index
    %c1_253 = arith.constant 1 : index
    %c0_254 = arith.constant 0 : index
    %c0_255 = arith.constant 0 : index
    %145 = vector.load %arg9[%c5_252, %c1_253, %c0_254, %c0_255] : memref<6x6x2x32xf32, #tpu.memory_space<vmem>>, vector<1x1x2x8xf32>
    %146 = vector.shape_cast %145 : vector<1x1x2x8xf32> to vector<2x8xf32>
    %c5_256 = arith.constant 5 : index
    %c2_257 = arith.constant 2 : index
    %c0_258 = arith.constant 0 : index
    %c0_259 = arith.constant 0 : index
    %147 = vector.load %arg9[%c5_256, %c2_257, %c0_258, %c0_259] : memref<6x6x2x32xf32, #tpu.memory_space<vmem>>, vector<1x1x2x8xf32>
    %148 = vector.shape_cast %147 : vector<1x1x2x8xf32> to vector<2x8xf32>
    %c5_260 = arith.constant 5 : index
    %c3_261 = arith.constant 3 : index
    %c0_262 = arith.constant 0 : index
    %c0_263 = arith.constant 0 : index
    %149 = vector.load %arg9[%c5_260, %c3_261, %c0_262, %c0_263] : memref<6x6x2x32xf32, #tpu.memory_space<vmem>>, vector<1x1x2x8xf32>
    %150 = vector.shape_cast %149 : vector<1x1x2x8xf32> to vector<2x8xf32>
    %c5_264 = arith.constant 5 : index
    %c4_265 = arith.constant 4 : index
    %c0_266 = arith.constant 0 : index
    %c0_267 = arith.constant 0 : index
    %151 = vector.load %arg9[%c5_264, %c4_265, %c0_266, %c0_267] : memref<6x6x2x32xf32, #tpu.memory_space<vmem>>, vector<1x1x2x8xf32>
    %152 = vector.shape_cast %151 : vector<1x1x2x8xf32> to vector<2x8xf32>
    %c5_268 = arith.constant 5 : index
    %c5_269 = arith.constant 5 : index
    %c0_270 = arith.constant 0 : index
    %c0_271 = arith.constant 0 : index
    %153 = vector.load %arg9[%c5_268, %c5_269, %c0_270, %c0_271] : memref<6x6x2x32xf32, #tpu.memory_space<vmem>>, vector<1x1x2x8xf32>
    %154 = vector.shape_cast %153 : vector<1x1x2x8xf32> to vector<2x8xf32>
    %155 = tpu.concatenate %84, %86, %88, %96, %98, %100, %108, %110, %112 in 1 : vector<2x8xf32>, vector<2x8xf32>, vector<2x8xf32>, vector<2x8xf32>, vector<2x8xf32>, vector<2x8xf32>, vector<2x8xf32>, vector<2x8xf32>, vector<2x8xf32> -> vector<2x72xf32>
    %c0_272 = arith.constant 0 : index
    %c0_273 = arith.constant 0 : index
    %156 = vector.load %arg10[%c0_272, %c0_273] : memref<32x288xf32, #tpu.memory_space<vmem>>, vector<2x72xf32>
    tpu.vector_store %arg10[%c0_272, %c0_273], %155 {strides = array<i32>} : memref<32x288xf32, #tpu.memory_space<vmem>>, vector<2x72xf32>,
    %157 = tpu.concatenate %86, %88, %90, %98, %100, %102, %110, %112, %114 in 1 : vector<2x8xf32>, vector<2x8xf32>, vector<2x8xf32>, vector<2x8xf32>, vector<2x8xf32>, vector<2x8xf32>, vector<2x8xf32>, vector<2x8xf32>, vector<2x8xf32> -> vector<2x72xf32>
    %c2_274 = arith.constant 2 : index
    %c0_275 = arith.constant 0 : index
    %158 = vector.load %arg10[%c2_274, %c0_275] : memref<32x288xf32, #tpu.memory_space<vmem>>, vector<2x72xf32>
    tpu.vector_store %arg10[%c2_274, %c0_275], %157 {strides = array<i32>} : memref<32x288xf32, #tpu.memory_space<vmem>>, vector<2x72xf32>,
    %159 = tpu.concatenate %88, %90, %92, %100, %102, %104, %112, %114, %116 in 1 : vector<2x8xf32>, vector<2x8xf32>, vector<2x8xf32>, vector<2x8xf32>, vector<2x8xf32>, vector<2x8xf32>, vector<2x8xf32>, vector<2x8xf32>, vector<2x8xf32> -> vector<2x72xf32>
    %c4_276 = arith.constant 4 : index
    %c0_277 = arith.constant 0 : index
    %160 = vector.load %arg10[%c4_276, %c0_277] : memref<32x288xf32, #tpu.memory_space<vmem>>, vector<2x72xf32>
    tpu.vector_store %arg10[%c4_276, %c0_277], %159 {strides = array<i32>} : memref<32x288xf32, #tpu.memory_space<vmem>>, vector<2x72xf32>,
    %161 = tpu.concatenate %90, %92, %94, %102, %104, %106, %114, %116, %118 in 1 : vector<2x8xf32>, vector<2x8xf32>, vector<2x8xf32>, vector<2x8xf32>, vector<2x8xf32>, vector<2x8xf32>, vector<2x8xf32>, vector<2x8xf32>, vector<2x8xf32> -> vector<2x72xf32>
    %c6 = arith.constant 6 : index
    %c0_278 = arith.constant 0 : index
    %162 = vector.load %arg10[%c6, %c0_278] : memref<32x288xf32, #tpu.memory_space<vmem>>, vector<2x72xf32>
    tpu.vector_store %arg10[%c6, %c0_278], %161 {strides = array<i32>} : memref<32x288xf32, #tpu.memory_space<vmem>>, vector<2x72xf32>,
    %163 = tpu.concatenate %96, %98, %100, %108, %110, %112, %120, %122, %124 in 1 : vector<2x8xf32>, vector<2x8xf32>, vector<2x8xf32>, vector<2x8xf32>, vector<2x8xf32>, vector<2x8xf32>, vector<2x8xf32>, vector<2x8xf32>, vector<2x8xf32> -> vector<2x72xf32>
    %c8 = arith.constant 8 : index
    %c0_279 = arith.constant 0 : index
    %164 = vector.load %arg10[%c8, %c0_279] : memref<32x288xf32, #tpu.memory_space<vmem>>, vector<2x72xf32>
    tpu.vector_store %arg10[%c8, %c0_279], %163 {strides = array<i32>} : memref<32x288xf32, #tpu.memory_space<vmem>>, vector<2x72xf32>,
    %165 = tpu.concatenate %98, %100, %102, %110, %112, %114, %122, %124, %126 in 1 : vector<2x8xf32>, vector<2x8xf32>, vector<2x8xf32>, vector<2x8xf32>, vector<2x8xf32>, vector<2x8xf32>, vector<2x8xf32>, vector<2x8xf32>, vector<2x8xf32> -> vector<2x72xf32>
    %c10 = arith.constant 10 : index
    %c0_280 = arith.constant 0 : index
    %166 = vector.load %arg10[%c10, %c0_280] : memref<32x288xf32, #tpu.memory_space<vmem>>, vector<2x72xf32>
    tpu.vector_store %arg10[%c10, %c0_280], %165 {strides = array<i32>} : memref<32x288xf32, #tpu.memory_space<vmem>>, vector<2x72xf32>,
    %167 = tpu.concatenate %100, %102, %104, %112, %114, %116, %124, %126, %128 in 1 : vector<2x8xf32>, vector<2x8xf32>, vector<2x8xf32>, vector<2x8xf32>, vector<2x8xf32>, vector<2x8xf32>, vector<2x8xf32>, vector<2x8xf32>, vector<2x8xf32> -> vector<2x72xf32>
    %c12 = arith.constant 12 : index
    %c0_281 = arith.constant 0 : index
    %168 = vector.load %arg10[%c12, %c0_281] : memref<32x288xf32, #tpu.memory_space<vmem>>, vector<2x72xf32>
    tpu.vector_store %arg10[%c12, %c0_281], %167 {strides = array<i32>} : memref<32x288xf32, #tpu.memory_space<vmem>>, vector<2x72xf32>,
    %169 = tpu.concatenate %102, %104, %106, %114, %116, %118, %126, %128, %130 in 1 : vector<2x8xf32>, vector<2x8xf32>, vector<2x8xf32>, vector<2x8xf32>, vector<2x8xf32>, vector<2x8xf32>, vector<2x8xf32>, vector<2x8xf32>, vector<2x8xf32> -> vector<2x72xf32>
    %c14 = arith.constant 14 : index
    %c0_282 = arith.constant 0 : index
    %170 = vector.load %arg10[%c14, %c0_282] : memref<32x288xf32, #tpu.memory_space<vmem>>, vector<2x72xf32>
    tpu.vector_store %arg10[%c14, %c0_282], %169 {strides = array<i32>} : memref<32x288xf32, #tpu.memory_space<vmem>>, vector<2x72xf32>,
    %171 = tpu.concatenate %108, %110, %112, %120, %122, %124, %132, %134, %136 in 1 : vector<2x8xf32>, vector<2x8xf32>, vector<2x8xf32>, vector<2x8xf32>, vector<2x8xf32>, vector<2x8xf32>, vector<2x8xf32>, vector<2x8xf32>, vector<2x8xf32> -> vector<2x72xf32>
    %c16 = arith.constant 16 : index
    %c0_283 = arith.constant 0 : index
    %172 = vector.load %arg10[%c16, %c0_283] : memref<32x288xf32, #tpu.memory_space<vmem>>, vector<2x72xf32>
    tpu.vector_store %arg10[%c16, %c0_283], %171 {strides = array<i32>} : memref<32x288xf32, #tpu.memory_space<vmem>>, vector<2x72xf32>,
    %173 = tpu.concatenate %110, %112, %114, %122, %124, %126, %134, %136, %138 in 1 : vector<2x8xf32>, vector<2x8xf32>, vector<2x8xf32>, vector<2x8xf32>, vector<2x8xf32>, vector<2x8xf32>, vector<2x8xf32>, vector<2x8xf32>, vector<2x8xf32> -> vector<2x72xf32>
    %c18 = arith.constant 18 : index
    %c0_284 = arith.constant 0 : index
    %174 = vector.load %arg10[%c18, %c0_284] : memref<32x288xf32, #tpu.memory_space<vmem>>, vector<2x72xf32>
    tpu.vector_store %arg10[%c18, %c0_284], %173 {strides = array<i32>} : memref<32x288xf32, #tpu.memory_space<vmem>>, vector<2x72xf32>,
    %175 = tpu.concatenate %112, %114, %116, %124, %126, %128, %136, %138, %140 in 1 : vector<2x8xf32>, vector<2x8xf32>, vector<2x8xf32>, vector<2x8xf32>, vector<2x8xf32>, vector<2x8xf32>, vector<2x8xf32>, vector<2x8xf32>, vector<2x8xf32> -> vector<2x72xf32>
    %c20 = arith.constant 20 : index
    %c0_285 = arith.constant 0 : index
    %176 = vector.load %arg10[%c20, %c0_285] : memref<32x288xf32, #tpu.memory_space<vmem>>, vector<2x72xf32>
    tpu.vector_store %arg10[%c20, %c0_285], %175 {strides = array<i32>} : memref<32x288xf32, #tpu.memory_space<vmem>>, vector<2x72xf32>,
    %177 = tpu.concatenate %114, %116, %118, %126, %128, %130, %138, %140, %142 in 1 : vector<2x8xf32>, vector<2x8xf32>, vector<2x8xf32>, vector<2x8xf32>, vector<2x8xf32>, vector<2x8xf32>, vector<2x8xf32>, vector<2x8xf32>, vector<2x8xf32> -> vector<2x72xf32>
    %c22 = arith.constant 22 : index
    %c0_286 = arith.constant 0 : index
    %178 = vector.load %arg10[%c22, %c0_286] : memref<32x288xf32, #tpu.memory_space<vmem>>, vector<2x72xf32>
    tpu.vector_store %arg10[%c22, %c0_286], %177 {strides = array<i32>} : memref<32x288xf32, #tpu.memory_space<vmem>>, vector<2x72xf32>,
    %179 = tpu.concatenate %120, %122, %124, %132, %134, %136, %144, %146, %148 in 1 : vector<2x8xf32>, vector<2x8xf32>, vector<2x8xf32>, vector<2x8xf32>, vector<2x8xf32>, vector<2x8xf32>, vector<2x8xf32>, vector<2x8xf32>, vector<2x8xf32> -> vector<2x72xf32>
    %c24 = arith.constant 24 : index
    %c0_287 = arith.constant 0 : index
    %180 = vector.load %arg10[%c24, %c0_287] : memref<32x288xf32, #tpu.memory_space<vmem>>, vector<2x72xf32>
    tpu.vector_store %arg10[%c24, %c0_287], %179 {strides = array<i32>} : memref<32x288xf32, #tpu.memory_space<vmem>>, vector<2x72xf32>,
    %181 = tpu.concatenate %122, %124, %126, %134, %136, %138, %146, %148, %150 in 1 : vector<2x8xf32>, vector<2x8xf32>, vector<2x8xf32>, vector<2x8xf32>, vector<2x8xf32>, vector<2x8xf32>, vector<2x8xf32>, vector<2x8xf32>, vector<2x8xf32> -> vector<2x72xf32>
    %c26 = arith.constant 26 : index
    %c0_288 = arith.constant 0 : index
    %182 = vector.load %arg10[%c26, %c0_288] : memref<32x288xf32, #tpu.memory_space<vmem>>, vector<2x72xf32>
    tpu.vector_store %arg10[%c26, %c0_288], %181 {strides = array<i32>} : memref<32x288xf32, #tpu.memory_space<vmem>>, vector<2x72xf32>,
    %183 = tpu.concatenate %124, %126, %128, %136, %138, %140, %148, %150, %152 in 1 : vector<2x8xf32>, vector<2x8xf32>, vector<2x8xf32>, vector<2x8xf32>, vector<2x8xf32>, vector<2x8xf32>, vector<2x8xf32>, vector<2x8xf32>, vector<2x8xf32> -> vector<2x72xf32>
    %c28 = arith.constant 28 : index
    %c0_289 = arith.constant 0 : index
    %184 = vector.load %arg10[%c28, %c0_289] : memref<32x288xf32, #tpu.memory_space<vmem>>, vector<2x72xf32>
    tpu.vector_store %arg10[%c28, %c0_289], %183 {strides = array<i32>} : memref<32x288xf32, #tpu.memory_space<vmem>>, vector<2x72xf32>,
    %185 = tpu.concatenate %126, %128, %130, %138, %140, %142, %150, %152, %154 in 1 : vector<2x8xf32>, vector<2x8xf32>, vector<2x8xf32>, vector<2x8xf32>, vector<2x8xf32>, vector<2x8xf32>, vector<2x8xf32>, vector<2x8xf32>, vector<2x8xf32> -> vector<2x72xf32>
    %c30 = arith.constant 30 : index
    %c0_290 = arith.constant 0 : index
    %186 = vector.load %arg10[%c30, %c0_290] : memref<32x288xf32, #tpu.memory_space<vmem>>, vector<2x72xf32>
    tpu.vector_store %arg10[%c30, %c0_290], %185 {strides = array<i32>} : memref<32x288xf32, #tpu.memory_space<vmem>>, vector<2x72xf32>,
    %c0_291 = arith.constant 0 : index
    %c0_292 = arith.constant 0 : index
    %187 = vector.load %arg10[%c0_291, %c0_292] : memref<32x288xf32, #tpu.memory_space<vmem>>, vector<32x72xf32>
    %188 = arith.truncf %187 : vector<32x72xf32> to vector<32x72xbf16>
    %c0_293 = arith.constant 0 : index
    %c0_294 = arith.constant 0 : index
    %189 = vector.load %arg3[%c0_293, %c0_294] : memref<72x32xbf16, #tpu.memory_space<vmem>>, vector<72x32xbf16>
    %cst_295 = arith.constant dense<0.000000e+00> : vector<32x32xf32>
    %190 = tpu.matmul %188, %189, %cst_295 {dimension_numbers = #tpu.dot_dimension_numbers<[1], [0], [0], [1], [0, 0, 1, 1], [], []>} : vector<32x72xbf16>, vector<72x32xbf16>, vector<32x32xf32> -> vector<32x32xf32>
    %191 = vector.extract_strided_slice %0 {offsets = [0, 0], sizes = [1, 32], strides = [1, 1]} : vector<8x128xf32> to vector<1x32xf32>
    %192 = vector.broadcast %191 : vector<1x32xf32> to vector<32x32xf32>
    %193 = arith.addf %190, %192 : vector<32x32xf32>
    %cst_296 = arith.constant 0.000000e+00 : f32
    %194 = vector.broadcast %cst_296 : f32 to vector<32x32xf32>
    %195 = arith.maximumf %193, %194 : vector<32x32xf32>
    %196 = vector.extract_strided_slice %195 {offsets = [0, 0], sizes = [2, 32], strides = [1, 1]} : vector<32x32xf32> to vector<2x32xf32>
    %c1_297 = arith.constant 1 : index
    %c1_298 = arith.constant 1 : index
    %c0_299 = arith.constant 0 : index
    %c0_300 = arith.constant 0 : index
    %197 = vector.load %arg9[%c1_297, %c1_298, %c0_299, %c0_300] : memref<6x6x2x32xf32, #tpu.memory_space<vmem>>, vector<1x1x2x32xf32>
    %198 = vector.shape_cast %197 : vector<1x1x2x32xf32> to vector<2x32xf32>
    %199 = vector.shape_cast %196 : vector<2x32xf32> to vector<1x1x2x32xf32>
    tpu.vector_store %arg9[%c1_297, %c1_298, %c0_299, %c0_300], %199 {strides = array<i32>} : memref<6x6x2x32xf32, #tpu.memory_space<vmem>>, vector<1x1x2x32xf32>,
    %200 = vector.extract_strided_slice %195 {offsets = [2, 0], sizes = [2, 32], strides = [1, 1]} : vector<32x32xf32> to vector<2x32xf32>
    %c1_301 = arith.constant 1 : index
    %c2_302 = arith.constant 2 : index
    %c0_303 = arith.constant 0 : index
    %c0_304 = arith.constant 0 : index
    %201 = vector.load %arg9[%c1_301, %c2_302, %c0_303, %c0_304] : memref<6x6x2x32xf32, #tpu.memory_space<vmem>>, vector<1x1x2x32xf32>
    %202 = vector.shape_cast %201 : vector<1x1x2x32xf32> to vector<2x32xf32>
    %203 = vector.shape_cast %200 : vector<2x32xf32> to vector<1x1x2x32xf32>
    tpu.vector_store %arg9[%c1_301, %c2_302, %c0_303, %c0_304], %203 {strides = array<i32>} : memref<6x6x2x32xf32, #tpu.memory_space<vmem>>, vector<1x1x2x32xf32>,
    %204 = vector.extract_strided_slice %195 {offsets = [4, 0], sizes = [2, 32], strides = [1, 1]} : vector<32x32xf32> to vector<2x32xf32>
    %c1_305 = arith.constant 1 : index
    %c3_306 = arith.constant 3 : index
    %c0_307 = arith.constant 0 : index
    %c0_308 = arith.constant 0 : index
    %205 = vector.load %arg9[%c1_305, %c3_306, %c0_307, %c0_308] : memref<6x6x2x32xf32, #tpu.memory_space<vmem>>, vector<1x1x2x32xf32>
    %206 = vector.shape_cast %205 : vector<1x1x2x32xf32> to vector<2x32xf32>
    %207 = vector.shape_cast %204 : vector<2x32xf32> to vector<1x1x2x32xf32>
    tpu.vector_store %arg9[%c1_305, %c3_306, %c0_307, %c0_308], %207 {strides = array<i32>} : memref<6x6x2x32xf32, #tpu.memory_space<vmem>>, vector<1x1x2x32xf32>,
    %208 = vector.extract_strided_slice %195 {offsets = [6, 0], sizes = [2, 32], strides = [1, 1]} : vector<32x32xf32> to vector<2x32xf32>
    %c1_309 = arith.constant 1 : index
    %c4_310 = arith.constant 4 : index
    %c0_311 = arith.constant 0 : index
    %c0_312 = arith.constant 0 : index
    %209 = vector.load %arg9[%c1_309, %c4_310, %c0_311, %c0_312] : memref<6x6x2x32xf32, #tpu.memory_space<vmem>>, vector<1x1x2x32xf32>
    %210 = vector.shape_cast %209 : vector<1x1x2x32xf32> to vector<2x32xf32>
    %211 = vector.shape_cast %208 : vector<2x32xf32> to vector<1x1x2x32xf32>
    tpu.vector_store %arg9[%c1_309, %c4_310, %c0_311, %c0_312], %211 {strides = array<i32>} : memref<6x6x2x32xf32, #tpu.memory_space<vmem>>, vector<1x1x2x32xf32>,
    %212 = vector.extract_strided_slice %195 {offsets = [8, 0], sizes = [2, 32], strides = [1, 1]} : vector<32x32xf32> to vector<2x32xf32>
    %c2_313 = arith.constant 2 : index
    %c1_314 = arith.constant 1 : index
    %c0_315 = arith.constant 0 : index
    %c0_316 = arith.constant 0 : index
    %213 = vector.load %arg9[%c2_313, %c1_314, %c0_315, %c0_316] : memref<6x6x2x32xf32, #tpu.memory_space<vmem>>, vector<1x1x2x32xf32>
    %214 = vector.shape_cast %213 : vector<1x1x2x32xf32> to vector<2x32xf32>
    %215 = vector.shape_cast %212 : vector<2x32xf32> to vector<1x1x2x32xf32>
    tpu.vector_store %arg9[%c2_313, %c1_314, %c0_315, %c0_316], %215 {strides = array<i32>} : memref<6x6x2x32xf32, #tpu.memory_space<vmem>>, vector<1x1x2x32xf32>,
    %216 = vector.extract_strided_slice %195 {offsets = [10, 0], sizes = [2, 32], strides = [1, 1]} : vector<32x32xf32> to vector<2x32xf32>
    %c2_317 = arith.constant 2 : index
    %c2_318 = arith.constant 2 : index
    %c0_319 = arith.constant 0 : index
    %c0_320 = arith.constant 0 : index
    %217 = vector.load %arg9[%c2_317, %c2_318, %c0_319, %c0_320] : memref<6x6x2x32xf32, #tpu.memory_space<vmem>>, vector<1x1x2x32xf32>
    %218 = vector.shape_cast %217 : vector<1x1x2x32xf32> to vector<2x32xf32>
    %219 = vector.shape_cast %216 : vector<2x32xf32> to vector<1x1x2x32xf32>
    tpu.vector_store %arg9[%c2_317, %c2_318, %c0_319, %c0_320], %219 {strides = array<i32>} : memref<6x6x2x32xf32, #tpu.memory_space<vmem>>, vector<1x1x2x32xf32>,
    %220 = vector.extract_strided_slice %195 {offsets = [12, 0], sizes = [2, 32], strides = [1, 1]} : vector<32x32xf32> to vector<2x32xf32>
    %c2_321 = arith.constant 2 : index
    %c3_322 = arith.constant 3 : index
    %c0_323 = arith.constant 0 : index
    %c0_324 = arith.constant 0 : index
    %221 = vector.load %arg9[%c2_321, %c3_322, %c0_323, %c0_324] : memref<6x6x2x32xf32, #tpu.memory_space<vmem>>, vector<1x1x2x32xf32>
    %222 = vector.shape_cast %221 : vector<1x1x2x32xf32> to vector<2x32xf32>
    %223 = vector.shape_cast %220 : vector<2x32xf32> to vector<1x1x2x32xf32>
    tpu.vector_store %arg9[%c2_321, %c3_322, %c0_323, %c0_324], %223 {strides = array<i32>} : memref<6x6x2x32xf32, #tpu.memory_space<vmem>>, vector<1x1x2x32xf32>,
    %224 = vector.extract_strided_slice %195 {offsets = [14, 0], sizes = [2, 32], strides = [1, 1]} : vector<32x32xf32> to vector<2x32xf32>
    %c2_325 = arith.constant 2 : index
    %c4_326 = arith.constant 4 : index
    %c0_327 = arith.constant 0 : index
    %c0_328 = arith.constant 0 : index
    %225 = vector.load %arg9[%c2_325, %c4_326, %c0_327, %c0_328] : memref<6x6x2x32xf32, #tpu.memory_space<vmem>>, vector<1x1x2x32xf32>
    %226 = vector.shape_cast %225 : vector<1x1x2x32xf32> to vector<2x32xf32>
    %227 = vector.shape_cast %224 : vector<2x32xf32> to vector<1x1x2x32xf32>
    tpu.vector_store %arg9[%c2_325, %c4_326, %c0_327, %c0_328], %227 {strides = array<i32>} : memref<6x6x2x32xf32, #tpu.memory_space<vmem>>, vector<1x1x2x32xf32>,
    %228 = vector.extract_strided_slice %195 {offsets = [16, 0], sizes = [2, 32], strides = [1, 1]} : vector<32x32xf32> to vector<2x32xf32>
    %c3_329 = arith.constant 3 : index
    %c1_330 = arith.constant 1 : index
    %c0_331 = arith.constant 0 : index
    %c0_332 = arith.constant 0 : index
    %229 = vector.load %arg9[%c3_329, %c1_330, %c0_331, %c0_332] : memref<6x6x2x32xf32, #tpu.memory_space<vmem>>, vector<1x1x2x32xf32>
    %230 = vector.shape_cast %229 : vector<1x1x2x32xf32> to vector<2x32xf32>
    %231 = vector.shape_cast %228 : vector<2x32xf32> to vector<1x1x2x32xf32>
    tpu.vector_store %arg9[%c3_329, %c1_330, %c0_331, %c0_332], %231 {strides = array<i32>} : memref<6x6x2x32xf32, #tpu.memory_space<vmem>>, vector<1x1x2x32xf32>,
    %232 = vector.extract_strided_slice %195 {offsets = [18, 0], sizes = [2, 32], strides = [1, 1]} : vector<32x32xf32> to vector<2x32xf32>
    %c3_333 = arith.constant 3 : index
    %c2_334 = arith.constant 2 : index
    %c0_335 = arith.constant 0 : index
    %c0_336 = arith.constant 0 : index
    %233 = vector.load %arg9[%c3_333, %c2_334, %c0_335, %c0_336] : memref<6x6x2x32xf32, #tpu.memory_space<vmem>>, vector<1x1x2x32xf32>
    %234 = vector.shape_cast %233 : vector<1x1x2x32xf32> to vector<2x32xf32>
    %235 = vector.shape_cast %232 : vector<2x32xf32> to vector<1x1x2x32xf32>
    tpu.vector_store %arg9[%c3_333, %c2_334, %c0_335, %c0_336], %235 {strides = array<i32>} : memref<6x6x2x32xf32, #tpu.memory_space<vmem>>, vector<1x1x2x32xf32>,
    %236 = vector.extract_strided_slice %195 {offsets = [20, 0], sizes = [2, 32], strides = [1, 1]} : vector<32x32xf32> to vector<2x32xf32>
    %c3_337 = arith.constant 3 : index
    %c3_338 = arith.constant 3 : index
    %c0_339 = arith.constant 0 : index
    %c0_340 = arith.constant 0 : index
    %237 = vector.load %arg9[%c3_337, %c3_338, %c0_339, %c0_340] : memref<6x6x2x32xf32, #tpu.memory_space<vmem>>, vector<1x1x2x32xf32>
    %238 = vector.shape_cast %237 : vector<1x1x2x32xf32> to vector<2x32xf32>
    %239 = vector.shape_cast %236 : vector<2x32xf32> to vector<1x1x2x32xf32>
    tpu.vector_store %arg9[%c3_337, %c3_338, %c0_339, %c0_340], %239 {strides = array<i32>} : memref<6x6x2x32xf32, #tpu.memory_space<vmem>>, vector<1x1x2x32xf32>,
    %240 = vector.extract_strided_slice %195 {offsets = [22, 0], sizes = [2, 32], strides = [1, 1]} : vector<32x32xf32> to vector<2x32xf32>
    %c3_341 = arith.constant 3 : index
    %c4_342 = arith.constant 4 : index
    %c0_343 = arith.constant 0 : index
    %c0_344 = arith.constant 0 : index
    %241 = vector.load %arg9[%c3_341, %c4_342, %c0_343, %c0_344] : memref<6x6x2x32xf32, #tpu.memory_space<vmem>>, vector<1x1x2x32xf32>
    %242 = vector.shape_cast %241 : vector<1x1x2x32xf32> to vector<2x32xf32>
    %243 = vector.shape_cast %240 : vector<2x32xf32> to vector<1x1x2x32xf32>
    tpu.vector_store %arg9[%c3_341, %c4_342, %c0_343, %c0_344], %243 {strides = array<i32>} : memref<6x6x2x32xf32, #tpu.memory_space<vmem>>, vector<1x1x2x32xf32>,
    %244 = vector.extract_strided_slice %195 {offsets = [24, 0], sizes = [2, 32], strides = [1, 1]} : vector<32x32xf32> to vector<2x32xf32>
    %c4_345 = arith.constant 4 : index
    %c1_346 = arith.constant 1 : index
    %c0_347 = arith.constant 0 : index
    %c0_348 = arith.constant 0 : index
    %245 = vector.load %arg9[%c4_345, %c1_346, %c0_347, %c0_348] : memref<6x6x2x32xf32, #tpu.memory_space<vmem>>, vector<1x1x2x32xf32>
    %246 = vector.shape_cast %245 : vector<1x1x2x32xf32> to vector<2x32xf32>
    %247 = vector.shape_cast %244 : vector<2x32xf32> to vector<1x1x2x32xf32>
    tpu.vector_store %arg9[%c4_345, %c1_346, %c0_347, %c0_348], %247 {strides = array<i32>} : memref<6x6x2x32xf32, #tpu.memory_space<vmem>>, vector<1x1x2x32xf32>,
    %248 = vector.extract_strided_slice %195 {offsets = [26, 0], sizes = [2, 32], strides = [1, 1]} : vector<32x32xf32> to vector<2x32xf32>
    %c4_349 = arith.constant 4 : index
    %c2_350 = arith.constant 2 : index
    %c0_351 = arith.constant 0 : index
    %c0_352 = arith.constant 0 : index
    %249 = vector.load %arg9[%c4_349, %c2_350, %c0_351, %c0_352] : memref<6x6x2x32xf32, #tpu.memory_space<vmem>>, vector<1x1x2x32xf32>
    %250 = vector.shape_cast %249 : vector<1x1x2x32xf32> to vector<2x32xf32>
    %251 = vector.shape_cast %248 : vector<2x32xf32> to vector<1x1x2x32xf32>
    tpu.vector_store %arg9[%c4_349, %c2_350, %c0_351, %c0_352], %251 {strides = array<i32>} : memref<6x6x2x32xf32, #tpu.memory_space<vmem>>, vector<1x1x2x32xf32>,
    %252 = vector.extract_strided_slice %195 {offsets = [28, 0], sizes = [2, 32], strides = [1, 1]} : vector<32x32xf32> to vector<2x32xf32>
    %c4_353 = arith.constant 4 : index
    %c3_354 = arith.constant 3 : index
    %c0_355 = arith.constant 0 : index
    %c0_356 = arith.constant 0 : index
    %253 = vector.load %arg9[%c4_353, %c3_354, %c0_355, %c0_356] : memref<6x6x2x32xf32, #tpu.memory_space<vmem>>, vector<1x1x2x32xf32>
    %254 = vector.shape_cast %253 : vector<1x1x2x32xf32> to vector<2x32xf32>
    %255 = vector.shape_cast %252 : vector<2x32xf32> to vector<1x1x2x32xf32>
    tpu.vector_store %arg9[%c4_353, %c3_354, %c0_355, %c0_356], %255 {strides = array<i32>} : memref<6x6x2x32xf32, #tpu.memory_space<vmem>>, vector<1x1x2x32xf32>,
    %256 = vector.extract_strided_slice %195 {offsets = [30, 0], sizes = [2, 32], strides = [1, 1]} : vector<32x32xf32> to vector<2x32xf32>
    %c4_357 = arith.constant 4 : index
    %c4_358 = arith.constant 4 : index
    %c0_359 = arith.constant 0 : index
    %c0_360 = arith.constant 0 : index
    %257 = vector.load %arg9[%c4_357, %c4_358, %c0_359, %c0_360] : memref<6x6x2x32xf32, #tpu.memory_space<vmem>>, vector<1x1x2x32xf32>
    %258 = vector.shape_cast %257 : vector<1x1x2x32xf32> to vector<2x32xf32>
    %259 = vector.shape_cast %256 : vector<2x32xf32> to vector<1x1x2x32xf32>
    tpu.vector_store %arg9[%c4_357, %c4_358, %c0_359, %c0_360], %259 {strides = array<i32>} : memref<6x6x2x32xf32, #tpu.memory_space<vmem>>, vector<1x1x2x32xf32>,
    %c0_361 = arith.constant 0 : index
    %c0_362 = arith.constant 0 : index
    %c0_363 = arith.constant 0 : index
    %c0_364 = arith.constant 0 : index
    %260 = vector.load %arg9[%c0_361, %c0_362, %c0_363, %c0_364] : memref<6x6x2x32xf32, #tpu.memory_space<vmem>>, vector<1x1x2x32xf32>
    %261 = vector.shape_cast %260 : vector<1x1x2x32xf32> to vector<2x32xf32>
    %c0_365 = arith.constant 0 : index
    %c1_366 = arith.constant 1 : index
    %c0_367 = arith.constant 0 : index
    %c0_368 = arith.constant 0 : index
    %262 = vector.load %arg9[%c0_365, %c1_366, %c0_367, %c0_368] : memref<6x6x2x32xf32, #tpu.memory_space<vmem>>, vector<1x1x2x32xf32>
    %263 = vector.shape_cast %262 : vector<1x1x2x32xf32> to vector<2x32xf32>
    %c0_369 = arith.constant 0 : index
    %c2_370 = arith.constant 2 : index
    %c0_371 = arith.constant 0 : index
    %c0_372 = arith.constant 0 : index
    %264 = vector.load %arg9[%c0_369, %c2_370, %c0_371, %c0_372] : memref<6x6x2x32xf32, #tpu.memory_space<vmem>>, vector<1x1x2x32xf32>
    %265 = vector.shape_cast %264 : vector<1x1x2x32xf32> to vector<2x32xf32>
    %c0_373 = arith.constant 0 : index
    %c3_374 = arith.constant 3 : index
    %c0_375 = arith.constant 0 : index
    %c0_376 = arith.constant 0 : index
    %266 = vector.load %arg9[%c0_373, %c3_374, %c0_375, %c0_376] : memref<6x6x2x32xf32, #tpu.memory_space<vmem>>, vector<1x1x2x32xf32>
    %267 = vector.shape_cast %266 : vector<1x1x2x32xf32> to vector<2x32xf32>
    %c0_377 = arith.constant 0 : index
    %c4_378 = arith.constant 4 : index
    %c0_379 = arith.constant 0 : index
    %c0_380 = arith.constant 0 : index
    %268 = vector.load %arg9[%c0_377, %c4_378, %c0_379, %c0_380] : memref<6x6x2x32xf32, #tpu.memory_space<vmem>>, vector<1x1x2x32xf32>
    %269 = vector.shape_cast %268 : vector<1x1x2x32xf32> to vector<2x32xf32>
    %c0_381 = arith.constant 0 : index
    %c5_382 = arith.constant 5 : index
    %c0_383 = arith.constant 0 : index
    %c0_384 = arith.constant 0 : index
    %270 = vector.load %arg9[%c0_381, %c5_382, %c0_383, %c0_384] : memref<6x6x2x32xf32, #tpu.memory_space<vmem>>, vector<1x1x2x32xf32>
    %271 = vector.shape_cast %270 : vector<1x1x2x32xf32> to vector<2x32xf32>
    %c1_385 = arith.constant 1 : index
    %c0_386 = arith.constant 0 : index
    %c0_387 = arith.constant 0 : index
    %c0_388 = arith.constant 0 : index
    %272 = vector.load %arg9[%c1_385, %c0_386, %c0_387, %c0_388] : memref<6x6x2x32xf32, #tpu.memory_space<vmem>>, vector<1x1x2x32xf32>
    %273 = vector.shape_cast %272 : vector<1x1x2x32xf32> to vector<2x32xf32>
    %c1_389 = arith.constant 1 : index
    %c1_390 = arith.constant 1 : index
    %c0_391 = arith.constant 0 : index
    %c0_392 = arith.constant 0 : index
    %274 = vector.load %arg9[%c1_389, %c1_390, %c0_391, %c0_392] : memref<6x6x2x32xf32, #tpu.memory_space<vmem>>, vector<1x1x2x32xf32>
    %275 = vector.shape_cast %274 : vector<1x1x2x32xf32> to vector<2x32xf32>
    %c1_393 = arith.constant 1 : index
    %c2_394 = arith.constant 2 : index
    %c0_395 = arith.constant 0 : index
    %c0_396 = arith.constant 0 : index
    %276 = vector.load %arg9[%c1_393, %c2_394, %c0_395, %c0_396] : memref<6x6x2x32xf32, #tpu.memory_space<vmem>>, vector<1x1x2x32xf32>
    %277 = vector.shape_cast %276 : vector<1x1x2x32xf32> to vector<2x32xf32>
    %c1_397 = arith.constant 1 : index
    %c3_398 = arith.constant 3 : index
    %c0_399 = arith.constant 0 : index
    %c0_400 = arith.constant 0 : index
    %278 = vector.load %arg9[%c1_397, %c3_398, %c0_399, %c0_400] : memref<6x6x2x32xf32, #tpu.memory_space<vmem>>, vector<1x1x2x32xf32>
    %279 = vector.shape_cast %278 : vector<1x1x2x32xf32> to vector<2x32xf32>
    %c1_401 = arith.constant 1 : index
    %c4_402 = arith.constant 4 : index
    %c0_403 = arith.constant 0 : index
    %c0_404 = arith.constant 0 : index
    %280 = vector.load %arg9[%c1_401, %c4_402, %c0_403, %c0_404] : memref<6x6x2x32xf32, #tpu.memory_space<vmem>>, vector<1x1x2x32xf32>
    %281 = vector.shape_cast %280 : vector<1x1x2x32xf32> to vector<2x32xf32>
    %c1_405 = arith.constant 1 : index
    %c5_406 = arith.constant 5 : index
    %c0_407 = arith.constant 0 : index
    %c0_408 = arith.constant 0 : index
    %282 = vector.load %arg9[%c1_405, %c5_406, %c0_407, %c0_408] : memref<6x6x2x32xf32, #tpu.memory_space<vmem>>, vector<1x1x2x32xf32>
    %283 = vector.shape_cast %282 : vector<1x1x2x32xf32> to vector<2x32xf32>
    %c2_409 = arith.constant 2 : index
    %c0_410 = arith.constant 0 : index
    %c0_411 = arith.constant 0 : index
    %c0_412 = arith.constant 0 : index
    %284 = vector.load %arg9[%c2_409, %c0_410, %c0_411, %c0_412] : memref<6x6x2x32xf32, #tpu.memory_space<vmem>>, vector<1x1x2x32xf32>
    %285 = vector.shape_cast %284 : vector<1x1x2x32xf32> to vector<2x32xf32>
    %c2_413 = arith.constant 2 : index
    %c1_414 = arith.constant 1 : index
    %c0_415 = arith.constant 0 : index
    %c0_416 = arith.constant 0 : index
    %286 = vector.load %arg9[%c2_413, %c1_414, %c0_415, %c0_416] : memref<6x6x2x32xf32, #tpu.memory_space<vmem>>, vector<1x1x2x32xf32>
    %287 = vector.shape_cast %286 : vector<1x1x2x32xf32> to vector<2x32xf32>
    %c2_417 = arith.constant 2 : index
    %c2_418 = arith.constant 2 : index
    %c0_419 = arith.constant 0 : index
    %c0_420 = arith.constant 0 : index
    %288 = vector.load %arg9[%c2_417, %c2_418, %c0_419, %c0_420] : memref<6x6x2x32xf32, #tpu.memory_space<vmem>>, vector<1x1x2x32xf32>
    %289 = vector.shape_cast %288 : vector<1x1x2x32xf32> to vector<2x32xf32>
    %c2_421 = arith.constant 2 : index
    %c3_422 = arith.constant 3 : index
    %c0_423 = arith.constant 0 : index
    %c0_424 = arith.constant 0 : index
    %290 = vector.load %arg9[%c2_421, %c3_422, %c0_423, %c0_424] : memref<6x6x2x32xf32, #tpu.memory_space<vmem>>, vector<1x1x2x32xf32>
    %291 = vector.shape_cast %290 : vector<1x1x2x32xf32> to vector<2x32xf32>
    %c2_425 = arith.constant 2 : index
    %c4_426 = arith.constant 4 : index
    %c0_427 = arith.constant 0 : index
    %c0_428 = arith.constant 0 : index
    %292 = vector.load %arg9[%c2_425, %c4_426, %c0_427, %c0_428] : memref<6x6x2x32xf32, #tpu.memory_space<vmem>>, vector<1x1x2x32xf32>
    %293 = vector.shape_cast %292 : vector<1x1x2x32xf32> to vector<2x32xf32>
    %c2_429 = arith.constant 2 : index
    %c5_430 = arith.constant 5 : index
    %c0_431 = arith.constant 0 : index
    %c0_432 = arith.constant 0 : index
    %294 = vector.load %arg9[%c2_429, %c5_430, %c0_431, %c0_432] : memref<6x6x2x32xf32, #tpu.memory_space<vmem>>, vector<1x1x2x32xf32>
    %295 = vector.shape_cast %294 : vector<1x1x2x32xf32> to vector<2x32xf32>
    %c3_433 = arith.constant 3 : index
    %c0_434 = arith.constant 0 : index
    %c0_435 = arith.constant 0 : index
    %c0_436 = arith.constant 0 : index
    %296 = vector.load %arg9[%c3_433, %c0_434, %c0_435, %c0_436] : memref<6x6x2x32xf32, #tpu.memory_space<vmem>>, vector<1x1x2x32xf32>
    %297 = vector.shape_cast %296 : vector<1x1x2x32xf32> to vector<2x32xf32>
    %c3_437 = arith.constant 3 : index
    %c1_438 = arith.constant 1 : index
    %c0_439 = arith.constant 0 : index
    %c0_440 = arith.constant 0 : index
    %298 = vector.load %arg9[%c3_437, %c1_438, %c0_439, %c0_440] : memref<6x6x2x32xf32, #tpu.memory_space<vmem>>, vector<1x1x2x32xf32>
    %299 = vector.shape_cast %298 : vector<1x1x2x32xf32> to vector<2x32xf32>
    %c3_441 = arith.constant 3 : index
    %c2_442 = arith.constant 2 : index
    %c0_443 = arith.constant 0 : index
    %c0_444 = arith.constant 0 : index
    %300 = vector.load %arg9[%c3_441, %c2_442, %c0_443, %c0_444] : memref<6x6x2x32xf32, #tpu.memory_space<vmem>>, vector<1x1x2x32xf32>
    %301 = vector.shape_cast %300 : vector<1x1x2x32xf32> to vector<2x32xf32>
    %c3_445 = arith.constant 3 : index
    %c3_446 = arith.constant 3 : index
    %c0_447 = arith.constant 0 : index
    %c0_448 = arith.constant 0 : index
    %302 = vector.load %arg9[%c3_445, %c3_446, %c0_447, %c0_448] : memref<6x6x2x32xf32, #tpu.memory_space<vmem>>, vector<1x1x2x32xf32>
    %303 = vector.shape_cast %302 : vector<1x1x2x32xf32> to vector<2x32xf32>
    %c3_449 = arith.constant 3 : index
    %c4_450 = arith.constant 4 : index
    %c0_451 = arith.constant 0 : index
    %c0_452 = arith.constant 0 : index
    %304 = vector.load %arg9[%c3_449, %c4_450, %c0_451, %c0_452] : memref<6x6x2x32xf32, #tpu.memory_space<vmem>>, vector<1x1x2x32xf32>
    %305 = vector.shape_cast %304 : vector<1x1x2x32xf32> to vector<2x32xf32>
    %c3_453 = arith.constant 3 : index
    %c5_454 = arith.constant 5 : index
    %c0_455 = arith.constant 0 : index
    %c0_456 = arith.constant 0 : index
    %306 = vector.load %arg9[%c3_453, %c5_454, %c0_455, %c0_456] : memref<6x6x2x32xf32, #tpu.memory_space<vmem>>, vector<1x1x2x32xf32>
    %307 = vector.shape_cast %306 : vector<1x1x2x32xf32> to vector<2x32xf32>
    %c4_457 = arith.constant 4 : index
    %c0_458 = arith.constant 0 : index
    %c0_459 = arith.constant 0 : index
    %c0_460 = arith.constant 0 : index
    %308 = vector.load %arg9[%c4_457, %c0_458, %c0_459, %c0_460] : memref<6x6x2x32xf32, #tpu.memory_space<vmem>>, vector<1x1x2x32xf32>
    %309 = vector.shape_cast %308 : vector<1x1x2x32xf32> to vector<2x32xf32>
    %c4_461 = arith.constant 4 : index
    %c1_462 = arith.constant 1 : index
    %c0_463 = arith.constant 0 : index
    %c0_464 = arith.constant 0 : index
    %310 = vector.load %arg9[%c4_461, %c1_462, %c0_463, %c0_464] : memref<6x6x2x32xf32, #tpu.memory_space<vmem>>, vector<1x1x2x32xf32>
    %311 = vector.shape_cast %310 : vector<1x1x2x32xf32> to vector<2x32xf32>
    %c4_465 = arith.constant 4 : index
    %c2_466 = arith.constant 2 : index
    %c0_467 = arith.constant 0 : index
    %c0_468 = arith.constant 0 : index
    %312 = vector.load %arg9[%c4_465, %c2_466, %c0_467, %c0_468] : memref<6x6x2x32xf32, #tpu.memory_space<vmem>>, vector<1x1x2x32xf32>
    %313 = vector.shape_cast %312 : vector<1x1x2x32xf32> to vector<2x32xf32>
    %c4_469 = arith.constant 4 : index
    %c3_470 = arith.constant 3 : index
    %c0_471 = arith.constant 0 : index
    %c0_472 = arith.constant 0 : index
    %314 = vector.load %arg9[%c4_469, %c3_470, %c0_471, %c0_472] : memref<6x6x2x32xf32, #tpu.memory_space<vmem>>, vector<1x1x2x32xf32>
    %315 = vector.shape_cast %314 : vector<1x1x2x32xf32> to vector<2x32xf32>
    %c4_473 = arith.constant 4 : index
    %c4_474 = arith.constant 4 : index
    %c0_475 = arith.constant 0 : index
    %c0_476 = arith.constant 0 : index
    %316 = vector.load %arg9[%c4_473, %c4_474, %c0_475, %c0_476] : memref<6x6x2x32xf32, #tpu.memory_space<vmem>>, vector<1x1x2x32xf32>
    %317 = vector.shape_cast %316 : vector<1x1x2x32xf32> to vector<2x32xf32>
    %c4_477 = arith.constant 4 : index
    %c5_478 = arith.constant 5 : index
    %c0_479 = arith.constant 0 : index
    %c0_480 = arith.constant 0 : index
    %318 = vector.load %arg9[%c4_477, %c5_478, %c0_479, %c0_480] : memref<6x6x2x32xf32, #tpu.memory_space<vmem>>, vector<1x1x2x32xf32>
    %319 = vector.shape_cast %318 : vector<1x1x2x32xf32> to vector<2x32xf32>
    %c5_481 = arith.constant 5 : index
    %c0_482 = arith.constant 0 : index
    %c0_483 = arith.constant 0 : index
    %c0_484 = arith.constant 0 : index
    %320 = vector.load %arg9[%c5_481, %c0_482, %c0_483, %c0_484] : memref<6x6x2x32xf32, #tpu.memory_space<vmem>>, vector<1x1x2x32xf32>
    %321 = vector.shape_cast %320 : vector<1x1x2x32xf32> to vector<2x32xf32>
    %c5_485 = arith.constant 5 : index
    %c1_486 = arith.constant 1 : index
    %c0_487 = arith.constant 0 : index
    %c0_488 = arith.constant 0 : index
    %322 = vector.load %arg9[%c5_485, %c1_486, %c0_487, %c0_488] : memref<6x6x2x32xf32, #tpu.memory_space<vmem>>, vector<1x1x2x32xf32>
    %323 = vector.shape_cast %322 : vector<1x1x2x32xf32> to vector<2x32xf32>
    %c5_489 = arith.constant 5 : index
    %c2_490 = arith.constant 2 : index
    %c0_491 = arith.constant 0 : index
    %c0_492 = arith.constant 0 : index
    %324 = vector.load %arg9[%c5_489, %c2_490, %c0_491, %c0_492] : memref<6x6x2x32xf32, #tpu.memory_space<vmem>>, vector<1x1x2x32xf32>
    %325 = vector.shape_cast %324 : vector<1x1x2x32xf32> to vector<2x32xf32>
    %c5_493 = arith.constant 5 : index
    %c3_494 = arith.constant 3 : index
    %c0_495 = arith.constant 0 : index
    %c0_496 = arith.constant 0 : index
    %326 = vector.load %arg9[%c5_493, %c3_494, %c0_495, %c0_496] : memref<6x6x2x32xf32, #tpu.memory_space<vmem>>, vector<1x1x2x32xf32>
    %327 = vector.shape_cast %326 : vector<1x1x2x32xf32> to vector<2x32xf32>
    %c5_497 = arith.constant 5 : index
    %c4_498 = arith.constant 4 : index
    %c0_499 = arith.constant 0 : index
    %c0_500 = arith.constant 0 : index
    %328 = vector.load %arg9[%c5_497, %c4_498, %c0_499, %c0_500] : memref<6x6x2x32xf32, #tpu.memory_space<vmem>>, vector<1x1x2x32xf32>
    %329 = vector.shape_cast %328 : vector<1x1x2x32xf32> to vector<2x32xf32>
    %c5_501 = arith.constant 5 : index
    %c5_502 = arith.constant 5 : index
    %c0_503 = arith.constant 0 : index
    %c0_504 = arith.constant 0 : index
    %330 = vector.load %arg9[%c5_501, %c5_502, %c0_503, %c0_504] : memref<6x6x2x32xf32, #tpu.memory_space<vmem>>, vector<1x1x2x32xf32>
    %331 = vector.shape_cast %330 : vector<1x1x2x32xf32> to vector<2x32xf32>
    %332 = tpu.concatenate %261, %263, %265, %273, %275, %277, %285, %287, %289 in 1 : vector<2x32xf32>, vector<2x32xf32>, vector<2x32xf32>, vector<2x32xf32>, vector<2x32xf32>, vector<2x32xf32>, vector<2x32xf32>, vector<2x32xf32>, vector<2x32xf32> -> vector<2x288xf32>
    %c0_505 = arith.constant 0 : index
    %c0_506 = arith.constant 0 : index
    %333 = vector.load %arg10[%c0_505, %c0_506] : memref<32x288xf32, #tpu.memory_space<vmem>>, vector<2x288xf32>
    tpu.vector_store %arg10[%c0_505, %c0_506], %332 {strides = array<i32>} : memref<32x288xf32, #tpu.memory_space<vmem>>, vector<2x288xf32>,
    %334 = tpu.concatenate %263, %265, %267, %275, %277, %279, %287, %289, %291 in 1 : vector<2x32xf32>, vector<2x32xf32>, vector<2x32xf32>, vector<2x32xf32>, vector<2x32xf32>, vector<2x32xf32>, vector<2x32xf32>, vector<2x32xf32>, vector<2x32xf32> -> vector<2x288xf32>
    %c2_507 = arith.constant 2 : index
    %c0_508 = arith.constant 0 : index
    %335 = vector.load %arg10[%c2_507, %c0_508] : memref<32x288xf32, #tpu.memory_space<vmem>>, vector<2x288xf32>
    tpu.vector_store %arg10[%c2_507, %c0_508], %334 {strides = array<i32>} : memref<32x288xf32, #tpu.memory_space<vmem>>, vector<2x288xf32>,
    %336 = tpu.concatenate %265, %267, %269, %277, %279, %281, %289, %291, %293 in 1 : vector<2x32xf32>, vector<2x32xf32>, vector<2x32xf32>, vector<2x32xf32>, vector<2x32xf32>, vector<2x32xf32>, vector<2x32xf32>, vector<2x32xf32>, vector<2x32xf32> -> vector<2x288xf32>
    %c4_509 = arith.constant 4 : index
    %c0_510 = arith.constant 0 : index
    %337 = vector.load %arg10[%c4_509, %c0_510] : memref<32x288xf32, #tpu.memory_space<vmem>>, vector<2x288xf32>
    tpu.vector_store %arg10[%c4_509, %c0_510], %336 {strides = array<i32>} : memref<32x288xf32, #tpu.memory_space<vmem>>, vector<2x288xf32>,
    %338 = tpu.concatenate %267, %269, %271, %279, %281, %283, %291, %293, %295 in 1 : vector<2x32xf32>, vector<2x32xf32>, vector<2x32xf32>, vector<2x32xf32>, vector<2x32xf32>, vector<2x32xf32>, vector<2x32xf32>, vector<2x32xf32>, vector<2x32xf32> -> vector<2x288xf32>
    %c6_511 = arith.constant 6 : index
    %c0_512 = arith.constant 0 : index
    %339 = vector.load %arg10[%c6_511, %c0_512] : memref<32x288xf32, #tpu.memory_space<vmem>>, vector<2x288xf32>
    tpu.vector_store %arg10[%c6_511, %c0_512], %338 {strides = array<i32>} : memref<32x288xf32, #tpu.memory_space<vmem>>, vector<2x288xf32>,
    %340 = tpu.concatenate %273, %275, %277, %285, %287, %289, %297, %299, %301 in 1 : vector<2x32xf32>, vector<2x32xf32>, vector<2x32xf32>, vector<2x32xf32>, vector<2x32xf32>, vector<2x32xf32>, vector<2x32xf32>, vector<2x32xf32>, vector<2x32xf32> -> vector<2x288xf32>
    %c8_513 = arith.constant 8 : index
    %c0_514 = arith.constant 0 : index
    %341 = vector.load %arg10[%c8_513, %c0_514] : memref<32x288xf32, #tpu.memory_space<vmem>>, vector<2x288xf32>
    tpu.vector_store %arg10[%c8_513, %c0_514], %340 {strides = array<i32>} : memref<32x288xf32, #tpu.memory_space<vmem>>, vector<2x288xf32>,
    %342 = tpu.concatenate %275, %277, %279, %287, %289, %291, %299, %301, %303 in 1 : vector<2x32xf32>, vector<2x32xf32>, vector<2x32xf32>, vector<2x32xf32>, vector<2x32xf32>, vector<2x32xf32>, vector<2x32xf32>, vector<2x32xf32>, vector<2x32xf32> -> vector<2x288xf32>
    %c10_515 = arith.constant 10 : index
    %c0_516 = arith.constant 0 : index
    %343 = vector.load %arg10[%c10_515, %c0_516] : memref<32x288xf32, #tpu.memory_space<vmem>>, vector<2x288xf32>
    tpu.vector_store %arg10[%c10_515, %c0_516], %342 {strides = array<i32>} : memref<32x288xf32, #tpu.memory_space<vmem>>, vector<2x288xf32>,
    %344 = tpu.concatenate %277, %279, %281, %289, %291, %293, %301, %303, %305 in 1 : vector<2x32xf32>, vector<2x32xf32>, vector<2x32xf32>, vector<2x32xf32>, vector<2x32xf32>, vector<2x32xf32>, vector<2x32xf32>, vector<2x32xf32>, vector<2x32xf32> -> vector<2x288xf32>
    %c12_517 = arith.constant 12 : index
    %c0_518 = arith.constant 0 : index
    %345 = vector.load %arg10[%c12_517, %c0_518] : memref<32x288xf32, #tpu.memory_space<vmem>>, vector<2x288xf32>
    tpu.vector_store %arg10[%c12_517, %c0_518], %344 {strides = array<i32>} : memref<32x288xf32, #tpu.memory_space<vmem>>, vector<2x288xf32>,
    %346 = tpu.concatenate %279, %281, %283, %291, %293, %295, %303, %305, %307 in 1 : vector<2x32xf32>, vector<2x32xf32>, vector<2x32xf32>, vector<2x32xf32>, vector<2x32xf32>, vector<2x32xf32>, vector<2x32xf32>, vector<2x32xf32>, vector<2x32xf32> -> vector<2x288xf32>
    %c14_519 = arith.constant 14 : index
    %c0_520 = arith.constant 0 : index
    %347 = vector.load %arg10[%c14_519, %c0_520] : memref<32x288xf32, #tpu.memory_space<vmem>>, vector<2x288xf32>
    tpu.vector_store %arg10[%c14_519, %c0_520], %346 {strides = array<i32>} : memref<32x288xf32, #tpu.memory_space<vmem>>, vector<2x288xf32>,
    %348 = tpu.concatenate %285, %287, %289, %297, %299, %301, %309, %311, %313 in 1 : vector<2x32xf32>, vector<2x32xf32>, vector<2x32xf32>, vector<2x32xf32>, vector<2x32xf32>, vector<2x32xf32>, vector<2x32xf32>, vector<2x32xf32>, vector<2x32xf32> -> vector<2x288xf32>
    %c16_521 = arith.constant 16 : index
    %c0_522 = arith.constant 0 : index
    %349 = vector.load %arg10[%c16_521, %c0_522] : memref<32x288xf32, #tpu.memory_space<vmem>>, vector<2x288xf32>
    tpu.vector_store %arg10[%c16_521, %c0_522], %348 {strides = array<i32>} : memref<32x288xf32, #tpu.memory_space<vmem>>, vector<2x288xf32>,
    %350 = tpu.concatenate %287, %289, %291, %299, %301, %303, %311, %313, %315 in 1 : vector<2x32xf32>, vector<2x32xf32>, vector<2x32xf32>, vector<2x32xf32>, vector<2x32xf32>, vector<2x32xf32>, vector<2x32xf32>, vector<2x32xf32>, vector<2x32xf32> -> vector<2x288xf32>
    %c18_523 = arith.constant 18 : index
    %c0_524 = arith.constant 0 : index
    %351 = vector.load %arg10[%c18_523, %c0_524] : memref<32x288xf32, #tpu.memory_space<vmem>>, vector<2x288xf32>
    tpu.vector_store %arg10[%c18_523, %c0_524], %350 {strides = array<i32>} : memref<32x288xf32, #tpu.memory_space<vmem>>, vector<2x288xf32>,
    %352 = tpu.concatenate %289, %291, %293, %301, %303, %305, %313, %315, %317 in 1 : vector<2x32xf32>, vector<2x32xf32>, vector<2x32xf32>, vector<2x32xf32>, vector<2x32xf32>, vector<2x32xf32>, vector<2x32xf32>, vector<2x32xf32>, vector<2x32xf32> -> vector<2x288xf32>
    %c20_525 = arith.constant 20 : index
    %c0_526 = arith.constant 0 : index
    %353 = vector.load %arg10[%c20_525, %c0_526] : memref<32x288xf32, #tpu.memory_space<vmem>>, vector<2x288xf32>
    tpu.vector_store %arg10[%c20_525, %c0_526], %352 {strides = array<i32>} : memref<32x288xf32, #tpu.memory_space<vmem>>, vector<2x288xf32>,
    %354 = tpu.concatenate %291, %293, %295, %303, %305, %307, %315, %317, %319 in 1 : vector<2x32xf32>, vector<2x32xf32>, vector<2x32xf32>, vector<2x32xf32>, vector<2x32xf32>, vector<2x32xf32>, vector<2x32xf32>, vector<2x32xf32>, vector<2x32xf32> -> vector<2x288xf32>
    %c22_527 = arith.constant 22 : index
    %c0_528 = arith.constant 0 : index
    %355 = vector.load %arg10[%c22_527, %c0_528] : memref<32x288xf32, #tpu.memory_space<vmem>>, vector<2x288xf32>
    tpu.vector_store %arg10[%c22_527, %c0_528], %354 {strides = array<i32>} : memref<32x288xf32, #tpu.memory_space<vmem>>, vector<2x288xf32>,
    %356 = tpu.concatenate %297, %299, %301, %309, %311, %313, %321, %323, %325 in 1 : vector<2x32xf32>, vector<2x32xf32>, vector<2x32xf32>, vector<2x32xf32>, vector<2x32xf32>, vector<2x32xf32>, vector<2x32xf32>, vector<2x32xf32>, vector<2x32xf32> -> vector<2x288xf32>
    %c24_529 = arith.constant 24 : index
    %c0_530 = arith.constant 0 : index
    %357 = vector.load %arg10[%c24_529, %c0_530] : memref<32x288xf32, #tpu.memory_space<vmem>>, vector<2x288xf32>
    tpu.vector_store %arg10[%c24_529, %c0_530], %356 {strides = array<i32>} : memref<32x288xf32, #tpu.memory_space<vmem>>, vector<2x288xf32>,
    %358 = tpu.concatenate %299, %301, %303, %311, %313, %315, %323, %325, %327 in 1 : vector<2x32xf32>, vector<2x32xf32>, vector<2x32xf32>, vector<2x32xf32>, vector<2x32xf32>, vector<2x32xf32>, vector<2x32xf32>, vector<2x32xf32>, vector<2x32xf32> -> vector<2x288xf32>
    %c26_531 = arith.constant 26 : index
    %c0_532 = arith.constant 0 : index
    %359 = vector.load %arg10[%c26_531, %c0_532] : memref<32x288xf32, #tpu.memory_space<vmem>>, vector<2x288xf32>
    tpu.vector_store %arg10[%c26_531, %c0_532], %358 {strides = array<i32>} : memref<32x288xf32, #tpu.memory_space<vmem>>, vector<2x288xf32>,
    %360 = tpu.concatenate %301, %303, %305, %313, %315, %317, %325, %327, %329 in 1 : vector<2x32xf32>, vector<2x32xf32>, vector<2x32xf32>, vector<2x32xf32>, vector<2x32xf32>, vector<2x32xf32>, vector<2x32xf32>, vector<2x32xf32>, vector<2x32xf32> -> vector<2x288xf32>
    %c28_533 = arith.constant 28 : index
    %c0_534 = arith.constant 0 : index
    %361 = vector.load %arg10[%c28_533, %c0_534] : memref<32x288xf32, #tpu.memory_space<vmem>>, vector<2x288xf32>
    tpu.vector_store %arg10[%c28_533, %c0_534], %360 {strides = array<i32>} : memref<32x288xf32, #tpu.memory_space<vmem>>, vector<2x288xf32>,
    %362 = tpu.concatenate %303, %305, %307, %315, %317, %319, %327, %329, %331 in 1 : vector<2x32xf32>, vector<2x32xf32>, vector<2x32xf32>, vector<2x32xf32>, vector<2x32xf32>, vector<2x32xf32>, vector<2x32xf32>, vector<2x32xf32>, vector<2x32xf32> -> vector<2x288xf32>
    %c30_535 = arith.constant 30 : index
    %c0_536 = arith.constant 0 : index
    %363 = vector.load %arg10[%c30_535, %c0_536] : memref<32x288xf32, #tpu.memory_space<vmem>>, vector<2x288xf32>
    tpu.vector_store %arg10[%c30_535, %c0_536], %362 {strides = array<i32>} : memref<32x288xf32, #tpu.memory_space<vmem>>, vector<2x288xf32>,
    %c0_537 = arith.constant 0 : index
    %c0_538 = arith.constant 0 : index
    %364 = vector.load %arg10[%c0_537, %c0_538] : memref<32x288xf32, #tpu.memory_space<vmem>>, vector<32x288xf32>
    %365 = arith.truncf %364 : vector<32x288xf32> to vector<32x288xbf16>
    %c0_539 = arith.constant 0 : index
    %c0_540 = arith.constant 0 : index
    %366 = vector.load %arg4[%c0_539, %c0_540] : memref<288x32xbf16, #tpu.memory_space<vmem>>, vector<288x32xbf16>
    %cst_541 = arith.constant dense<0.000000e+00> : vector<32x32xf32>
    %367 = tpu.matmul %365, %366, %cst_541 {dimension_numbers = #tpu.dot_dimension_numbers<[1], [0], [0], [1], [0, 0, 1, 1], [], []>} : vector<32x288xbf16>, vector<288x32xbf16>, vector<32x32xf32> -> vector<32x32xf32>
    %368 = vector.extract_strided_slice %0 {offsets = [1, 0], sizes = [1, 32], strides = [1, 1]} : vector<8x128xf32> to vector<1x32xf32>
    %369 = vector.broadcast %368 : vector<1x32xf32> to vector<32x32xf32>
    %370 = arith.addf %367, %369 : vector<32x32xf32>
    %cst_542 = arith.constant 0.000000e+00 : f32
    %371 = vector.broadcast %cst_542 : f32 to vector<32x32xf32>
    %372 = arith.maximumf %370, %371 : vector<32x32xf32>
    %373 = arith.truncf %372 : vector<32x32xf32> to vector<32x32xbf16>
    %cst_543 = arith.constant 0.000000e+00 : f32
    %374 = vector.broadcast %cst_543 : f32 to vector<2x128xf32>
    %375 = vector.extract_strided_slice %373 {offsets = [0, 0], sizes = [2, 32], strides = [1, 1]} : vector<32x32xbf16> to vector<2x32xbf16>
    %c0_544 = arith.constant 0 : index
    %c0_545 = arith.constant 0 : index
    %376 = vector.load %arg5[%c0_544, %c0_545] : memref<512x128xbf16, #tpu.memory_space<vmem>>, vector<32x128xbf16>
    %cst_546 = arith.constant dense<0.000000e+00> : vector<2x128xf32>
    %377 = tpu.matmul %375, %376, %cst_546 {dimension_numbers = #tpu.dot_dimension_numbers<[1], [0], [0], [1], [0, 0, 1, 1], [], []>} : vector<2x32xbf16>, vector<32x128xbf16>, vector<2x128xf32> -> vector<2x128xf32>
    %378 = arith.addf %374, %377 : vector<2x128xf32>
    %379 = vector.extract_strided_slice %373 {offsets = [2, 0], sizes = [2, 32], strides = [1, 1]} : vector<32x32xbf16> to vector<2x32xbf16>
    %c32 = arith.constant 32 : index
    %c0_547 = arith.constant 0 : index
    %380 = vector.load %arg5[%c32, %c0_547] : memref<512x128xbf16, #tpu.memory_space<vmem>>, vector<32x128xbf16>
    %cst_548 = arith.constant dense<0.000000e+00> : vector<2x128xf32>
    %381 = tpu.matmul %379, %380, %cst_548 {dimension_numbers = #tpu.dot_dimension_numbers<[1], [0], [0], [1], [0, 0, 1, 1], [], []>} : vector<2x32xbf16>, vector<32x128xbf16>, vector<2x128xf32> -> vector<2x128xf32>
    %382 = arith.addf %378, %381 : vector<2x128xf32>
    %383 = vector.extract_strided_slice %373 {offsets = [4, 0], sizes = [2, 32], strides = [1, 1]} : vector<32x32xbf16> to vector<2x32xbf16>
    %c64 = arith.constant 64 : index
    %c0_549 = arith.constant 0 : index
    %384 = vector.load %arg5[%c64, %c0_549] : memref<512x128xbf16, #tpu.memory_space<vmem>>, vector<32x128xbf16>
    %cst_550 = arith.constant dense<0.000000e+00> : vector<2x128xf32>
    %385 = tpu.matmul %383, %384, %cst_550 {dimension_numbers = #tpu.dot_dimension_numbers<[1], [0], [0], [1], [0, 0, 1, 1], [], []>} : vector<2x32xbf16>, vector<32x128xbf16>, vector<2x128xf32> -> vector<2x128xf32>
    %386 = arith.addf %382, %385 : vector<2x128xf32>
    %387 = vector.extract_strided_slice %373 {offsets = [6, 0], sizes = [2, 32], strides = [1, 1]} : vector<32x32xbf16> to vector<2x32xbf16>
    %c96 = arith.constant 96 : index
    %c0_551 = arith.constant 0 : index
    %388 = vector.load %arg5[%c96, %c0_551] : memref<512x128xbf16, #tpu.memory_space<vmem>>, vector<32x128xbf16>
    %cst_552 = arith.constant dense<0.000000e+00> : vector<2x128xf32>
    %389 = tpu.matmul %387, %388, %cst_552 {dimension_numbers = #tpu.dot_dimension_numbers<[1], [0], [0], [1], [0, 0, 1, 1], [], []>} : vector<2x32xbf16>, vector<32x128xbf16>, vector<2x128xf32> -> vector<2x128xf32>
    %390 = arith.addf %386, %389 : vector<2x128xf32>
    %391 = vector.extract_strided_slice %373 {offsets = [8, 0], sizes = [2, 32], strides = [1, 1]} : vector<32x32xbf16> to vector<2x32xbf16>
    %c128 = arith.constant 128 : index
    %c0_553 = arith.constant 0 : index
    %392 = vector.load %arg5[%c128, %c0_553] : memref<512x128xbf16, #tpu.memory_space<vmem>>, vector<32x128xbf16>
    %cst_554 = arith.constant dense<0.000000e+00> : vector<2x128xf32>
    %393 = tpu.matmul %391, %392, %cst_554 {dimension_numbers = #tpu.dot_dimension_numbers<[1], [0], [0], [1], [0, 0, 1, 1], [], []>} : vector<2x32xbf16>, vector<32x128xbf16>, vector<2x128xf32> -> vector<2x128xf32>
    %394 = arith.addf %390, %393 : vector<2x128xf32>
    %395 = vector.extract_strided_slice %373 {offsets = [10, 0], sizes = [2, 32], strides = [1, 1]} : vector<32x32xbf16> to vector<2x32xbf16>
    %c160 = arith.constant 160 : index
    %c0_555 = arith.constant 0 : index
    %396 = vector.load %arg5[%c160, %c0_555] : memref<512x128xbf16, #tpu.memory_space<vmem>>, vector<32x128xbf16>
    %cst_556 = arith.constant dense<0.000000e+00> : vector<2x128xf32>
    %397 = tpu.matmul %395, %396, %cst_556 {dimension_numbers = #tpu.dot_dimension_numbers<[1], [0], [0], [1], [0, 0, 1, 1], [], []>} : vector<2x32xbf16>, vector<32x128xbf16>, vector<2x128xf32> -> vector<2x128xf32>
    %398 = arith.addf %394, %397 : vector<2x128xf32>
    %399 = vector.extract_strided_slice %373 {offsets = [12, 0], sizes = [2, 32], strides = [1, 1]} : vector<32x32xbf16> to vector<2x32xbf16>
    %c192 = arith.constant 192 : index
    %c0_557 = arith.constant 0 : index
    %400 = vector.load %arg5[%c192, %c0_557] : memref<512x128xbf16, #tpu.memory_space<vmem>>, vector<32x128xbf16>
    %cst_558 = arith.constant dense<0.000000e+00> : vector<2x128xf32>
    %401 = tpu.matmul %399, %400, %cst_558 {dimension_numbers = #tpu.dot_dimension_numbers<[1], [0], [0], [1], [0, 0, 1, 1], [], []>} : vector<2x32xbf16>, vector<32x128xbf16>, vector<2x128xf32> -> vector<2x128xf32>
    %402 = arith.addf %398, %401 : vector<2x128xf32>
    %403 = vector.extract_strided_slice %373 {offsets = [14, 0], sizes = [2, 32], strides = [1, 1]} : vector<32x32xbf16> to vector<2x32xbf16>
    %c224 = arith.constant 224 : index
    %c0_559 = arith.constant 0 : index
    %404 = vector.load %arg5[%c224, %c0_559] : memref<512x128xbf16, #tpu.memory_space<vmem>>, vector<32x128xbf16>
    %cst_560 = arith.constant dense<0.000000e+00> : vector<2x128xf32>
    %405 = tpu.matmul %403, %404, %cst_560 {dimension_numbers = #tpu.dot_dimension_numbers<[1], [0], [0], [1], [0, 0, 1, 1], [], []>} : vector<2x32xbf16>, vector<32x128xbf16>, vector<2x128xf32> -> vector<2x128xf32>
    %406 = arith.addf %402, %405 : vector<2x128xf32>
    %407 = vector.extract_strided_slice %373 {offsets = [16, 0], sizes = [2, 32], strides = [1, 1]} : vector<32x32xbf16> to vector<2x32xbf16>
    %c256 = arith.constant 256 : index
    %c0_561 = arith.constant 0 : index
    %408 = vector.load %arg5[%c256, %c0_561] : memref<512x128xbf16, #tpu.memory_space<vmem>>, vector<32x128xbf16>
    %cst_562 = arith.constant dense<0.000000e+00> : vector<2x128xf32>
    %409 = tpu.matmul %407, %408, %cst_562 {dimension_numbers = #tpu.dot_dimension_numbers<[1], [0], [0], [1], [0, 0, 1, 1], [], []>} : vector<2x32xbf16>, vector<32x128xbf16>, vector<2x128xf32> -> vector<2x128xf32>
    %410 = arith.addf %406, %409 : vector<2x128xf32>
    %411 = vector.extract_strided_slice %373 {offsets = [18, 0], sizes = [2, 32], strides = [1, 1]} : vector<32x32xbf16> to vector<2x32xbf16>
    %c288 = arith.constant 288 : index
    %c0_563 = arith.constant 0 : index
    %412 = vector.load %arg5[%c288, %c0_563] : memref<512x128xbf16, #tpu.memory_space<vmem>>, vector<32x128xbf16>
    %cst_564 = arith.constant dense<0.000000e+00> : vector<2x128xf32>
    %413 = tpu.matmul %411, %412, %cst_564 {dimension_numbers = #tpu.dot_dimension_numbers<[1], [0], [0], [1], [0, 0, 1, 1], [], []>} : vector<2x32xbf16>, vector<32x128xbf16>, vector<2x128xf32> -> vector<2x128xf32>
    %414 = arith.addf %410, %413 : vector<2x128xf32>
    %415 = vector.extract_strided_slice %373 {offsets = [20, 0], sizes = [2, 32], strides = [1, 1]} : vector<32x32xbf16> to vector<2x32xbf16>
    %c320 = arith.constant 320 : index
    %c0_565 = arith.constant 0 : index
    %416 = vector.load %arg5[%c320, %c0_565] : memref<512x128xbf16, #tpu.memory_space<vmem>>, vector<32x128xbf16>
    %cst_566 = arith.constant dense<0.000000e+00> : vector<2x128xf32>
    %417 = tpu.matmul %415, %416, %cst_566 {dimension_numbers = #tpu.dot_dimension_numbers<[1], [0], [0], [1], [0, 0, 1, 1], [], []>} : vector<2x32xbf16>, vector<32x128xbf16>, vector<2x128xf32> -> vector<2x128xf32>
    %418 = arith.addf %414, %417 : vector<2x128xf32>
    %419 = vector.extract_strided_slice %373 {offsets = [22, 0], sizes = [2, 32], strides = [1, 1]} : vector<32x32xbf16> to vector<2x32xbf16>
    %c352 = arith.constant 352 : index
    %c0_567 = arith.constant 0 : index
    %420 = vector.load %arg5[%c352, %c0_567] : memref<512x128xbf16, #tpu.memory_space<vmem>>, vector<32x128xbf16>
    %cst_568 = arith.constant dense<0.000000e+00> : vector<2x128xf32>
    %421 = tpu.matmul %419, %420, %cst_568 {dimension_numbers = #tpu.dot_dimension_numbers<[1], [0], [0], [1], [0, 0, 1, 1], [], []>} : vector<2x32xbf16>, vector<32x128xbf16>, vector<2x128xf32> -> vector<2x128xf32>
    %422 = arith.addf %418, %421 : vector<2x128xf32>
    %423 = vector.extract_strided_slice %373 {offsets = [24, 0], sizes = [2, 32], strides = [1, 1]} : vector<32x32xbf16> to vector<2x32xbf16>
    %c384 = arith.constant 384 : index
    %c0_569 = arith.constant 0 : index
    %424 = vector.load %arg5[%c384, %c0_569] : memref<512x128xbf16, #tpu.memory_space<vmem>>, vector<32x128xbf16>
    %cst_570 = arith.constant dense<0.000000e+00> : vector<2x128xf32>
    %425 = tpu.matmul %423, %424, %cst_570 {dimension_numbers = #tpu.dot_dimension_numbers<[1], [0], [0], [1], [0, 0, 1, 1], [], []>} : vector<2x32xbf16>, vector<32x128xbf16>, vector<2x128xf32> -> vector<2x128xf32>
    %426 = arith.addf %422, %425 : vector<2x128xf32>
    %427 = vector.extract_strided_slice %373 {offsets = [26, 0], sizes = [2, 32], strides = [1, 1]} : vector<32x32xbf16> to vector<2x32xbf16>
    %c416 = arith.constant 416 : index
    %c0_571 = arith.constant 0 : index
    %428 = vector.load %arg5[%c416, %c0_571] : memref<512x128xbf16, #tpu.memory_space<vmem>>, vector<32x128xbf16>
    %cst_572 = arith.constant dense<0.000000e+00> : vector<2x128xf32>
    %429 = tpu.matmul %427, %428, %cst_572 {dimension_numbers = #tpu.dot_dimension_numbers<[1], [0], [0], [1], [0, 0, 1, 1], [], []>} : vector<2x32xbf16>, vector<32x128xbf16>, vector<2x128xf32> -> vector<2x128xf32>
    %430 = arith.addf %426, %429 : vector<2x128xf32>
    %431 = vector.extract_strided_slice %373 {offsets = [28, 0], sizes = [2, 32], strides = [1, 1]} : vector<32x32xbf16> to vector<2x32xbf16>
    %c448 = arith.constant 448 : index
    %c0_573 = arith.constant 0 : index
    %432 = vector.load %arg5[%c448, %c0_573] : memref<512x128xbf16, #tpu.memory_space<vmem>>, vector<32x128xbf16>
    %cst_574 = arith.constant dense<0.000000e+00> : vector<2x128xf32>
    %433 = tpu.matmul %431, %432, %cst_574 {dimension_numbers = #tpu.dot_dimension_numbers<[1], [0], [0], [1], [0, 0, 1, 1], [], []>} : vector<2x32xbf16>, vector<32x128xbf16>, vector<2x128xf32> -> vector<2x128xf32>
    %434 = arith.addf %430, %433 : vector<2x128xf32>
    %435 = vector.extract_strided_slice %373 {offsets = [30, 0], sizes = [2, 32], strides = [1, 1]} : vector<32x32xbf16> to vector<2x32xbf16>
    %c480 = arith.constant 480 : index
    %c0_575 = arith.constant 0 : index
    %436 = vector.load %arg5[%c480, %c0_575] : memref<512x128xbf16, #tpu.memory_space<vmem>>, vector<32x128xbf16>
    %cst_576 = arith.constant dense<0.000000e+00> : vector<2x128xf32>
    %437 = tpu.matmul %435, %436, %cst_576 {dimension_numbers = #tpu.dot_dimension_numbers<[1], [0], [0], [1], [0, 0, 1, 1], [], []>} : vector<2x32xbf16>, vector<32x128xbf16>, vector<2x128xf32> -> vector<2x128xf32>
    %438 = arith.addf %434, %437 : vector<2x128xf32>
    %c0_577 = arith.constant 0 : index
    %c0_578 = arith.constant 0 : index
    %439 = vector.load %arg2[%c0_577, %c0_578] : memref<2x1xf32, #tpu.memory_space<vmem>>, vector<2x1xf32>
    %440 = vector.extract_strided_slice %0 {offsets = [3, 0], sizes = [1, 128], strides = [1, 1]} : vector<8x128xf32> to vector<1x128xf32>
    %441 = vector.broadcast %439 : vector<2x1xf32> to vector<2x128xf32>
    %442 = vector.broadcast %440 : vector<1x128xf32> to vector<2x128xf32>
    %443 = arith.mulf %441, %442 : vector<2x128xf32>
    %444 = arith.addf %438, %443 : vector<2x128xf32>
    %445 = vector.extract_strided_slice %0 {offsets = [2, 0], sizes = [1, 128], strides = [1, 1]} : vector<8x128xf32> to vector<1x128xf32>
    %446 = vector.broadcast %445 : vector<1x128xf32> to vector<2x128xf32>
    %447 = arith.addf %444, %446 : vector<2x128xf32>
    %cst_579 = arith.constant 0.000000e+00 : f32
    %448 = vector.broadcast %cst_579 : f32 to vector<2x128xf32>
    %449 = arith.maximumf %447, %448 : vector<2x128xf32>
    %450 = arith.truncf %449 : vector<2x128xf32> to vector<2x128xbf16>
    %c0_580 = arith.constant 0 : index
    %c0_581 = arith.constant 0 : index
    %451 = vector.load %arg6[%c0_580, %c0_581] : memref<128x128xbf16, #tpu.memory_space<vmem>>, vector<128x128xbf16>
    %cst_582 = arith.constant dense<0.000000e+00> : vector<2x128xf32>
    %452 = tpu.matmul %450, %451, %cst_582 {dimension_numbers = #tpu.dot_dimension_numbers<[1], [0], [0], [1], [0, 0, 1, 1], [], []>} : vector<2x128xbf16>, vector<128x128xbf16>, vector<2x128xf32> -> vector<2x128xf32>
    %453 = vector.extract_strided_slice %0 {offsets = [4, 0], sizes = [1, 128], strides = [1, 1]} : vector<8x128xf32> to vector<1x128xf32>
    %454 = vector.broadcast %453 : vector<1x128xf32> to vector<2x128xf32>
    %455 = arith.addf %452, %454 : vector<2x128xf32>
    %c0_583 = arith.constant 0 : index
    %c0_584 = arith.constant 0 : index
    %456 = vector.load %arg8[%c0_583, %c0_584] : memref<2x128xf32, #tpu.memory_space<vmem>>, vector<2x128xf32>
    tpu.vector_store %arg8[%c0_583, %c0_584], %455 {strides = array<i32>} : memref<2x128xf32, #tpu.memory_space<vmem>>, vector<2x128xf32>,
    return
  }
  func.func @transform_0(%arg0: i32) -> (i32, i32, i32, i32) {
    %c0_i32 = arith.constant 0 : i32
    %c0_i32_0 = arith.constant 0 : i32
    %c0_i32_1 = arith.constant 0 : i32
    %c0_i32_2 = arith.constant 0 : i32
    %c0_i32_3 = arith.constant 0 : i32
    return %c0_i32, %c0_i32_0, %c0_i32_1, %c0_i32_2 : i32, i32, i32, i32
  }
  func.func @transform_1(%arg0: i32) -> (i32, i32) {
    %c0_i32 = arith.constant 0 : i32
    %c0_i32_0 = arith.constant 0 : i32
    %c0_i32_1 = arith.constant 0 : i32
    return %c0_i32, %c0_i32_0 : i32, i32
  }
  func.func @transform_2(%arg0: i32) -> (i32, i32) {
    %c0_i32 = arith.constant 0 : i32
    %c0_i32_0 = arith.constant 0 : i32
    %c0_i32_1 = arith.constant 0 : i32
    return %c0_i32, %c0_i32_0 : i32, i32
  }
  func.func @transform_3(%arg0: i32) -> (i32, i32) {
    %c0_i32 = arith.constant 0 : i32
    %c0_i32_0 = arith.constant 0 : i32
    %c0_i32_1 = arith.constant 0 : i32
    return %c0_i32, %c0_i32_0 : i32, i32
  }
  func.func @transform_4(%arg0: i32) -> (i32, i32) {
    %c0_i32 = arith.constant 0 : i32
    %c0_i32_0 = arith.constant 0 : i32
    %c0_i32_1 = arith.constant 0 : i32
    return %c0_i32, %c0_i32_0 : i32, i32
  }
  func.func @transform_5(%arg0: i32) -> (i32, i32) {
    %c0_i32 = arith.constant 0 : i32
    %c0_i32_0 = arith.constant 0 : i32
    %c0_i32_1 = arith.constant 0 : i32
    return %c0_i32, %c0_i32_0 : i32, i32
  }
  func.func @transform_6(%arg0: i32) -> (i32, i32) {
    %c0_i32 = arith.constant 0 : i32
    %c0_i32_0 = arith.constant 0 : i32
    %c0_i32_1 = arith.constant 0 : i32
    return %c0_i32, %c0_i32_0 : i32, i32
  }
  func.func @transform_7(%arg0: i32) -> (i32, i32) {
    %c0_i32 = arith.constant 0 : i32
    %c0_i32_0 = arith.constant 0 : i32
    %c0_i32_1 = arith.constant 0 : i32
    return %c0_i32, %c0_i32_0 : i32, i32
  }
}

</mosaic_0001>

<bundles_post_ra>
// kernel: znb_lift_net_forward.1
= control target key start
LH: loop header
LB: loop body
LE: loop exit
PB: predicated region body
PF: predicated region fallthrough
CT: control target
= control target key end

     0   :  { %vm28_vm0 = vcmask 254976   ;;  %v2663_v0 = vmov 0.0   ;;  %s2664_s24 = smov 8   ;;  %s2665_s25 = smov 16   ;;  %vm67_vm1 = vcmask 58368   ;;  %vm216_vm2 = vcmask 64512   ;;  %s4104_s0 = inlined_call_operand.vmem [shape: f32[4,4,2,8], index: 0, kind: input, shape index: {}]   ;;  %s4105_s2 = inlined_call_operand.vmem [shape: bf16[72,32], index: 2, kind: input, shape index: {}]   ;;  %s4106_s6 = inlined_call_operand.vmem [shape: f32[8,128], index: 6, kind: input, shape index: {}]   ;;  %s4107_s3 = inlined_call_operand.vmem [shape: bf16[288,32], index: 3, kind: input, shape index: {}]   ;;  %s4108_s4 = inlined_call_operand.vmem [shape: bf16[512,128], index: 4, kind: input, shape index: {}]   ;;  %s4109_s1 = inlined_call_operand.vmem [shape: f32[2,1], index: 1, kind: input, shape index: {}]   ;;  %s4110_s5 = inlined_call_operand.vmem [shape: bf16[128,128], index: 5, kind: input, shape index: {}]   ;;  %s4111_s7 = inlined_call_operand.vmem [shape: f32[2,128], index: 7, kind: output, shape index: {}]  }
   0x1   :  { %33 = vst.msk [vmem:[#allocation2 + $0x8] sm:$0x3] %vm28_vm0, %v2663_v0  ;;  %v2296_v4 = vld [vmem:[%s4104_s0 + $0x2] sm:$0x3]  ;;  %v2297_v5 = vld [vmem:[%s4104_s0 + $0x4] sm:$0x3] }
   0x2   :  { %29 = vst.msk [vmem:[#allocation2] sm:$0x3] %vm28_vm0, %v2663_v0  ;;  %v2298_v6 = vld [vmem:[%s4104_s0 + $0x6] sm:$0x3]  ;;  %v65_v7 = vld [vmem:[%s4104_s0] sm:$0x3] }
   0x3   :  { %30 = vst.msk [vmem:[#allocation2 + $0x2] sm:$0x3] %vm28_vm0, %v2663_v0  ;;  %v2300_v9 = vld [vmem:[%s4104_s0 + $0xa] sm:$0x3]  ;;  %v2301_v10 = vld [vmem:[%s4104_s0 + $0xc] sm:$0x3] }
   0x4   :  { %31 = vst.msk [vmem:[#allocation2 + $0x4] sm:$0x3] %vm28_vm0, %v2663_v0  ;;  %v2299_v12 = vld [vmem:[%s4104_s0 + $0x8] sm:$0x3]  ;;  %s2666_s17 = smov 24   ;;  %s2667_s20 = smov 32  }
   0x5   :  { %32 = vst.msk [vmem:[#allocation2 + $0x6] sm:$0x3] %vm28_vm0, %v2663_v0  ;;  %v2302_v19 = vld [vmem:[%s4104_s0 + $0xe] sm:$0x3]  ;;  %s2668_s21 = smov 40   ;;  %s2669_s30 = smov 48  }
   0x6   :  { %34 = vst.msk [vmem:[#allocation2 + $0xa] sm:$0x3] %vm28_vm0, %v2663_v0  ;;  %v2304_v24 = vld [vmem:[%s4104_s0 + $0x12] sm:$0x3]  ;;  %v2305_v25 = vld [vmem:[%s4104_s0 + $0x14] sm:$0x3] }
   0x7   :  { %35 = vst.msk [vmem:[#allocation2 + $0xc] sm:$0x3] %vm28_vm0, %v2663_v0  ;;  %v2303_v26 = vld [vmem:[%s4104_s0 + $0x10] sm:$0x3]  ;;  %v2306_v31 = vld [vmem:[%s4104_s0 + $0x16] sm:$0x3] }
   0x8   :  { %v137_v1 = vld [vmem:[#allocation2 + $0x8] sm:$0x3]  ;;  %36 = vst.msk [vmem:[#allocation2 + $0xe] sm:$0x3] %vm28_vm0, %v2663_v0  ;;  %s2670_s10 = smov 56   ;;  %s2671_s11 = smov 64  }
   0x9   :  { %314 = vrot.lane.b32.xlu1 %v137_v1, %s2664_s24  ;;  %37 = vst.msk [vmem:[#allocation2 + $0x10] sm:$0x3] %vm28_vm0, %v2663_v0  ;;  %vm218_vm3 = vcmask 130048   ;;  %vm220_vm4 = vcmask 195584   ;;  %vm222_vm5 = vcmask 261120   ;;  %vm224_vm6 = vcmask 326656  }
   0xa   :  { %38 = vst.msk [vmem:[#allocation2 + $0x12] sm:$0x3] %vm28_vm0, %v2663_v0  ;;  %v2799_v14 = vld [vmem:[#allocation2 + $0x2] sm:$0x3]  ;;  %vm226_vm7 = vcmask 392192   ;;  %vm228_vm8 = vcmask 457728  }
   0xb   :  { %39 = vst.msk [vmem:[#allocation2 + $0x14] sm:$0x3] %vm28_vm0, %v2663_v0  ;;  %v2726_v2 = vld [vmem:[#allocation2 + $0x4] sm:$0x3]  ;;  %vm230_vm9 = vcmask 523264   ;;  %vm272_vm10 = vcmask 584706  }
   0xc   :  { %40 = vst.msk [vmem:[#allocation2 + $0x16] sm:$0x3] %vm28_vm0, %v2663_v0  ;;  %234 = vrot.lane.b32.xlu0 %v2726_v2, %s2664_s24  ;;  %v2736_v3 = vld [vmem:[#allocation2 + $0x6] sm:$0x3]  ;;  %vm845_vm11 = vcmask 1043456   ;;  %vm312_vm12 = vcmask 586756  }
   0xd   :  { %41 = vst.msk [vmem:[#allocation2 + $0x18] sm:$0x3] %vm28_vm0, %v2663_v0  ;;  %v139_v15 = vld [vmem:[#allocation2 + $0xa] sm:$0x3]  ;;  %vm352_vm13 = vcmask 588806   ;;  %vm232_vm14 = vcmask 582656  }
   0xe   :  { %42 = vst.msk [vmem:[#allocation2 + $0x1a] sm:$0x3] %vm28_vm0, %v2663_v0  ;;  %v2850_v23 = vld [vmem:[#allocation2 + $0xc] sm:$0x3]  ;;  %vm838_vm15 = vcmask 588800  }
   0xf   :  { %43 = vst.msk [vmem:[#allocation2 + $0x1c] sm:$0x3] %vm28_vm0, %v2663_v0 }
  0x10   :  { %44 = vst.msk [vmem:[#allocation2 + $0x1e] sm:$0x3] %vm28_vm0, %v2663_v0 }
  0x11   :  { %45 = vst.msk [vmem:[#allocation2 + $0x20] sm:$0x3] %vm28_vm0, %v2663_v0 }
  0x12   :  { %46 = vst.msk [vmem:[#allocation2 + $0x22] sm:$0x3] %vm28_vm0, %v2663_v0 }
  0x13   :  { %47 = vst.msk [vmem:[#allocation2 + $0x24] sm:$0x3] %vm28_vm0, %v2663_v0  ;;  %v147_v17 = vld [vmem:[#allocation2 + $0x16] sm:$0x3] }
  0x14   :  { %48 = vst.msk [vmem:[#allocation2 + $0x26] sm:$0x3] %vm28_vm0, %v2663_v0  ;;  %274 = vrot.lane.b32.xlu0 %v2736_v3, %s2664_s24  ;;  %v2875_v27 = vld [vmem:[#allocation2 + $0x18] sm:$0x3] }
  0x15   :  { %49 = vst.msk [vmem:[#allocation2 + $0x28] sm:$0x3] %vm28_vm0, %v2663_v0 }
  0x16   :  { %50 = vst.msk [vmem:[#allocation2 + $0x2a] sm:$0x3] %vm28_vm0, %v2663_v0 }
  0x17   :  { %51 = vst.msk [vmem:[#allocation2 + $0x2c] sm:$0x3] %vm28_vm0, %v2663_v0 }
  0x18   :  { %52 = vst.msk [vmem:[#allocation2 + $0x2e] sm:$0x3] %vm28_vm0, %v2663_v0 }
  0x19   :  { %53 = vst.msk [vmem:[#allocation2 + $0x30] sm:$0x3] %vm28_vm0, %v2663_v0  ;;  %v2885_v29 = vld [vmem:[#allocation2 + $0x22] sm:$0x3] }
  0x1a   :  { %54 = vst.msk [vmem:[#allocation2 + $0x32] sm:$0x3] %vm28_vm0, %v2663_v0  ;;  %v2977_v53 = vld [vmem:[#allocation2 + $0x24] sm:$0x3] }
  0x1b   :  { %55 = vst.msk [vmem:[#allocation2 + $0x34] sm:$0x3] %vm28_vm0, %v2663_v0 }
  0x1c   :  { %56 = vst.msk [vmem:[#allocation2 + $0x36] sm:$0x3] %vm28_vm0, %v2663_v0  ;;  %238 = vrot.lane.b32.xlu0 %v2736_v3, %s2665_s25 }
  0x1d   :  { %57 = vst.msk [vmem:[#allocation2 + $0x38] sm:$0x3] %vm28_vm0, %v2663_v0 }
  0x1e   :  { %58 = vst.msk [vmem:[#allocation2 + $0x3a] sm:$0x3] %vm28_vm0, %v2663_v0 }
  0x1f   :  { %59 = vst.msk [vmem:[#allocation2 + $0x3c] sm:$0x3] %vm28_vm0, %v2663_v0  ;;  %v2991_v57 = vld [vmem:[#allocation2 + $0x2e] sm:$0x3] }
  0x20   :  { %60 = vst.msk [vmem:[#allocation2 + $0x3e] sm:$0x3] %vm28_vm0, %v2663_v0 }
  0x21   :  { %61 = vst.msk [vmem:[#allocation2 + $0x40] sm:$0x3] %vm28_vm0, %v2663_v0 }
  0x22   :  { %62 = vst.msk [vmem:[#allocation2 + $0x42] sm:$0x3] %vm28_vm0, %v2663_v0 }
  0x23   :  { %63 = vst.msk [vmem:[#allocation2 + $0x44] sm:$0x3] %vm28_vm0, %v2663_v0 }
  0x24   :  { %64 = vst.msk [vmem:[#allocation2 + $0x46] sm:$0x3] %vm28_vm0, %v2663_v0  ;;  %v2307_v0 = vld [vmem:[%s4104_s0 + $0x18] sm:$0x3] }
  0x25   :  { %72 = vst.msk [vmem:[#allocation2 + $0x10] sm:$0x3] %vm67_vm1, %v2296_v4 }
  0x26   :  { %76 = vst.msk [vmem:[#allocation2 + $0x12] sm:$0x3] %vm67_vm1, %v2297_v5 }
  0x27   :  { %80 = vst.msk [vmem:[#allocation2 + $0x14] sm:$0x3] %vm67_vm1, %v2298_v6 }
  0x28   :  { %68 = vst.msk [vmem:[#allocation2 + $0xe] sm:$0x3] %vm67_vm1, %v65_v7  ;;  %v2309_v7 = vld [vmem:[%s4104_s0 + $0x1c] sm:$0x3] }
  0x29   :  { %88 = vst.msk [vmem:[#allocation2 + $0x1c] sm:$0x3] %vm67_vm1, %v2300_v9 }
  0x2a   :  { %92 = vst.msk [vmem:[#allocation2 + $0x1e] sm:$0x3] %vm67_vm1, %v2301_v10 }
  0x2b   :  { %84 = vst.msk [vmem:[#allocation2 + $0x1a] sm:$0x3] %vm67_vm1, %v2299_v12 }
  0x2c   :  { %v2777_v8 = vld [vmem:[#allocation2 + $0x10] sm:$0x3]  ;;  %96 = vst.msk [vmem:[#allocation2 + $0x20] sm:$0x3] %vm67_vm1, %v2302_v19 }
  0x2d   :  { %390 = vrot.lane.b32.xlu1 %v2777_v8, %s2664_s24  ;;  %v2787_v11 = vld [vmem:[#allocation2 + $0x12] sm:$0x3]  ;;  %104 = vst.msk [vmem:[#allocation2 + $0x28] sm:$0x3] %vm67_vm1, %v2304_v24  ;;  %v2310_v24 = vld [vmem:[%s4104_s0 + $0x1e] sm:$0x3] }
  0x2e   :  { %427 = vrot.lane.b32.xlu2 %v2787_v11, %s2664_s24  ;;  %393 = vrot.lane.b32.xlu0 %v2787_v11, %s2665_s25  ;;  %v145_v13 = vld [vmem:[#allocation2 + $0x14] sm:$0x3]  ;;  %108 = vst.msk [vmem:[#allocation2 + $0x2a] sm:$0x3] %vm67_vm1, %v2305_v25 }
  0x2f   :  { %v2809_v16 = vld [vmem:[#allocation2 + $0xe] sm:$0x3]  ;;  %100 = vst.msk [vmem:[#allocation2 + $0x26] sm:$0x3] %vm67_vm1, %v2303_v26 }
  0x30   :  { %v2811_v18 = vld [vmem:[#allocation2 + $0x1c] sm:$0x3]  ;;  %4121 = vst [vmem:[#allocation7_spill] sm:$0xff] %v2875_v27 }
  0x31   :  { %4118 = vst [vmem:[#allocation4_spill] sm:$0xff] %v2811_v18  ;;  %v2828_v20 = vld [vmem:[#allocation2 + $0x1e] sm:$0x3] }
  0x32   :  { %4119 = vst [vmem:[#allocation5_spill] sm:$0xff] %v2828_v20  ;;  %v2830_v21 = vld [vmem:[#allocation2 + $0x1a] sm:$0x3] }
  0x33   :  { %4120 = vst [vmem:[#allocation6_spill] sm:$0xff] %v2830_v21  ;;  %v2838_v22 = vld [vmem:[#allocation2 + $0x20] sm:$0x3] }
  0x34   :  { %v2887_v30 = vld [vmem:[#allocation2 + $0x28] sm:$0x3]  ;;  %112 = vst.msk [vmem:[#allocation2 + $0x2c] sm:$0x3] %vm67_vm1, %v2306_v31 }
  0x35   :  { %278 = vrot.lane.b32.xlu1 %v137_v1, %s2665_s25  ;;  %v2911_v35 = vld [vmem:[#allocation2 + $0x2a] sm:$0x3]  ;;  %v2308_v1 = vld [vmem:[%s4104_s0 + $0x1a] sm:$0x3]  ;;  %116 = vst.msk [vmem:[#allocation2 + $0x32] sm:$0x3] %vm67_vm1, %v2307_v0 }
  0x36   :  { %464 = vrot.lane.b32.xlu2 %v145_v13, %s2664_s24  ;;  %185 = vrot.lane.b32.xlu0 %v2799_v14, %s2664_s24  ;;  %v2913_v36 = vld [vmem:[#allocation2 + $0x26] sm:$0x3]  ;;  %120 = vst.msk [vmem:[#allocation2 + $0x34] sm:$0x3] %vm67_vm1, %v2308_v1 }
  0x37   :  { %124 = vst.msk [vmem:[#allocation2 + $0x36] sm:$0x3] %vm67_vm1, %v2309_v7 }
  0x38   :  { %128 = vst.msk [vmem:[#allocation2 + $0x38] sm:$0x3] %vm67_vm1, %v2310_v24  ;;  %vm877_vm1 = vcmask 261126  }
  0x3b   :  { %v2927_v40 = vld [vmem:[#allocation2 + $0x2c] sm:$0x3] }
  0x3c   :  { %v3065_v19 = vld [vmem:[#allocation2 + $0x32] sm:$0x3] }
  0x3d   :  { %430 = vrot.lane.b32.xlu1 %v145_v13, %s2665_s25  ;;  %4124 = vst [vmem:[#allocation10_spill] sm:$0xff] %v3065_v19  ;;  %v3093_v1 = vld [vmem:[#allocation2 + $0x34] sm:$0x3] }
  0x3e   :  { %318 = vrot.lane.b32.xlu2 %v139_v15, %s2665_s25  ;;  %321 = vrot.lane.b32.xlu0 %v2787_v11, %s2666_s17 }
  0x45   :  { %241 = vrot.lane.b32.xlu1 %v2809_v16, %s2666_s17 }
  0x46   :  { %467 = vrot.lane.b32.xlu2 %v147_v17, %s2665_s25  ;;  %433 = vrot.lane.b32.xlu0 %v2811_v18, %s2666_s17 }
  0x4d   :  { %354 = vrot.lane.b32.xlu1 %v2809_v16, %s2664_s24 }
  0x4e   :  { %281 = vrot.lane.b32.xlu2 %v2777_v8, %s2666_s17  ;;  %244 = vrot.lane.b32.xlu0 %v2777_v8, %s2667_s20 }
  0x55   :  { %470 = vrot.lane.b32.xlu1 %v2828_v20, %s2666_s17 }
  0x56   :  { %396 = vrot.lane.b32.xlu2 %v2830_v21, %s2666_s17  ;;  %357 = vrot.lane.b32.xlu0 %v2777_v8, %s2665_s25 }
  0x5d   :  { %284 = vrot.lane.b32.xlu1 %v2787_v11, %s2667_s20 }
  0x5e   :  { %189 = vrot.lane.b32.xlu2 %v2726_v2, %s2665_s25  ;;  %473 = vrot.lane.b32.xlu0 %v2838_v22, %s2667_s20 }
  0x65   :  { %399 = vrot.lane.b32.xlu1 %v2811_v18, %s2667_s20 }
  0x66   :  { %324 = vrot.lane.b32.xlu2 %v145_v13, %s2667_s20  ;;  %288 = vrot.lane.b32.xlu0 %v145_v13, %s2668_s21 }
  0x6d   :  { %193 = vrot.lane.b32.xlu1 %v2850_v23, %s2666_s17 }
  0x6e   :  { %436 = vrot.lane.b32.xlu2 %v2828_v20, %s2667_s20  ;;  %402 = vrot.lane.b32.xlu0 %v2828_v20, %s2668_s21 }
  0x75   :  { %328 = vrot.lane.b32.xlu1 %v147_v17, %s2668_s21 }
  0x76   :  { %248 = vrot.lane.b32.xlu2 %v2787_v11, %s2668_s21  ;;  %197 = vrot.lane.b32.xlu0 %v2809_v16, %s2667_s20 }
  0x7b   :  { %v2917_v37 = vpop.permute.xlu1 %314 }
  0x7d   :  { %439 = vrot.lane.b32.xlu1 %v2838_v22, %s2668_s21 }
  0x7e   :  { %360 = vrot.lane.b32.xlu2 %v2875_v27, %s2666_s17  ;;  %331 = vrot.lane.b32.xlu0 %v2828_v20, %s2669_s30  ;;  %v2883_v28 = vpop.permute.xlu0 %234 }
  0x85   :  { %251 = vrot.lane.b32.xlu1 %v2830_v21, %s2669_s30 }
  0x86   :  { %476 = vrot.lane.b32.xlu2 %v2885_v29, %s2668_s21  ;;  %442 = vrot.lane.b32.xlu0 %v2887_v30, %s2669_s30  ;;  %v2901_v33 = vpop.permute.xlu0 %274 }
  0x88   :  { %v2899_v32 = vpop.permute.xlu2 %427 }
  0x8d   :  { %363 = vrot.lane.b32.xlu1 %v2830_v21, %s2667_s20 }
  0x8e   :  { %291 = vrot.lane.b32.xlu2 %v2811_v18, %s2669_s30  ;;  %254 = vrot.lane.b32.xlu0 %v2811_v18, %s2670_s10  ;;  %v2923_v38 = vpop.permute.xlu0 %238 }
  0x90   :  { %v2909_v34 = vpop.permute.xlu2 %464 }
  0x95   :  { %479 = vrot.lane.b32.xlu1 %v2911_v35, %s2669_s30 }
  0x96   :  { %405 = vrot.lane.b32.xlu2 %v2913_v36, %s2669_s30  ;;  %366 = vrot.lane.b32.xlu0 %v2811_v18, %s2668_s21 }
  0x98   :  { %v2925_v39 = vpop.permute.xlu2 %318 }
  0x9d   :  { %294 = vrot.lane.b32.xlu1 %v2828_v20, %s2670_s10 }
  0x9e   :  { %201 = vrot.lane.b32.xlu2 %v2777_v8, %s2668_s21  ;;  %482 = vrot.lane.b32.xlu0 %v2927_v40, %s2670_s10 }
  0x9f   :  { %v2935_v41 = vpop.permute.xlu1 %390 }
  0xa0   :  { %v2937_v42 = vpop.permute.xlu2 %467  ;;  %v2939_v43 = vpop.permute.xlu0 %393 }
  0xa5   :  { %408 = vrot.lane.b32.xlu1 %v2887_v30, %s2670_s10 }
  0xa6   :  { %334 = vrot.lane.b32.xlu2 %v2838_v22, %s2670_s10  ;;  %298 = vrot.lane.b32.xlu0 %v2838_v22, %s2671_s11 }
  0xa7   :  { %v2947_v44 = vpop.permute.xlu1 %278 }
  0xa8   :  { %v2949_v45 = vpop.permute.xlu2 %281  ;;  %v2951_v46 = vpop.permute.xlu0 %185 }
  0xad   :  { %205 = vrot.lane.b32.xlu1 %v2875_v27, %s2669_s30 }
  0xae   :  { %445 = vrot.lane.b32.xlu2 %v2911_v35, %s2670_s10  ;;  %412 = vrot.lane.b32.xlu0 %v2911_v35, %s2671_s11 }
  0xaf   :  { %v2959_v47 = vpop.permute.xlu1 %430 }
  0xb0   :  { %v2961_v48 = vpop.permute.xlu2 %396  ;;  %v2963_v49 = vpop.permute.xlu0 %321 }
  0xb5   :  { %338 = vrot.lane.b32.xlu1 %v2885_v29, %s2671_s11 }
  0xb6   :  { %258 = vrot.lane.b32.xlu2 %v2828_v20, %s2671_s11  ;;  %209 = vrot.lane.b32.xlu0 %v2830_v21, %s2670_s10 }
  0xb7   :  { %v2971_v50 = vpop.permute.xlu1 %241 }
  0xb8   :  { %v2973_v51 = vpop.permute.xlu2 %189  ;;  %v2975_v52 = vpop.permute.xlu0 %433 }
  0xbd   :  { %449 = vrot.lane.b32.xlu1 %v2927_v40, %s2671_s11 }
  0xbe   :  { %370 = vrot.lane.b32.xlu2 %v2977_v53, %s2669_s30  ;;  %378 = vrot.lane.b32.xlu0 %v2887_v30, %s2671_s11 }
  0xbf   :  { %v2985_v54 = vpop.permute.xlu1 %354 }
  0xc0   :  { %v2987_v55 = vpop.permute.xlu2 %324  ;;  %v2989_v56 = vpop.permute.xlu0 %244 }
  0xc5   :  { %374 = vrot.lane.b32.xlu1 %v2913_v36, %s2670_s10 }
  0xc6   :  { %486 = vrot.lane.b32.xlu2 %v2991_v57, %s2671_s11  ;;  %611 = vrot.lane.b32.xlu0 %v2838_v22, %s2664_s24 }
  0xc7   :  { %v2999_v58 = vpop.permute.xlu1 %470 }
  0xc8   :  { %v3001_v59 = vpop.permute.xlu2 %436  ;;  %v3003_v60 = vpop.permute.xlu0 %357 }
  0xc9   :  { %4122 = vst [vmem:[#allocation8_spill] sm:$0xff] %v3003_v60 }
  0xcd   :  { %537 = vrot.lane.b32.xlu1 %v2811_v18, %s2664_s24 }
  0xce   :  { %213 = vrot.lane.b32.xlu2 %v2811_v18, %s2671_s11  ;;  %758 = vrot.lane.b32.xlu0 %v2927_v40, %s2664_s24 }
  0xcf   :  { %v3011_v61 = vpop.permute.xlu1 %284 }
  0xd0   :  { %v3013_v62 = vpop.permute.xlu2 %248  ;;  %v3015_v63 = vpop.permute.xlu0 %473 }
  0xd5   :  { %684 = vrot.lane.b32.xlu1 %v2887_v30, %s2664_s24 }
  0xd6   :  { %574 = vrot.lane.b32.xlu2 %v2828_v20, %s2664_s24  ;;  %614 = vrot.lane.b32.xlu0 %v2885_v29, %s2665_s25 }
  0xd7   :  { %v3031_v4 = vpop.permute.xlu1 %399 }
  0xd8   :  { %v3033_v5 = vpop.permute.xlu2 %360  ;;  %v3035_v6 = vpop.permute.xlu0 %288 }
  0xd9   :  { %4123 = vst [vmem:[#allocation9_spill] sm:$0xff] %v3033_v5 }
  0xdd   :  { %540 = vrot.lane.b32.xlu1 %v2828_v20, %s2665_s25  ;;  %v261_v20 = vsel %vm216_vm2, %v2799_v14, %v2883_v28 }
  0xde   :  { %721 = vrot.lane.b32.xlu2 %v2911_v35, %s2664_s24  ;;  %761 = vrot.lane.b32.xlu0 %v2991_v57, %s2665_s25 }
  0xdf   :  { %v3047_v9 = vpop.permute.xlu1 %193 }
  0xe0   :  { %v3049_v10 = vpop.permute.xlu2 %476  ;;  %v3051_v12 = vpop.permute.xlu0 %402 }
  0xe5   :  { %687 = vrot.lane.b32.xlu1 %v2911_v35, %s2665_s25 }
  0xe6   :  { %577 = vrot.lane.b32.xlu2 %v2838_v22, %s2665_s25  ;;  %580 = vrot.lane.b32.xlu0 %v2887_v30, %s2666_s17 }
  0xe7   :  { %v3059_v13 = vpop.permute.xlu1 %328 }
  0xe8   :  { %v3061_v15 = vpop.permute.xlu2 %291  ;;  %v3063_v17 = vpop.permute.xlu0 %197 }
  0xed   :  { %501 = vrot.lane.b32.xlu1 %v2830_v21, %s2664_s24  ;;  %v3105_v21 = vld [vmem:[#allocation2 + $0x36] sm:$0x3] }
  0xee   :  { %724 = vrot.lane.b32.xlu2 %v2927_v40, %s2665_s25  ;;  %690 = vrot.lane.b32.xlu0 %v3065_v19, %s2666_s17 }
  0xef   :  { %v3077_v22 = vpop.permute.xlu1 %439 }
  0xf0   :  { %v3079_v25 = vpop.permute.xlu2 %405  ;;  %v3081_v26 = vpop.permute.xlu0 %331 }
  0xf5   :  { %617 = vrot.lane.b32.xlu1 %v2911_v35, %s2666_s17 }
  0xf6   :  { %543 = vrot.lane.b32.xlu2 %v2913_v36, %s2666_s17  ;;  %504 = vrot.lane.b32.xlu0 %v2811_v18, %s2665_s25  ;;  %v262_v18 = vsel %vm218_vm3, %v261_v20, %v2923_v38 }
  0xf7   :  { %v252_v29 = vpop.permute.xlu1 %251 }
  0xf8   :  { %v3089_v31 = vpop.permute.xlu2 %201  ;;  %v3091_v0 = vpop.permute.xlu0 %442 }
  0xfd   :  { %727 = vrot.lane.b32.xlu1 %v3093_v1, %s2666_s17 }
  0xfe   :  { %648 = vrot.lane.b32.xlu2 %v2913_v36, %s2664_s24  ;;  %620 = vrot.lane.b32.xlu0 %v2927_v40, %s2667_s20 }
  0xff   :  { %v3101_v7 = vpop.permute.xlu1 %363 }
 0x100   :  { %4125 = vst [vmem:[#allocation11_spill] sm:$0xff] %v3101_v7  ;;  %v3103_v24 = vpop.permute.xlu2 %334  ;;  %v255_v27 = vpop.permute.xlu0 %254  ;;  %v263_v7 = vsel %vm220_vm4, %v262_v18, %v2971_v50  ;;  %v301_v18 = vsel %vm216_vm2, %v2726_v2, %v2901_v33 }
 0x101   :  { %v264_v28 = vsel %vm222_vm5, %v263_v7, %v2989_v56  ;;  %v302_v50 = vsel %vm218_vm3, %v301_v18, %v2947_v44  ;;  %v3146_v7 = vld [vmem:[#allocation2 + $0x38] sm:$0x3]  ;;  %v3153_v44 = vld [vmem:[#allocation2 + $0x30] sm:$0x3]  ;;  %v489_v18 = vsel %vm216_vm2, %v2787_v11, %v2909_v34 }
 0x102   :  { %v265_v60 = vsel %vm224_vm6, %v264_v28, %v3013_v62  ;;  %v303_v2 = vsel %vm220_vm4, %v302_v50, %v2949_v45  ;;  %v490_v11 = vsel %vm218_vm3, %v489_v18, %v2937_v42 }
 0x103   :  { %v266_v20 = vsel %vm226_vm7, %v265_v60, %v252_v29  ;;  %v304_v28 = vsel %vm222_vm5, %v303_v2, %v3011_v61  ;;  %v415_v61 = vsel %vm216_vm2, %v2809_v16, %v2935_v41  ;;  %v491_v16 = vsel %vm220_vm4, %v490_v11, %v2999_v58 }
 0x104   :  { %v267_v38 = vsel %vm228_vm8, %v266_v20, %v255_v27  ;;  %v809_v27 = vld [vmem:[%s4105_s2 + $0x20] sm:$0xf]  ;;  %v305_v45 = vsel %vm224_vm6, %v304_v28, %v3035_v6  ;;  %v416_v34 = vsel %vm218_vm3, %v415_v61, %v2939_v43  ;;  %v492_v42 = vsel %vm222_vm5, %v491_v16, %v3015_v63  ;;  %v3194_v28 = vld [vmem:[#allocation2 + $0x3a] sm:$0x3] }
 0x105   :  { %546 = vrot.lane.b32.xlu1 %v2887_v30, %s2667_s20  ;;  %v828_v20 = vunpack.c.l.b16 %v809_v27  ;;  %v306_v6 = vsel %vm226_vm7, %v305_v45, %v3061_v15  ;;  %v2582_v15 = vld [vmem:[%s4105_s2 + $0x18] sm:$0xff]  ;;  %v129_v63 = vld [vmem:[#allocation2] sm:$0x3] }
 0x106   :  { %764 = vrot.lane.b32.xlu2 %v3105_v21, %s2666_s17  ;;  %730 = vrot.lane.b32.xlu0 %v3105_v21, %s2667_s20 }
 0x107   :  { %v3118_v19 = vpop.permute.xlu1 %479 }
 0x108   :  { %v3122_v5 = vpop.permute.xlu2 %445  ;;  %v3124_v14 = vpop.permute.xlu0 %366 }
 0x10d   :  { %651 = vrot.lane.b32.xlu1 %v2887_v30, %s2665_s25 }
 0x10e   :  { %583 = vrot.lane.b32.xlu2 %v2911_v35, %s2667_s20  ;;  %549 = vrot.lane.b32.xlu0 %v2911_v35, %s2668_s21 }
 0x10f   :  { %v295_v56 = vpop.permute.xlu1 %294 }
 0x110   :  { %v259_v60 = vpop.permute.xlu2 %258  ;;  %v483_v62 = vpop.permute.xlu0 %482  ;;  %v307_v41 = vsel %vm228_vm8, %v306_v6, %v295_v56  ;;  %v341_v56 = vsel %vm216_vm2, %v2736_v3, %v2917_v37 }
 0x111   :  { %v268_v29 = vsel %vm230_vm9, %v267_v38, %v259_v60  ;;  %v833_v38 = vpack.c.b16 %v828_v20, %v828_v20  ;;  %v493_v20 = vsel %vm224_vm6, %v492_v42, %v3049_v10  ;;  %v342_v3 = vsel %vm218_vm3, %v341_v56, %v2925_v39 }
 0x112   :  { %v270_v33 = vrot.slane %v268_v29, 6  ;;  %v217_v10 = vsel %vm216_vm2, %v129_v63, %v2951_v46  ;;  %v2580_v46 = vld [vmem:[%s4105_s2 + $0x8] sm:$0xff] }
 0x113   :  { %v847_v60 = vsel %vm845_vm11, %v833_v38, 0 }
 0x114   :  { %273 = vst.msk [vmem:[#allocation3] sm:$0xc] %vm272_vm10, %v270_v33  ;;  %852 = vmatpush.bf16.msra.mxu0 %v847_v60  ;;  %v417_v33 = vsel %vm220_vm4, %v416_v34, %v2961_v48  ;;  %v494_v48 = vsel %vm226_vm7, %v493_v20, %v3118_v19 }
 0x115   :  { %767 = vrot.lane.b32.xlu1 %v3146_v7, %s2667_s20  ;;  %v418_v27 = vsel %vm222_vm5, %v417_v33, %v3031_v4  ;;  %v495_v37 = vsel %vm228_vm8, %v494_v48, %v483_v62  ;;  %v2581_v4 = vld [vmem:[%s4105_s2 + $0x10] sm:$0xff] }
 0x116   :  { %693 = vrot.lane.b32.xlu2 %v3093_v1, %s2667_s20  ;;  %654 = vrot.lane.b32.xlu0 %v3153_v44, %s2666_s17  ;;  %v419_v18 = vsel %vm224_vm6, %v418_v27, %v3051_v12 }
 0x117   :  { %v409_v50 = vpop.permute.xlu1 %408  ;;  %v420_v39 = vsel %vm226_vm7, %v419_v18, %v3079_v25  ;;  %v4127_v18 = vld [vmem:[#allocation9_spill] sm:$0xff] }
 0x118   :  { %v3179_v29 = vpop.permute.xlu2 %370  ;;  %v299_v2 = vpop.permute.xlu0 %298  ;;  %853 = vmatpush.bf16.msra.mxu0 %v2582_v15  ;;  %v421_v19 = vsel %vm228_vm8, %v420_v39, %v409_v50 }
 0x119   :  { %v308_v43 = vsel %vm230_vm9, %v307_v41, %v299_v2 }
 0x11a   :  { %v310_v58 = vrot.slane %v308_v43, 4  ;;  %v3270_v43 = vld [vmem:[#allocation2 + $0x3e] sm:$0x3] }
 0x11c   :  { %313 = vst.msk [vmem:[#allocation3] sm:$0x30] %vm312_vm12, %v310_v58  ;;  %854 = vmatpush.bf16.msra.mxu0 %v2581_v4 }
 0x11d   :  { %586 = vrot.lane.b32.xlu1 %v2927_v40, %s2668_s21  ;;  %v343_v40 = vsel %vm220_vm4, %v342_v3, %v2963_v49  ;;  %v219_v49 = vsel %vm218_vm3, %v217_v10, %v2973_v51  ;;  %v452_v51 = vsel %vm216_vm2, %v2777_v8, %v2899_v32 }
 0x11e   :  { %507 = vrot.lane.b32.xlu2 %v2977_v53, %s2666_s17  ;;  %770 = vrot.lane.b32.xlu0 %v3194_v28, %s2668_s21  ;;  %v344_v25 = vsel %vm222_vm5, %v343_v40, %v2987_v55  ;;  %v221_v6 = vsel %vm220_vm4, %v219_v49, %v3047_v9  ;;  %v453_v55 = vsel %vm218_vm3, %v452_v51, %v2959_v47  ;;  %v2579_v9 = vld [vmem:[%s4105_s2] sm:$0xff] }
 0x11f   :  { %v206_v12 = vpop.permute.xlu1 %205  ;;  %v345_v50 = vsel %vm224_vm6, %v344_v25, %v3059_v13  ;;  %v223_v60 = vsel %vm222_vm5, %v221_v6, %v3063_v17  ;;  %v454_v8 = vsel %vm220_vm4, %v453_v55, %v2975_v52 }
 0x120   :  { %v487_v62 = vpop.permute.xlu2 %486  ;;  %v413_v45 = vpop.permute.xlu0 %412  ;;  %v346_v16 = vsel %vm226_vm7, %v345_v50, %v3081_v26  ;;  %855 = vmatpush.bf16.msra.mxu0 %v2580_v46  ;;  %v225_v32 = vsel %vm224_vm6, %v223_v60, %v3089_v31  ;;  %v455_v52 = vsel %vm222_vm5, %v454_v8, %v3001_v59  ;;  %v381_v59 = vsel %vm216_vm2, %v2850_v23, %v2985_v54  ;;  %v4128_v54 = vld [vmem:[#allocation11_spill] sm:$0xff]  ;;  %v4131_v50 = vld [vmem:[#allocation5_spill] sm:$0xff] }
 0x121   :  { %v496_v38 = vsel %vm230_vm9, %v495_v37, %v487_v62  ;;  %v422_v61 = vsel %vm230_vm9, %v421_v19, %v413_v45  ;;  %v347_v13 = vsel %vm228_vm8, %v346_v16, %v3103_v24  ;;  %v227_v17 = vsel %vm226_vm7, %v225_v32, %v206_v12  ;;  %v4130_v19 = vld [vmem:[#allocation4_spill] sm:$0xff] }
 0x122   :  { %v498_v11 = vrot.slane %v496_v38, 2  ;;  %v424_v34 = vrot.slane %v422_v61, 6  ;;  %v456_v24 = vsel %vm224_vm6, %v455_v52, %v3077_v22  ;;  %v4126_v22 = vld [vmem:[#allocation8_spill] sm:$0xff] }
 0x123   :  { %v457_v15 = vsel %vm226_vm7, %v456_v24, %v3091_v0  ;;  %v382_v33 = vsel %vm218_vm3, %v381_v59, %v4126_v22  ;;  %v183_v59 = vld [vmem:[#allocation2 + $0x46] sm:$0x3] }
 0x124   :  { %500 = vst.msk [vmem:[#allocation3 + $0x18] sm:$0xc0] %vm352_vm13, %v498_v11  ;;  %856 = vmatpush.bf16.msra.mxu0 %v2579_v9  ;;  %v458_v0 = vsel %vm228_vm8, %v457_v15, %v3122_v5  ;;  %v383_v23 = vsel %vm220_vm4, %v382_v33, %v4127_v18  ;;  %v4129_v5 = vld [vmem:[#allocation10_spill] sm:$0xff]  ;;  %v179_v11 = vld [vmem:[#allocation2 + $0x42] sm:$0x3] }
 0x125   :  { %696 = vrot.lane.b32.xlu1 %v3105_v21, %s2668_s21  ;;  %426 = vst.msk [vmem:[#allocation3 + $0x18] sm:$0xc] %vm272_vm10, %v424_v34  ;;  %v384_v48 = vsel %vm222_vm5, %v383_v23, %v4128_v54 }
 0x126   :  { %623 = vrot.lane.b32.xlu2 %v2991_v57, %s2668_s21  ;;  %589 = vrot.lane.b32.xlu0 %v3093_v1, %s2669_s30  ;;  %v385_v3 = vsel %vm224_vm6, %v384_v48, %v3124_v14  ;;  %v3306_v14 = vld [vmem:[#allocation2 + $0x40] sm:$0x3] }
 0x127   :  { %v339_v47 = vpop.permute.xlu1 %338  ;;  %v386_v37 = vsel %vm226_vm7, %v385_v3, %v3179_v29 }
 0x128   :  { %v348_v57 = vsel %vm230_vm9, %v347_v13, %v339_v47  ;;  %v214_v26 = vpop.permute.xlu2 %213  ;;  %v210_v41 = vpop.permute.xlu0 %209 }
 0x129   :  { %v350_v2 = vrot.slane %v348_v57, 2  ;;  %v229_v42 = vsel %vm228_vm8, %v227_v17, %v210_v41 }
 0x12a   :  { %v231_v31 = vsel %vm230_vm9, %v229_v42, %v214_v26  ;;  %v173_v42 = vld [vmem:[#allocation2 + $0x3c] sm:$0x3] }
 0x12b   :  { %353 = vst.msk [vmem:[#allocation3] sm:$0xc0] %vm352_vm13, %v350_v2  ;;  %v181_v2 = vld [vmem:[#allocation2 + $0x44] sm:$0x3] }
 0x12c   :  { %233 = vst.msk [vmem:[#allocation3] sm:$0x3] %vm232_vm14, %v231_v31 }
 0x12d   :  { %510 = vrot.lane.b32.xlu1 %v2913_v36, %s2667_s20 }
 0x12e   :  { %733 = vrot.lane.b32.xlu2 %v3146_v7, %s2668_s21  ;;  %699 = vrot.lane.b32.xlu0 %v3270_v43, %s2669_s30 }
 0x12f   :  { %v450_v58 = vpop.permute.xlu1 %449 }
 0x130   :  { %v459_v56 = vsel %vm230_vm9, %v458_v0, %v450_v58  ;;  %v575_v27 = vpop.permute.xlu2 %574  ;;  %v379_v63 = vpop.permute.xlu0 %378 }
 0x131   :  { %v461_v20 = vrot.slane %v459_v56, 4  ;;  %v599_v62 = vsel %vm216_vm2, %v4130_v19, %v575_v27  ;;  %v4133_v56 = vld [vmem:[#allocation7_spill] sm:$0xff] }
 0x133   :  { %463 = vst.msk [vmem:[#allocation3 + $0x18] sm:$0x30] %vm312_vm12, %v461_v20  ;;  %v795_v46 = vld [vmem:[#allocation3] sm:$0xff] }
 0x135   :  { %626 = vrot.lane.b32.xlu1 %v3105_v21, %s2669_s30 }
 0x136   :  { %552 = vrot.lane.b32.xlu2 %v4129_v5, %s2669_s30  ;;  %513 = vrot.lane.b32.xlu0 %v2887_v30, %s2668_s21 }
 0x137   :  { %v375_v4 = vpop.permute.xlu1 %374 }
 0x138   :  { %v387_v10 = vsel %vm228_vm8, %v386_v37, %v375_v4  ;;  %v722_v40 = vpop.permute.xlu2 %721  ;;  %v612_v39 = vpop.permute.xlu0 %611 }
 0x139   :  { %v388_v12 = vsel %vm230_vm9, %v387_v10, %v379_v63  ;;  %v746_v34 = vsel %vm216_vm2, %v2887_v30, %v722_v40  ;;  %v636_v60 = vsel %vm216_vm2, %v4131_v50, %v612_v39  ;;  %v4132_v30 = vld [vmem:[#allocation6_spill] sm:$0xff] }
 0x13a   :  { %389 = vst.msk [vmem:[#allocation3 + $0x18] sm:$0x3] %vm232_vm14, %v388_v12 }
 0x13d   :  { %736 = vrot.lane.b32.xlu1 %v3306_v14, %s2669_s30 }
 0x13e   :  { %657 = vrot.lane.b32.xlu2 %v4129_v5, %s2667_s20  ;;  %629 = vrot.lane.b32.xlu0 %v3146_v7, %s2670_s10 }
 0x13f   :  { %v538_v29 = vpop.permute.xlu1 %537 }
 0x140   :  { %v578_v45 = vpop.permute.xlu2 %577  ;;  %v759_v38 = vpop.permute.xlu0 %758  ;;  %v562_v8 = vsel %vm216_vm2, %v4132_v30, %v538_v29 }
 0x141   :  { %v600_v61 = vsel %vm218_vm3, %v599_v62, %v578_v45  ;;  %v796_v49 = vld [vmem:[#allocation3 + $0x18] sm:$0xff]  ;;  %v783_v13 = vsel %vm216_vm2, %v2911_v35, %v759_v38 }
 0x142   :  { %v799_v25 = vpack.c.bf16 %v796_v49, %v795_v46 }
 0x144   :  { %2327 = vmatmul.msk.bf16.vlgmr.msra.gmra.mxu0 %vm838_vm15, %v799_v25 }
 0x145   :  { %555 = vrot.lane.b32.xlu1 %v3093_v1, %s2670_s10 }
 0x146   :  { %773 = vrot.lane.b32.xlu2 %v179_v11, %s2669_s30  ;;  %739 = vrot.lane.b32.xlu0 %v179_v11, %s2670_s10 }
 0x147   :  { %v685_v6 = vpop.permute.xlu1 %684 }
 0x148   :  { %v725_v16 = vpop.permute.xlu2 %724  ;;  %v615_v51 = vpop.permute.xlu0 %614 }
 0x149   :  { %v747_v55 = vsel %vm218_vm3, %v746_v34, %v725_v16  ;;  %v637_v9 = vsel %vm218_vm3, %v636_v60, %v615_v51 }
 0x14d   :  { %660 = vrot.lane.b32.xlu1 %v3093_v1, %s2668_s21 }
 0x14e   :  { %592 = vrot.lane.b32.xlu2 %v3105_v21, %s2670_s10  ;;  %559 = vrot.lane.b32.xlu0 %v3105_v21, %s2671_s11  ;;  %v709_v21 = vsel %vm216_vm2, %v2913_v36, %v685_v6 }
 0x14f   :  { %v541_v32 = vpop.permute.xlu1 %540 }
 0x150   :  { %v563_v47 = vsel %vm218_vm3, %v562_v8, %v541_v32  ;;  %v544_v17 = vpop.permute.xlu2 %543  ;;  %v762_v57 = vpop.permute.xlu0 %761  ;;  %v3406_v32 = vld [vmem:[#allocation2 + $0x4] sm:$0x3] }
 0x151   :  { %v564_v26 = vsel %vm220_vm4, %v563_v47, %v544_v17  ;;  %v784_v41 = vsel %vm218_vm3, %v783_v13, %v762_v57 }
 0x155   :  { %776 = vrot.lane.b32.xlu1 %v181_v2, %s2670_s10 }
 0x156   :  { %702 = vrot.lane.b32.xlu2 %v3306_v14, %s2670_s10  ;;  %664 = vrot.lane.b32.xlu0 %v173_v42, %s2669_s30 }
 0x157   :  { %v688_v35 = vpop.permute.xlu1 %687 }
 0x158   :  { %v710_v52 = vsel %vm218_vm3, %v709_v21, %v688_v35  ;;  %v649_v31 = vpop.permute.xlu2 %648  ;;  %v581_v24 = vpop.permute.xlu0 %580  ;;  %v3419_v35 = vld [vmem:[#allocation2 + $0x22] sm:$0x3] }
 0x159   :  { %v601_v15 = vsel %vm220_vm4, %v600_v61, %v581_v24  ;;  %v675_v19 = vsel %vm216_vm2, %v2977_v53, %v649_v31  ;;  %v1070_v31 = vrot.slane %v3419_v35, 2 }
 0x15b   :  { %1076 = vst.msk [vmem:[#allocation3 + $0x10] sm:$0xc0] %vm877_vm1, %v1070_v31 }
 0x15d   :  { %596 = vrot.lane.b32.xlu1 %v3146_v7, %s2671_s11 }
 0x15e   :  { %517 = vrot.lane.b32.xlu2 %v3153_v44, %s2669_s30  ;;  %780 = vrot.lane.b32.xlu0 %v183_v59, %s2671_s11  ;;  %s2672_s30 = smov 96  }
 0x15f   :  { %v502_v22 = vpop.permute.xlu1 %501 }
 0x160   :  { %v765_v33 = vpop.permute.xlu2 %764  ;;  %v691_v0 = vpop.permute.xlu0 %690  ;;  %v528_v44 = vsel %vm216_vm2, %v4133_v56, %v502_v22  ;;  %vm873_vm2 = vcmask 257026  }
 0x161   :  { %v785_v36 = vsel %vm220_vm4, %v784_v41, %v765_v33  ;;  %v711_v58 = vsel %vm220_vm4, %v710_v52, %v691_v0 }
 0x165   :  { %706 = vrot.lane.b32.xlu1 %v179_v11, %s2671_s11 }
 0x166   :  { %633 = vrot.lane.b32.xlu2 %v3194_v28, %s2671_s11  ;;  %525 = vrot.lane.b32.xlu0 %v3093_v1, %s2671_s11 }
 0x167   :  { %v618_v7 = vpop.permute.xlu1 %617 }
 0x168   :  { %v638_v27 = vsel %vm220_vm4, %v637_v9, %v618_v7  ;;  %v584_v63 = vpop.permute.xlu2 %583  ;;  %v505_v20 = vpop.permute.xlu0 %504 }
 0x169   :  { %v3366_v18 = vsel %vm222_vm5, %v601_v15, %v584_v63  ;;  %v529_v23 = vsel %vm218_vm3, %v528_v44, %v505_v20 }
 0x16d   :  { %521 = vrot.lane.b32.xlu1 %v4129_v5, %s2670_s10 }
 0x16e   :  { %743 = vrot.lane.b32.xlu2 %v181_v2, %s2671_s11  ;;  %961 = vrot.lane.b32.xlu0 %v3406_v32, %s2667_s20  ;;  %v27_v2 = vld [vmem:[%s4106_s6] sm:$0xff] }
 0x16f   :  { %v728_v28 = vpop.permute.xlu1 %727  ;;  %v3424_v15 = vperm.slane %v27_v2, 0 }
 0x170   :  { %v748_v1 = vsel %vm220_vm4, %v747_v55, %v728_v28  ;;  %v694_v54 = vpop.permute.xlu2 %693  ;;  %v621_v48 = vpop.permute.xlu0 %620 }
 0x171   :  { %v3374_v3 = vsel %vm222_vm5, %v711_v58, %v694_v54  ;;  %v639_v37 = vsel %vm222_vm5, %v638_v27, %v621_v48 }
 0x175   :  { %672 = vrot.lane.b32.xlu1 %v3306_v14, %s2671_s11 }
 0x176   :  { %668 = vrot.lane.b32.xlu2 %v3270_v43, %s2670_s10 }
 0x177   :  { %v547_v4 = vpop.permute.xlu1 %546 }
 0x178   :  { %v565_v5 = vsel %vm222_vm5, %v564_v26, %v547_v4  ;;  %v508_v10 = vpop.permute.xlu2 %507  ;;  %v731_v40 = vpop.permute.xlu0 %730 }
 0x179   :  { %v3383_v39 = vsel %vm220_vm4, %v529_v23, %v508_v10  ;;  %v749_v12 = vsel %vm222_vm5, %v748_v1, %v731_v40 }
 0x17f   :  { %v652_v62 = vpop.permute.xlu1 %651 }
 0x180   :  { %v676_v29 = vsel %vm218_vm3, %v675_v19, %v652_v62  ;;  %v624_v14 = vpop.permute.xlu2 %623  ;;  %v550_v45 = vpop.permute.xlu0 %549  ;;  %vm875_vm3 = vcmask 259076  }
 0x181   :  { %v640_v42 = vsel %vm224_vm6, %v639_v37, %v624_v14  ;;  %v566_v21 = vsel %vm224_vm6, %v565_v5, %v550_v45 }
 0x187   :  { %v768_v38 = vpop.permute.xlu1 %767 }
 0x188   :  { %v3390_v43 = vsel %vm222_vm5, %v785_v36, %v768_v38  ;;  %v734_v61 = vpop.permute.xlu2 %733  ;;  %v655_v46 = vpop.permute.xlu0 %654 }
 0x189   :  { %v677_v49 = vsel %vm220_vm4, %v676_v29, %v655_v46  ;;  %v750_v20 = vsel %vm224_vm6, %v749_v12, %v734_v61  ;;  %vm953_vm4 = vcmask 785408  }
 0x18f   :  { %v3393_v25 = vpop.permute.xlu1 %586 }
 0x190   :  { %v553_v11 = vpop.permute.xlu2 %552  ;;  %v771_v34 = vpop.permute.xlu0 %770  ;;  %v603_v12 = vsel %vm224_vm6, %v3366_v18, %v3393_v25 }
 0x191   :  { %v567_v59 = vsel %vm226_vm7, %v566_v21, %v553_v11  ;;  %v787_v19 = vsel %vm224_vm6, %v3390_v43, %v771_v34 }
 0x197   :  { %v3395_v6 = vpop.permute.xlu1 %696 }
 0x198   :  { %v658_v53 = vpop.permute.xlu2 %657  ;;  %v590_v50 = vpop.permute.xlu0 %589 }
 0x199   :  { %v3398_v60 = vsel %vm222_vm5, %v677_v49, %v658_v53  ;;  %v604_v62 = vsel %vm226_vm7, %v603_v12, %v590_v50  ;;  %v713_v50 = vsel %vm224_vm6, %v3374_v3, %v3395_v6 }
 0x19f   :  { %v3400_v16 = vpop.permute.xlu1 %510 }
 0x1a0   :  { %v774_v51 = vpop.permute.xlu2 %773  ;;  %v3402_v55 = vpop.permute.xlu0 %699 }
 0x1a1   :  { %v788_v45 = vsel %vm226_vm7, %v787_v19, %v774_v51  ;;  %v714_v51 = vsel %vm226_vm7, %v713_v50, %v3402_v55 }
 0x1a7   :  { %v627_v9 = vpop.permute.xlu1 %626 }
 0x1a8   :  { %v593_v30 = vpop.permute.xlu2 %592  ;;  %v3404_v8 = vpop.permute.xlu0 %513  ;;  %v641_v52 = vsel %vm226_vm7, %v640_v42, %v627_v9  ;;  %v3481_v9 = vld [vmem:[#allocation2 + $0x6] sm:$0x3]  ;;  %v531_v42 = vsel %vm222_vm5, %v3383_v39, %v3400_v16 }
 0x1a9   :  { %v605_v38 = vsel %vm228_vm8, %v604_v62, %v593_v30  ;;  %v895_v30 = vld [vmem:[#allocation2 + $0x8] sm:$0x3]  ;;  %v532_v21 = vsel %vm224_vm6, %v531_v42, %v3404_v8 }
 0x1af   :  { %v737_v13 = vpop.permute.xlu1 %736 }
 0x1b0   :  { %v3410_v47 = vpop.permute.xlu2 %702  ;;  %v630_v17 = vpop.permute.xlu0 %629  ;;  %v751_v28 = vsel %vm226_vm7, %v750_v20, %v737_v13 }
 0x1b1   :  { %v642_v24 = vsel %vm228_vm8, %v641_v52, %v630_v17  ;;  %v715_v17 = vsel %vm228_vm8, %v714_v51, %v3410_v47  ;;  %v896_v52 = vld [vmem:[#allocation2 + $0xa] sm:$0x3] }
 0x1b7   :  { %v556_v57 = vpop.permute.xlu1 %555 }
 0x1b8   :  { %v3412_v26 = vpop.permute.xlu2 %517  ;;  %v740_v41 = vpop.permute.xlu0 %739  ;;  %v568_v33 = vsel %vm228_vm8, %v567_v59, %v556_v57 }
 0x1b9   :  { %v752_v1 = vsel %vm228_vm8, %v751_v28, %v740_v41 }
 0x1bf   :  { %v3427_v22 = vpop.permute.xlu1 %660 }
 0x1c0   :  { %v634_v0 = vpop.permute.xlu2 %633  ;;  %v560_v36 = vpop.permute.xlu0 %559  ;;  %v679_v16 = vsel %vm224_vm6, %v3398_v60, %v3427_v22  ;;  %v892_v60 = vld [vmem:[#allocation2 + $0x2] sm:$0x3] }
 0x1c1   :  { %v643_v58 = vsel %vm230_vm9, %v642_v24, %v634_v0  ;;  %v858_v7 = vpop.f32.mrf.mxu0  ;;  %v569_v56 = vsel %vm230_vm9, %v568_v33, %v560_v36  ;;  %v533_v24 = vsel %vm226_vm7, %v532_v21, %v3412_v26  ;;  %v902_v0 = vld [vmem:[#allocation2 + $0x16] sm:$0x3] }
 0x1c2   :  { %v645_v44 = vrot.slane %v643_v58, 2  ;;  %v859_v27 = vadd.f32 %v858_v7, %v3424_v15  ;;  %v571_v63 = vrot.slane %v569_v56, 6 }
 0x1c4   :  { %647 = vst.msk [vmem:[#allocation3 + $0x30] sm:$0xc0] %vm352_vm13, %v645_v44  ;;  %v868_v23 = vmax.f32 %v859_v27, 0.0 }
 0x1c5   :  { %573 = vst.msk [vmem:[#allocation3 + $0x30] sm:$0xc] %vm272_vm10, %v571_v63 }
 0x1c6   :  { %872 = vst.msk [vmem:[#allocation2 + $0xe] sm:$0x3] %vm28_vm0, %v868_v23 }
 0x1c7   :  { %v777_v54 = vpop.permute.xlu1 %776  ;;  %874 = vst.msk [vmem:[#allocation2 + $0xe] sm:$0xc] %vm873_vm2, %v868_v23 }
 0x1c8   :  { %v744_v48 = vpop.permute.xlu2 %743  ;;  %876 = vst.msk [vmem:[#allocation2 + $0xe] sm:$0x30] %vm875_vm3, %v868_v23  ;;  %v3442_v37 = vpop.permute.xlu0 %664  ;;  %v789_v43 = vsel %vm228_vm8, %v788_v45, %v777_v54 }
 0x1c9   :  { %v753_v4 = vsel %vm230_vm9, %v752_v1, %v744_v48  ;;  %878 = vst.msk [vmem:[#allocation2 + $0xe] sm:$0xc0] %vm877_vm1, %v868_v23  ;;  %v860_v5 = vpop.f32.mrf.mxu0  ;;  %v680_v8 = vsel %vm226_vm7, %v679_v16, %v3442_v37  ;;  %v3609_v16 = vld [vmem:[#allocation2 + $0x42] sm:$0x3] }
 0x1ca   :  { %v755_v10 = vrot.slane %v753_v4, 4  ;;  %v861_v40 = vadd.f32 %v860_v5, %v3424_v15 }
 0x1cc   :  { %757 = vst.msk [vmem:[#allocation3 + $0x48] sm:$0x30] %vm312_vm12, %v755_v10  ;;  %v869_v29 = vmax.f32 %v861_v40, 0.0 }
 0x1cd   :  { %v898_v44 = vld [vmem:[#allocation2 + $0xe] sm:$0x3] }
 0x1ce   :  { %879 = vst.msk [vmem:[#allocation2 + $0x1a] sm:$0x3] %vm28_vm0, %v869_v29  ;;  %v3455_v14 = vld [vmem:[#allocation2 + $0x10] sm:$0x3] }
 0x1cf   :  { %v597_v61 = vpop.permute.xlu1 %596  ;;  %880 = vst.msk [vmem:[#allocation2 + $0x1a] sm:$0xc] %vm873_vm2, %v869_v29  ;;  %v3460_v18 = vld [vmem:[#allocation2 + $0x12] sm:$0x3]  ;;  %940 = vrot.lane.b32.xlu2 %v3455_v14, %s2667_s20 }
 0x1d0   :  { %v606_v46 = vsel %vm230_vm9, %v605_v38, %v597_v61  ;;  %881 = vst.msk [vmem:[#allocation2 + $0x1a] sm:$0x30] %vm875_vm3, %v869_v29  ;;  %v3467_v49 = vld [vmem:[#allocation2 + $0x14] sm:$0x3]  ;;  %973 = vrot.lane.b32.xlu1 %v3460_v18, %s2667_s20  ;;  %v781_v25 = vpop.permute.xlu0 %780  ;;  %v669_v26 = vpop.permute.xlu2 %668 }
 0x1d1   :  { %v608_v11 = vrot.slane %v606_v46, 4  ;;  %882 = vst.msk [vmem:[#allocation2 + $0x1a] sm:$0xc0] %vm877_vm1, %v869_v29  ;;  %1012 = vrot.lane.b32.xlu0 %v3467_v49, %s2667_s20  ;;  %v790_v34 = vsel %vm230_vm9, %v789_v43, %v781_v25  ;;  %v681_v36 = vsel %vm228_vm8, %v680_v8, %v669_v26  ;;  %v3611_v8 = vld [vmem:[#allocation2 + $0x44] sm:$0x3] }
 0x1d2   :  { %v792_v53 = vrot.slane %v790_v34, 2 }
 0x1d3   :  { %610 = vst.msk [vmem:[#allocation3 + $0x30] sm:$0x30] %vm312_vm12, %v608_v11 }
 0x1d4   :  { %794 = vst.msk [vmem:[#allocation3 + $0x48] sm:$0xc0] %vm352_vm13, %v792_v53 }
 0x1d5   :  { %v3528_v56 = vld [vmem:[#allocation2 + $0x1a] sm:$0x3] }
 0x1d6   :  { %v3484_v13 = vld [vmem:[#allocation2 + $0x1c] sm:$0x3] }
 0x1d7   :  { %v707_v57 = vpop.permute.xlu1 %706  ;;  %1001 = vrot.lane.b32.xlu2 %v3481_v9, %s2667_s20  ;;  %960 = vst.msk [vmem:[#allocation3 + $0x10] sm:$0x3] %vm28_vm0, %v3484_v13  ;;  %v3492_v3 = vld [vmem:[#allocation2 + $0x1e] sm:$0x3] }
 0x1d8   :  { %v716_v6 = vsel %vm230_vm9, %v715_v17, %v707_v57  ;;  %1039 = vrot.lane.b32.xlu1 %v895_v30, %s2667_s20  ;;  %v994_v55 = vrot.slane %v3492_v3, 6  ;;  %v3497_v41 = vld [vmem:[#allocation2 + $0x20] sm:$0x3]  ;;  %v526_v31 = vpop.permute.xlu0 %525 }
 0x1d9   :  { %v718_v2 = vrot.slane %v716_v6, 6  ;;  %1005 = vrot.lane.b32.xlu0 %v895_v30, %s2671_s11  ;;  %v1032_v47 = vrot.slane %v3497_v41, 4 }
 0x1da   :  { %1000 = vst.msk [vmem:[#allocation3 + $0x10] sm:$0xc] %vm873_vm2, %v994_v55  ;;  %v3593_v55 = vld [vmem:[#allocation2 + $0x2e] sm:$0x3] }
 0x1db   :  { %720 = vst.msk [vmem:[#allocation3 + $0x48] sm:$0xc] %vm272_vm10, %v718_v2 }
 0x1dc   :  { %1038 = vst.msk [vmem:[#allocation3 + $0x10] sm:$0x30] %vm875_vm3, %v1032_v47  ;;  %v1187_v47 = vrot.slane %v3593_v55, 2 }
 0x1de   :  { %1193 = vst.msk [vmem:[#allocation3 + $0x28] sm:$0xc0] %vm877_vm1, %v1187_v47 }
 0x1df   :  { %v522_v59 = vpop.permute.xlu1 %521  ;;  %965 = vrot.lane.b32.xlu2 %v3481_v9, %s2671_s11 }
 0x1e0   :  { %v534_v33 = vsel %vm228_vm8, %v533_v24, %v522_v59  ;;  %1043 = vrot.lane.b32.xlu1 %v896_v52, %s2671_s11  ;;  %v962_v28 = vpop.permute.xlu0 %961  ;;  %v2599_v59 = vld [vmem:[%s4107_s3 + $0x80] sm:$0xff] }
 0x1e1   :  { %1136 = vrot.lane.b32.xlu0 %v3467_v49, %s2671_s11  ;;  %v535_v39 = vsel %vm230_vm9, %v534_v33, %v526_v31 }
 0x1e2   :  { %536 = vst.msk [vmem:[#allocation3 + $0x30] sm:$0x3] %vm232_vm14, %v535_v39  ;;  %v3607_v39 = vld [vmem:[#allocation2 + $0x3a] sm:$0x3] }
 0x1e3   :  { %v1418_v47 = vld [vmem:[#allocation3 + $0x10] sm:$0xff] }
 0x1e7   :  { %v673_v58 = vpop.permute.xlu1 %672  ;;  %1106 = vrot.lane.b32.xlu2 %v3460_v18, %s2671_s11 }
 0x1e8   :  { %v682_v7 = vsel %vm230_vm9, %v681_v36, %v673_v58  ;;  %1165 = vrot.lane.b32.xlu1 %v902_v0, %s2671_s11  ;;  %v926_v36 = vld [vmem:[#allocation2 + $0x46] sm:$0x3]  ;;  %v1298_v58 = vrot.slane %v3607_v39, 2 }
 0x1e9   :  { %683 = vst.msk [vmem:[#allocation3 + $0x48] sm:$0x3] %vm232_vm14, %v682_v7  ;;  %948 = vrot.lane.b32.xlu0 %v3528_v56, %s2672_s30  ;;  %v797_v22 = vld [vmem:[#allocation3 + $0x30] sm:$0xff] }
 0x1ea   :  { %1304 = vst.msk [vmem:[#allocation3 + $0x40] sm:$0xc0] %vm877_vm1, %v1298_v58  ;;  %v2588_v58 = vld [vmem:[%s4107_s3 + $0x28] sm:$0xff] }
 0x1ef   :  { %928 = vrot.lane.b32.xlu2 %v892_v60, %s2667_s20 }
 0x1f0   :  { %v798_v27 = vld [vmem:[#allocation3 + $0x48] sm:$0xff]  ;;  %969 = vrot.lane.b32.xlu1 %v898_v44, %s2672_s30 }
 0x1f1   :  { %v800_v63 = vpack.c.bf16 %v798_v27, %v797_v22  ;;  %1008 = vrot.lane.b32.xlu0 %v3455_v14, %s2672_s30  ;;  %v3618_v22 = vld [vmem:[#allocation2 + $0x40] sm:$0x3]  ;;  %v1380_v27 = vrot.slane %v3611_v8, 4 }
 0x1f2   :  { %1330 = vst.msk [vmem:[#allocation3 + $0x58] sm:$0x3] %vm28_vm0, %v3618_v22 }
 0x1f3   :  { %2328 = vmatmul.msk.bf16.gmra.mxu0 %vm838_vm15, %v800_v63  ;;  %v1409_v63 = vrot.slane %v926_v36, 2  ;;  %1386 = vst.msk [vmem:[#allocation3 + $0x58] sm:$0x30] %vm875_vm3, %v1380_v27  ;;  %v2589_v36 = vld [vmem:[%s4107_s3 + $0x30] sm:$0xff]  ;;  %v2587_v27 = vld [vmem:[%s4107_s3 + $0x20] sm:$0xff] }
 0x1f5   :  { %1415 = vst.msk [vmem:[#allocation3 + $0x58] sm:$0xc0] %vm877_vm1, %v1409_v63  ;;  %v2598_v63 = vld [vmem:[%s4107_s3 + $0x78] sm:$0xff] }
 0x1f6   :  { %1604 = vmatpush.bf16.msrb.mxu0 %v2598_v63  ;;  %2641 = vmatpush.bf16.msra.mxu2 %v2598_v63 }
 0x1f7   :  { %980 = vrot.lane.b32.xlu2 %v3484_v13, %s2672_s30 }
 0x1f8   :  { %1018 = vrot.lane.b32.xlu1 %v3492_v3, %s2672_s30 }
 0x1f9   :  { %1050 = vrot.lane.b32.xlu0 %v902_v0, %s2667_s20 }
 0x1ff   :  { %1046 = vrot.lane.b32.xlu2 %v3460_v18, %s2672_s30 }
 0x200   :  { %1077 = vrot.lane.b32.xlu1 %v898_v44, %s2667_s20 }
 0x201   :  { %1139 = vrot.lane.b32.xlu0 %v3497_v41, %s2667_s20 }
 0x207   :  { %1109 = vrot.lane.b32.xlu2 %v3492_v3, %s2667_s20 }
 0x208   :  { %1168 = vrot.lane.b32.xlu1 %v3419_v35, %s2667_s20 }
 0x209   :  { %976 = vrot.lane.b32.xlu0 %v3528_v56, %s2671_s11 }
 0x20f   :  { %932 = vrot.lane.b32.xlu2 %v3406_v32, %s2671_s11 }
 0x210   :  { %1015 = vrot.lane.b32.xlu1 %v3484_v13, %s2671_s11 }
 0x211   :  { %1080 = vrot.lane.b32.xlu0 %v3455_v14, %s2671_s11 }
 0x217   :  { %1053 = vrot.lane.b32.xlu2 %v3492_v3, %s2671_s11 }
 0x229   :  { %v941_v20 = vpop.permute.xlu2 %940 }
 0x22a   :  { %v3579_v25 = vsel %vm222_vm5, %v898_v44, %v941_v20 }
 0x231   :  { %v1002_v23 = vpop.permute.xlu2 %1001 }
 0x232   :  { %v1021_v17 = vsel %vm222_vm5, %v3406_v32, %v1002_v23  ;;  %v2600_v32 = vld [vmem:[%s4107_s3 + $0x88] sm:$0xff] }
 0x233   :  { %1629 = vmatpush.bf16.msra.mxu3 %v2600_v32  ;;  %v897_v23 = vld [vmem:[#allocation2 + $0xc] sm:$0x3] }
 0x237   :  { %1630 = vmatpush.bf16.msra.mxu3 %v2599_v59 }
 0x239   :  { %v966_v1 = vpop.permute.xlu2 %965 }
 0x241   :  { %v1107_v54 = vpop.permute.xlu2 %1106 }
 0x242   :  { %v974_v48 = vpop.permute.xlu1 %973  ;;  %v1119_v34 = vsel %vm230_vm9, %v3579_v25, %v1107_v54 }
 0x243   :  { %v1013_v37 = vpop.permute.xlu0 %1012  ;;  %v3569_v19 = vsel %vm222_vm5, %v3455_v14, %v974_v48 }
 0x244   :  { %v1024_v33 = vsel %vm222_vm5, %v3460_v18, %v1013_v37  ;;  %v1351_v18 = vrot.slane %v3609_v16, 6 }
 0x246   :  { %1357 = vst.msk [vmem:[#allocation3 + $0x58] sm:$0xc] %vm873_vm2, %v1351_v18  ;;  %v915_v18 = vld [vmem:[#allocation2 + $0x30] sm:$0x3] }
 0x249   :  { %v3563_v4 = vpop.permute.xlu2 %928 }
 0x24a   :  { %v1040_v5 = vpop.permute.xlu1 %1039 }
 0x24b   :  { %v1006_v10 = vpop.permute.xlu0 %1005  ;;  %v1059_v29 = vsel %vm222_vm5, %v3481_v9, %v1040_v5  ;;  %v983_v9 = vsel %vm222_vm5, %v892_v60, %v962_v28 }
 0x24c   :  { %v984_v57 = vsel %vm230_vm9, %v983_v9, %v966_v1  ;;  %v1022_v6 = vsel %vm230_vm9, %v1021_v17, %v1006_v10 }
 0x251   :  { %v3565_v40 = vpop.permute.xlu2 %980 }
 0x252   :  { %v1044_v12 = vpop.permute.xlu1 %1043 }
 0x253   :  { %v1137_v62 = vpop.permute.xlu0 %1136  ;;  %v1060_v43 = vsel %vm230_vm9, %v1059_v29, %v1044_v12 }
 0x254   :  { %v1148_v45 = vsel %vm230_vm9, %v3569_v19, %v1137_v62 }
 0x255   :  { %v1149_v38 = vsel %vm953_vm4, %v1148_v45, %v3565_v40 }
 0x256   :  { %v1156_v61 = vrot.slane %v1149_v38, 4 }
 0x258   :  { %1162 = vst [vmem:[#allocation3 + $0x18] sm:$0x30] %v1156_v61 }
 0x259   :  { %v1047_v46 = vpop.permute.xlu2 %1046 }
 0x25a   :  { %v1166_v14 = vpop.permute.xlu1 %1165  ;;  %v1061_v11 = vsel %vm953_vm4, %v1060_v43, %v1047_v46 }
 0x25b   :  { %v3584_v53 = vpop.permute.xlu0 %948  ;;  %v1068_v50 = vrot.slane %v1061_v11, 2  ;;  %v1177_v26 = vsel %vm230_vm9, %v1024_v33, %v1166_v14 }
 0x25c   :  { %v1120_v51 = vsel %vm953_vm4, %v1119_v34, %v3584_v53 }
 0x25d   :  { %v1127_v30 = vrot.slane %v1120_v51, 6  ;;  %1074 = vst [vmem:[#allocation3] sm:$0xc0] %v1068_v50  ;;  %v3672_v50 = vld [vmem:[#allocation2 + $0x18] sm:$0x3] }
 0x25f   :  { %1133 = vst [vmem:[#allocation3 + $0x18] sm:$0xc] %v1127_v30 }
 0x262   :  { %v970_v2 = vpop.permute.xlu1 %969 }
 0x263   :  { %v1009_v42 = vpop.permute.xlu0 %1008  ;;  %v985_v21 = vsel %vm953_vm4, %v984_v57, %v970_v2 }
 0x264   :  { %v1023_v52 = vsel %vm953_vm4, %v1022_v6, %v1009_v42  ;;  %v992_v31 = vrot.slane %v985_v21, 6 }
 0x265   :  { %v1030_v24 = vrot.slane %v1023_v52, 4  ;;  %v3700_v52 = vld [vmem:[#allocation2 + $0x24] sm:$0x3] }
 0x266   :  { %998 = vst [vmem:[#allocation3] sm:$0xc] %v992_v31 }
 0x267   :  { %1036 = vst [vmem:[#allocation3] sm:$0x30] %v1030_v24  ;;  %v1427_v24 = vld [vmem:[#allocation3 + $0x58] sm:$0xff] }
 0x26a   :  { %v1019_v0 = vpop.permute.xlu1 %1018 }
 0x26b   :  { %v3615_v7 = vpop.permute.xlu0 %1050  ;;  %v1178_v60 = vsel %vm953_vm4, %v1177_v26, %v1019_v0  ;;  %v3734_v26 = vpop.permute.xlu2 %1109 }
 0x26c   :  { %v1185_v44 = vrot.slane %v1178_v60, 2 }
 0x26e   :  { %1191 = vst [vmem:[#allocation3 + $0x18] sm:$0xc0] %v1185_v44  ;;  %v921_v44 = vld [vmem:[#allocation2 + $0x3c] sm:$0x3] }
 0x270   :  { %v863_v20 = vpop.f32.mrf.mxu0 }
 0x271   :  { %v864_v28 = vadd.f32 %v863_v20, %v3424_v15  ;;  %v2584_v20 = vld [vmem:[%s4107_s3 + $0x8] sm:$0xff] }
 0x272   :  { %v1078_v1 = vpop.permute.xlu1 %1077 }
 0x273   :  { %v870_v54 = vmax.f32 %v864_v28, 0.0  ;;  %v3629_v48 = vpop.permute.xlu0 %1139  ;;  %v3632_v37 = vsel %vm222_vm5, %v897_v23, %v1078_v1 }
 0x275   :  { %883 = vst.msk [vmem:[#allocation2 + $0x26] sm:$0x3] %vm28_vm0, %v870_v54 }
 0x276   :  { %884 = vst.msk [vmem:[#allocation2 + $0x26] sm:$0xc] %vm873_vm2, %v870_v54 }
 0x277   :  { %885 = vst.msk [vmem:[#allocation2 + $0x26] sm:$0x30] %vm875_vm3, %v870_v54 }
 0x278   :  { %886 = vst.msk [vmem:[#allocation2 + $0x26] sm:$0xc0] %vm877_vm1, %v870_v54  ;;  %v865_v5 = vpop.f32.mrf.mxu0 }
 0x279   :  { %v866_v10 = vadd.f32 %v865_v5, %v3424_v15 }
 0x27a   :  { %v3639_v12 = vpop.permute.xlu1 %1168 }
 0x27b   :  { %v871_v62 = vmax.f32 %v866_v10, 0.0  ;;  %v977_v29 = vpop.permute.xlu0 %976  ;;  %v2583_v10 = vld [vmem:[%s4107_s3] sm:$0xff] }
 0x27c   :  { %v3641_v45 = vld [vmem:[#allocation2 + $0x26] sm:$0x3]  ;;  %v987_v38 = vsel %vm230_vm9, %v3569_v19, %v977_v29 }
 0x27d   :  { %887 = vst.msk [vmem:[#allocation2 + $0x32] sm:$0x3] %vm28_vm0, %v871_v62  ;;  %v3646_v61 = vld [vmem:[#allocation2 + $0x28] sm:$0x3]  ;;  %1112 = vrot.lane.b32.xlu1 %v3641_v45, %s2671_s11  ;;  %v988_v43 = vsel %vm953_vm4, %v987_v38, %v3565_v40  ;;  %v2595_v29 = vld [vmem:[%s4107_s3 + $0x60] sm:$0xff]  ;;  %v3829_v38 = vsel %vm222_vm5, %v3484_v13, %v3734_v26 }
 0x27e   :  { %888 = vst.msk [vmem:[#allocation2 + $0x32] sm:$0xc] %vm873_vm2, %v871_v62  ;;  %v3653_v15 = vld [vmem:[#allocation2 + $0x2a] sm:$0x3]  ;;  %1142 = vrot.lane.b32.xlu2 %v3646_v61, %s2671_s11  ;;  %v993_v14 = vrot.slane %v988_v43, 6 }
 0x27f   :  { %v3657_v46 = vld [vmem:[#allocation2 + $0x2c] sm:$0x3]  ;;  %889 = vst.msk [vmem:[#allocation2 + $0x32] sm:$0x30] %vm875_vm3, %v871_v62  ;;  %v1129_v19 = vrot.slane %v3653_v15, 6  ;;  %1171 = vrot.lane.b32.xlu0 %v3653_v15, %s2671_s11 }
 0x280   :  { %890 = vst.msk [vmem:[#allocation2 + $0x32] sm:$0xc0] %vm877_vm1, %v871_v62  ;;  %v1158_v40 = vrot.slane %v3657_v46, 4 }
 0x281   :  { %1135 = vst.msk [vmem:[#allocation3 + $0x28] sm:$0xc] %vm873_vm2, %v1129_v19 }
 0x282   :  { %1105 = vst.msk [vmem:[#allocation3 + $0x28] sm:$0x3] %vm28_vm0, %v3646_v61  ;;  %v3668_v11 = vpop.permute.xlu1 %1015 }
 0x283   :  { %999 = vst [vmem:[#allocation3 + $0x8] sm:$0xc] %v993_v14  ;;  %v1025_v34 = vsel %vm230_vm9, %v1024_v33, %v3668_v11  ;;  %v922_v33 = vld [vmem:[#allocation2 + $0x3e] sm:$0x3]  ;;  %v1081_v62 = vpop.permute.xlu0 %1080 }
 0x284   :  { %v1026_v51 = vsel %vm953_vm4, %v1025_v34, %v1019_v0  ;;  %1164 = vst.msk [vmem:[#allocation3 + $0x28] sm:$0x30] %vm875_vm3, %v1158_v40  ;;  %v3721_v59 = vld [vmem:[#allocation2 + $0x32] sm:$0x3]  ;;  %v3747_v0 = vpop.permute.xlu2 %932  ;;  %v891_v40 = vld [vmem:[#allocation2] sm:$0x3] }
 0x285   :  { %v3676_v9 = vld [vmem:[#allocation2 + $0x34] sm:$0x3]  ;;  %936 = vrot.lane.b32.xlu1 %v897_v23, %s2672_s30  ;;  %v1031_v30 = vrot.slane %v1026_v51, 4  ;;  %v1062_v23 = vsel %vm222_vm5, %v3467_v49, %v3615_v7 }
 0x286   :  { %v3679_v17 = vld [vmem:[#allocation2 + $0x36] sm:$0x3]  ;;  %1219 = vst.msk [vmem:[#allocation3 + $0x40] sm:$0x3] %vm28_vm0, %v3676_v9  ;;  %1056 = vrot.lane.b32.xlu2 %v3497_v41, %s2672_s30 }
 0x287   :  { %v3685_v57 = vld [vmem:[#allocation2 + $0x38] sm:$0x3]  ;;  %1083 = vrot.lane.b32.xlu0 %v3672_v50, %s2672_s30  ;;  %1037 = vst [vmem:[#allocation3 + $0x8] sm:$0x30] %v1031_v30  ;;  %v1240_v6 = vrot.slane %v3679_v17, 6  ;;  %v2597_v49 = vld [vmem:[%s4107_s3 + $0x70] sm:$0xff] }
 0x288   :  { %v1269_v2 = vrot.slane %v3685_v57, 4  ;;  %1605 = vmatpush.bf16.msrb.mxu0 %v2597_v49  ;;  %2642 = vmatpush.bf16.msra.mxu2 %v2597_v49 }
 0x289   :  { %1246 = vst.msk [vmem:[#allocation3 + $0x40] sm:$0xc] %vm873_vm2, %v1240_v6 }
 0x28a   :  { %1275 = vst.msk [vmem:[#allocation3 + $0x40] sm:$0x30] %vm875_vm3, %v1269_v2  ;;  %v2593_v2 = vld [vmem:[%s4107_s3 + $0x50] sm:$0xff] }
 0x28b   :  { %v1421_v42 = vld [vmem:[#allocation3 + $0x28] sm:$0xff] }
 0x28c   :  { %v1430_v21 = vpack.c.bf16 %v1421_v42, %v1418_v47  ;;  %v3765_v60 = vpop.permute.xlu2 %1053  ;;  %v951_v47 = vsel %vm222_vm5, %v891_v40, %v3563_v4 }
 0x28d   :  { %1086 = vrot.lane.b32.xlu1 %v3484_v13, %s2667_s20  ;;  %v1063_v28 = vsel %vm230_vm9, %v1062_v23, %v3765_v60 }
 0x28e   :  { %2401 = vmatmul.msk.bf16.vlgmr.msra.gmra.mxu3 %vm222_vm5, %v1430_v21  ;;  %1116 = vrot.lane.b32.xlu2 %v3646_v61, %s2672_s30 }
 0x28f   :  { %1145 = vrot.lane.b32.xlu0 %v3653_v15, %s2672_s30 }
 0x291   :  { %v1424_v31 = vld [vmem:[#allocation3 + $0x40] sm:$0xff] }
 0x292   :  { %v1433_v32 = vpack.c.bf16 %v1427_v24, %v1424_v31  ;;  %v1098_v24 = vsel %vm230_vm9, %v3632_v37, %v1081_v62 }
 0x295   :  { %1174 = vrot.lane.b32.xlu1 %v3657_v46, %s2672_s30 }
 0x296   :  { %944 = vrot.lane.b32.xlu2 %v3672_v50, %s2671_s11 }
 0x297   :  { %1090 = vrot.lane.b32.xlu0 %v3700_v52, %s2671_s11 }
 0x29d   :  { %1094 = vrot.lane.b32.xlu1 %v3641_v45, %s2672_s30 }
 0x29e   :  { %2402 = vmatmul.msk.bf16.gmra.mxu3 %vm222_vm5, %v1433_v32  ;;  %1220 = vrot.lane.b32.xlu2 %v3653_v15, %s2667_s20 }
 0x29f   :  { %1250 = vrot.lane.b32.xlu0 %v3657_v46, %s2667_s20 }
 0x2a5   :  { %1279 = vrot.lane.b32.xlu1 %v3593_v55, %s2667_s20 }
 0x2a6   :  { %1331 = vrot.lane.b32.xlu2 %v3679_v17, %s2667_s20 }
 0x2a7   :  { %1361 = vrot.lane.b32.xlu0 %v3685_v57, %s2667_s20 }
 0x2ad   :  { %1390 = vrot.lane.b32.xlu1 %v3607_v39, %s2667_s20  ;;  %v2590_v39 = vld [vmem:[%s4107_s3 + $0x38] sm:$0xff] }
 0x2ae   :  { %1223 = vrot.lane.b32.xlu2 %v3721_v59, %s2671_s11  ;;  %1585 = vmatpush.bf16.msra.mxu1 %v2590_v39  ;;  %v3864_v39 = vsel %vm222_vm5, %v3492_v3, %v3629_v48  ;;  %v1179_v3 = vsel %vm222_vm5, %v3497_v41, %v3639_v12 }
 0x2af   :  { %1253 = vrot.lane.b32.xlu0 %v3676_v9, %s2671_s11 }
 0x2b2   :  { %1586 = vmatpush.bf16.msra.mxu1 %v2589_v36 }
 0x2b5   :  { %1282 = vrot.lane.b32.xlu1 %v3679_v17, %s2671_s11 }
 0x2b6   :  { %1334 = vrot.lane.b32.xlu2 %v922_v33, %s2671_s11  ;;  %1587 = vmatpush.bf16.msra.mxu1 %v2588_v58 }
 0x2b7   :  { %1364 = vrot.lane.b32.xlu0 %v3618_v22, %s2671_s11 }
 0x2ba   :  { %1588 = vmatpush.bf16.msra.mxu1 %v2587_v27 }
 0x2bd   :  { %1393 = vrot.lane.b32.xlu1 %v3609_v16, %s2671_s11 }
 0x2be   :  { %1200 = vrot.lane.b32.xlu2 %v3646_v61, %s2667_s20 }
 0x2bf   :  { %1227 = vrot.lane.b32.xlu0 %v3676_v9, %s2672_s30 }
 0x2c5   :  { %1256 = vrot.lane.b32.xlu1 %v3679_v17, %s2672_s30 }
 0x2c6   :  { %1285 = vrot.lane.b32.xlu2 %v3685_v57, %s2672_s30 }
 0x2c7   :  { %1311 = vrot.lane.b32.xlu0 %v3676_v9, %s2667_s20 }
 0x2cd   :  { %1338 = vrot.lane.b32.xlu1 %v3618_v22, %s2672_s30  ;;  %v2586_v22 = vld [vmem:[%s4107_s3 + $0x18] sm:$0xff] }
 0x2ce   :  { %1367 = vrot.lane.b32.xlu2 %v3609_v16, %s2672_s30  ;;  %1589 = vmatpush.bf16.msra.mxu1 %v2586_v22 }
 0x2cf   :  { %1396 = vrot.lane.b32.xlu0 %v3611_v8, %s2672_s30  ;;  %v2585_v8 = vld [vmem:[%s4107_s3 + $0x10] sm:$0xff] }
 0x2d2   :  { %1590 = vmatpush.bf16.msra.mxu1 %v2585_v8 }
 0x2d5   :  { %1204 = vrot.lane.b32.xlu1 %v915_v18, %s2671_s11 }
 0x2d6   :  { %1315 = vrot.lane.b32.xlu2 %v921_v44, %s2671_s11  ;;  %1591 = vmatpush.bf16.msra.mxu1 %v2584_v20 }
 0x2d7   :  { %1208 = vrot.lane.b32.xlu0 %v3721_v59, %s2672_s30 }
 0x2d8   :  { %v3777_v16 = vpop.permute.xlu2 %1142 }
 0x2d9   :  { %v1151_v36 = vsel %vm230_vm9, %v3864_v39, %v3777_v16 }
 0x2da   :  { %1592 = vmatpush.bf16.msra.mxu1 %v2583_v10 }
 0x2dd   :  { %1319 = vrot.lane.b32.xlu1 %v922_v33, %s2672_s30  ;;  %v2591_v33 = vld [vmem:[%s4107_s3 + $0x40] sm:$0xff] }
 0x2de   :  { %1247 = vrot.lane.b32.xlu2 %v3497_v41, %s2671_s11 }
 0x2df   :  { %1276 = vrot.lane.b32.xlu0 %v3419_v35, %s2671_s11  ;;  %v2596_v35 = vld [vmem:[%s4107_s3 + $0x68] sm:$0xff] }
 0x2e0   :  { %v1057_v1 = vpop.permute.xlu2 %1056  ;;  %1606 = vmatpush.bf16.msrb.mxu0 %v2596_v35  ;;  %2643 = vmatpush.bf16.msra.mxu2 %v2596_v35 }
 0x2e1   :  { %v1064_v54 = vsel %vm953_vm4, %v1063_v28, %v1057_v1 }
 0x2e2   :  { %v1069_v5 = vrot.slane %v1064_v54, 2 }
 0x2e4   :  { %1075 = vst [vmem:[#allocation3 + $0x8] sm:$0xc0] %v1069_v5  ;;  %1607 = vmatpush.bf16.msrb.mxu0 %v2595_v29  ;;  %2644 = vmatpush.bf16.msra.mxu2 %v2595_v29 }
 0x2e5   :  { %1358 = vrot.lane.b32.xlu1 %v3657_v46, %s2671_s11 }
 0x2e6   :  { %1387 = vrot.lane.b32.xlu2 %v3593_v55, %s2671_s11  ;;  %v2594_v55 = vld [vmem:[%s4107_s3 + $0x58] sm:$0xff] }
 0x2e7   :  { %1194 = vrot.lane.b32.xlu0 %v3528_v56, %s2667_s20 }
 0x2e8   :  { %v3814_v7 = vpop.permute.xlu2 %1116  ;;  %1608 = vmatpush.bf16.msrb.mxu0 %v2594_v55  ;;  %2645 = vmatpush.bf16.msra.mxu2 %v2594_v55 }
 0x2ec   :  { %1609 = vmatpush.bf16.msrb.mxu0 %v2593_v2  ;;  %2646 = vmatpush.bf16.msra.mxu2 %v2593_v2 }
 0x2ed   :  { %1305 = vrot.lane.b32.xlu1 %v3641_v45, %s2667_s20 }
 0x2ee   :  { %1197 = vrot.lane.b32.xlu2 %v3700_v52, %s2672_s30 }
 0x2ef   :  { %1308 = vrot.lane.b32.xlu0 %v915_v18, %s2672_s30  ;;  %v1113_v43 = vpop.permute.xlu1 %1112 }
 0x2f0   :  { %v945_v19 = vpop.permute.xlu2 %944  ;;  %v1122_v14 = vsel %vm230_vm9, %v3829_v38, %v1113_v43 }
 0x2f1   :  { %v3834_v34 = vpop.permute.xlu0 %1171  ;;  %v956_v51 = vsel %vm230_vm9, %v3579_v25, %v945_v19  ;;  %v1123_v30 = vsel %vm953_vm4, %v1122_v14, %v3814_v7  ;;  %v2592_v25 = vld [vmem:[%s4107_s3 + $0x48] sm:$0xff] }
 0x2f2   :  { %v957_v13 = vsel %vm953_vm4, %v956_v51, %v3584_v53  ;;  %v1128_v6 = vrot.slane %v1123_v30, 6  ;;  %v952_v53 = vsel %vm230_vm9, %v951_v47, %v3747_v0  ;;  %1610 = vmatpush.bf16.msrb.mxu0 %v2592_v25  ;;  %2647 = vmatpush.bf16.msra.mxu2 %v2592_v25  ;;  %v1180_v48 = vsel %vm230_vm9, %v1179_v3, %v3834_v34 }
 0x2f3   :  { %959 = vst [vmem:[#allocation3 + $0x8] sm:$0x3] %v957_v13 }
 0x2f4   :  { %1134 = vst [vmem:[#allocation3 + $0x20] sm:$0xc] %v1128_v6 }
 0x2f6   :  { %1611 = vmatpush.bf16.msrb.mxu0 %v2591_v33  ;;  %2648 = vmatpush.bf16.msra.mxu2 %v2591_v33 }
 0x2f7   :  { %v937_v42 = vpop.permute.xlu1 %936 }
 0x2f8   :  { %v3852_v21 = vpop.permute.xlu2 %1220  ;;  %v954_v31 = vsel %vm953_vm4, %v952_v53, %v937_v42 }
 0x2f9   :  { %v1084_v32 = vpop.permute.xlu0 %1083  ;;  %958 = vst [vmem:[#allocation3] sm:$0x3] %v954_v31 }
 0x2fa   :  { %v1099_v4 = vsel %vm953_vm4, %v1098_v24, %v1084_v32  ;;  %v1417_v43 = vld [vmem:[#allocation3 + $0x8] sm:$0xff] }
 0x2fb   :  { %1103 = vst [vmem:[#allocation3 + $0x18] sm:$0x3] %v1099_v4 }
 0x2ff   :  { %v1087_v26 = vpop.permute.xlu1 %1086 }
 0x300   :  { %v3866_v37 = vpop.permute.xlu2 %1331  ;;  %v1416_v0 = vld [vmem:[#allocation3] sm:$0xff]  ;;  %v1100_v1 = vsel %vm222_vm5, %v3528_v56, %v1087_v26 }
 0x301   :  { %v3871_v58 = vpop.permute.xlu0 %1145  ;;  %v1230_v5 = vsel %vm230_vm9, %v1100_v1, %v3765_v60 }
 0x302   :  { %v1152_v18 = vsel %vm953_vm4, %v1151_v36, %v3871_v58  ;;  %v1419_v44 = vld [vmem:[#allocation3 + $0x18] sm:$0xff] }
 0x303   :  { %v1157_v27 = vrot.slane %v1152_v18, 4  ;;  %v1428_v22 = vpack.c.bf16 %v1419_v44, %v1416_v0 }
 0x305   :  { %1163 = vst [vmem:[#allocation3 + $0x20] sm:$0x30] %v1157_v27  ;;  %1593 = vmatmul.bf16.vlgmr.msra.gmra.mxu1 %v1428_v22 }
 0x307   :  { %v1175_v8 = vpop.permute.xlu1 %1174 }
 0x308   :  { %v1224_v63 = vpop.permute.xlu2 %1223  ;;  %v1181_v20 = vsel %vm953_vm4, %v1180_v48, %v1175_v8 }
 0x309   :  { %v1091_v23 = vpop.permute.xlu0 %1090  ;;  %v1186_v28 = vrot.slane %v1181_v20, 2 }
 0x30a   :  { %v1101_v54 = vsel %vm230_vm9, %v1100_v1, %v1091_v23 }
 0x30b   :  { %1192 = vst [vmem:[#allocation3 + $0x20] sm:$0xc0] %v1186_v28 }
 0x30f   :  { %v1095_v10 = vpop.permute.xlu1 %1094 }
 0x310   :  { %v1335_v41 = vpop.permute.xlu2 %1334  ;;  %v1102_v12 = vsel %vm953_vm4, %v1101_v54, %v1095_v10  ;;  %v1231_v49 = vsel %vm953_vm4, %v1230_v5, %v1095_v10 }
 0x311   :  { %v1251_v35 = vpop.permute.xlu0 %1250  ;;  %1104 = vst [vmem:[#allocation3 + $0x20] sm:$0x3] %v1102_v12  ;;  %v1238_v62 = vrot.slane %v1231_v49, 6 }
 0x312   :  { %v1261_v18 = vsel %vm222_vm5, %v3653_v15, %v1251_v35  ;;  %v1343_v15 = vsel %vm222_vm5, %v3676_v9, %v3866_v37 }
 0x313   :  { %1244 = vst [vmem:[#allocation3 + $0x30] sm:$0xc] %v1238_v62  ;;  %v1344_v20 = vsel %vm230_vm9, %v1343_v15, %v1335_v41 }
 0x317   :  { %v1280_v29 = vpop.permute.xlu1 %1279 }
 0x318   :  { %v1201_v55 = vpop.permute.xlu2 %1200  ;;  %v1420_v19 = vld [vmem:[#allocation3 + $0x20] sm:$0xff]  ;;  %v1290_v30 = vsel %vm222_vm5, %v3657_v46, %v1280_v29  ;;  %v1232_v46 = vsel %vm222_vm5, %v3646_v61, %v3852_v21 }
 0x319   :  { %v1362_v56 = vpop.permute.xlu0 %1361  ;;  %v1429_v14 = vpack.c.bf16 %v1420_v19, %v1417_v43  ;;  %v1233_v26 = vsel %vm230_vm9, %v1232_v46, %v1224_v63 }
 0x31a   :  { %v1372_v47 = vsel %vm222_vm5, %v3679_v17, %v1362_v56 }
 0x31b   :  { %1612 = vmatmul.bf16.vlgmr.msrb.gmra.mxu0 %v1429_v14 }
 0x31f   :  { %v1391_v40 = vpop.permute.xlu1 %1390 }
 0x320   :  { %v1286_v51 = vpop.permute.xlu2 %1285  ;;  %v1401_v28 = vsel %vm222_vm5, %v3685_v57, %v1391_v40  ;;  %v1214_v57 = vsel %vm222_vm5, %v3641_v45, %v1201_v55 }
 0x321   :  { %v1254_v60 = vpop.permute.xlu0 %1253  ;;  %v1341_v29 = vsel %vm230_vm9, %v1214_v57, %v3834_v34 }
 0x322   :  { %v1262_v44 = vsel %vm230_vm9, %v1261_v18, %v1254_v60 }
 0x327   :  { %v1283_v13 = vpop.permute.xlu1 %1282 }
 0x328   :  { %v1368_v6 = vpop.permute.xlu2 %1367  ;;  %v1291_v2 = vsel %vm230_vm9, %v1290_v30, %v1283_v13 }
 0x329   :  { %v1365_v25 = vpop.permute.xlu0 %1364  ;;  %v1292_v53 = vsel %vm953_vm4, %v1291_v2, %v1286_v51 }
 0x32a   :  { %v1373_v42 = vsel %vm230_vm9, %v1372_v47, %v1365_v25  ;;  %v1297_v31 = vrot.slane %v1292_v53, 2 }
 0x32b   :  { %v1374_v24 = vsel %vm953_vm4, %v1373_v42, %v1368_v6 }
 0x32c   :  { %v1379_v32 = vrot.slane %v1374_v24, 4  ;;  %1303 = vst [vmem:[#allocation3 + $0x38] sm:$0xc0] %v1297_v31 }
 0x32e   :  { %1385 = vst [vmem:[#allocation3 + $0x50] sm:$0x30] %v1379_v32 }
 0x32f   :  { %v1394_v4 = vpop.permute.xlu1 %1393 }
 0x330   :  { %v1316_v33 = vpop.permute.xlu2 %1315  ;;  %v1402_v54 = vsel %vm230_vm9, %v1401_v28, %v1394_v4 }
 0x331   :  { %v1228_v17 = vpop.permute.xlu0 %1227 }
 0x332   :  { %v1234_v0 = vsel %vm953_vm4, %v1233_v26, %v1228_v17 }
 0x333   :  { %v1239_v36 = vrot.slane %v1234_v0, 6 }
 0x335   :  { %1245 = vst [vmem:[#allocation3 + $0x38] sm:$0xc] %v1239_v36  ;;  %v2608_v36 = vld [vmem:[%s4108_s4 + $0x38] sm:$0xff] }
 0x336   :  { %1778 = vmatpush.bf16.msrb.mxu1 %v2608_v36 }
 0x337   :  { %v1257_v27 = vpop.permute.xlu1 %1256 }
 0x338   :  { %v1248_v22 = vpop.permute.xlu2 %1247  ;;  %v1263_v3 = vsel %vm953_vm4, %v1262_v44, %v1257_v27  ;;  %v2603_v44 = vld [vmem:[%s4108_s4 + $0x10] sm:$0xff] }
 0x339   :  { %v1312_v48 = vpop.permute.xlu0 %1311  ;;  %v1259_v61 = vsel %vm230_vm9, %v3829_v38, %v1248_v22  ;;  %v1268_v21 = vrot.slane %v1263_v3, 4  ;;  %v2609_v22 = vld [vmem:[%s4108_s4 + $0x40] sm:$0xff]  ;;  %v2612_v3 = vld [vmem:[%s4108_s4 + $0x58] sm:$0xff] }
 0x33a   :  { %v1260_v8 = vsel %vm953_vm4, %v1259_v61, %v3814_v7  ;;  %v1325_v14 = vsel %vm222_vm5, %v3721_v59, %v1312_v48  ;;  %v2606_v48 = vld [vmem:[%s4108_s4 + $0x28] sm:$0xff]  ;;  %v2616_v61 = vld [vmem:[%s4108_s4 + $0x78] sm:$0xff] }
 0x33b   :  { %v1267_v63 = vrot.slane %v1260_v8, 4  ;;  %1274 = vst [vmem:[#allocation3 + $0x38] sm:$0x30] %v1268_v21  ;;  %v1326_v45 = vsel %vm230_vm9, %v1325_v14, %v1316_v33  ;;  %v2611_v21 = vld [vmem:[%s4108_s4 + $0x50] sm:$0xff]  ;;  %v2605_v8 = vld [vmem:[%s4108_s4 + $0x20] sm:$0xff] }
 0x33d   :  { %1273 = vst [vmem:[#allocation3 + $0x30] sm:$0x30] %v1267_v63  ;;  %v2615_v63 = vld [vmem:[%s4108_s4 + $0x70] sm:$0xff] }
 0x33f   :  { %v1339_v23 = vpop.permute.xlu1 %1338 }
 0x340   :  { %v1388_v1 = vpop.permute.xlu2 %1387  ;;  %v1345_v38 = vsel %vm953_vm4, %v1344_v20, %v1339_v23  ;;  %v3992_v20 = vld [vmem:[%s4106_s6] sm:$0xff] }
 0x341   :  { %v1397_v5 = vpop.permute.xlu0 %1396  ;;  %v1399_v7 = vsel %vm230_vm9, %v1261_v18, %v1388_v1  ;;  %v1350_v10 = vrot.slane %v1345_v38, 6  ;;  %v2610_v18 = vld [vmem:[%s4108_s4 + $0x48] sm:$0xff]  ;;  %v3995_v23 = vperm.slane %v3992_v20, 1  ;;  %v1632_v1 = vpop.f32.mrf.mxu3 }
 0x342   :  { %v1403_v12 = vsel %vm953_vm4, %v1402_v54, %v1397_v5  ;;  %v1400_v49 = vsel %vm953_vm4, %v1399_v7, %v1257_v27  ;;  %1811 = vmatpush.bf16.msrb.mxu2 %v2610_v18  ;;  %v2607_v27 = vld [vmem:[%s4108_s4 + $0x30] sm:$0xff] }
 0x343   :  { %v1408_v9 = vrot.slane %v1403_v12, 2  ;;  %v1407_v37 = vrot.slane %v1400_v49, 2  ;;  %1356 = vst [vmem:[#allocation3 + $0x50] sm:$0xc] %v1350_v10  ;;  %1779 = vmatpush.bf16.msrb.mxu1 %v2607_v27 }
 0x345   :  { %1414 = vst [vmem:[#allocation3 + $0x50] sm:$0xc0] %v1408_v9 }
 0x346   :  { %1413 = vst [vmem:[#allocation3 + $0x48] sm:$0xc0] %v1407_v37  ;;  %1812 = vmatpush.bf16.msrb.mxu2 %v2609_v22 }
 0x347   :  { %v1205_v41 = vpop.permute.xlu1 %1204  ;;  %1916 = vmatpush.bf16.msra.mxu1 %v2616_v61 }
 0x348   :  { %v1215_v35 = vsel %vm230_vm9, %v1214_v57, %v1205_v41  ;;  %v1198_v53 = vpop.permute.xlu2 %1197 }
 0x349   :  { %v1209_v62 = vpop.permute.xlu0 %1208  ;;  %v1634_v41 = vpop.f32.mrf.mxu3 }
 0x34a   :  { %v1342_v43 = vsel %vm953_vm4, %v1341_v29, %v1209_v62  ;;  %v1216_v19 = vsel %vm953_vm4, %v1215_v35, %v1209_v62  ;;  %v2614_v29 = vld [vmem:[%s4108_s4 + $0x68] sm:$0xff] }
 0x34b   :  { %v1349_v56 = vrot.slane %v1342_v43, 6  ;;  %1218 = vst [vmem:[#allocation3 + $0x38] sm:$0x3] %v1216_v19  ;;  %1917 = vmatpush.bf16.msra.mxu1 %v2615_v63 }
 0x34d   :  { %1355 = vst [vmem:[#allocation3 + $0x48] sm:$0xc] %v1349_v56 }
 0x34f   :  { %v1320_v55 = vpop.permute.xlu1 %1319 }
 0x350   :  { %v1327_v40 = vsel %vm953_vm4, %v1326_v45, %v1320_v55  ;;  %v2613_v45 = vld [vmem:[%s4108_s4 + $0x60] sm:$0xff] }
 0x351   :  { %v1277_v51 = vpop.permute.xlu0 %1276  ;;  %1329 = vst [vmem:[#allocation3 + $0x50] sm:$0x3] %v1327_v40 }
 0x352   :  { %v1288_v34 = vsel %vm230_vm9, %v3864_v39, %v1277_v51  ;;  %v1423_v59 = vld [vmem:[#allocation3 + $0x38] sm:$0xff] }
 0x353   :  { %v1289_v60 = vsel %vm953_vm4, %v1288_v34, %v3871_v58 }
 0x354   :  { %v1296_v30 = vrot.slane %v1289_v60, 2 }
 0x356   :  { %1302 = vst [vmem:[#allocation3 + $0x30] sm:$0xc0] %v1296_v30 }
 0x357   :  { %v1359_v13 = vpop.permute.xlu1 %1358 }
 0x358   :  { %v1370_v6 = vsel %vm230_vm9, %v1232_v46, %v1359_v13  ;;  %v1426_v2 = vld [vmem:[#allocation3 + $0x50] sm:$0xff]  ;;  %v2618_v13 = vld [vmem:[%s4108_s4 + $0x88] sm:$0xff] }
 0x359   :  { %v1195_v47 = vpop.permute.xlu0 %1194  ;;  %v1371_v25 = vsel %vm953_vm4, %v1370_v6, %v1228_v17  ;;  %v1432_v42 = vpack.c.bf16 %v1426_v2, %v1423_v59  ;;  %v2617_v6 = vld [vmem:[%s4108_s4 + $0x80] sm:$0xff]  ;;  %v2622_v59 = vld [vmem:[%s4108_s4 + $0xa8] sm:$0xff]  ;;  %v2620_v2 = vld [vmem:[%s4108_s4 + $0x98] sm:$0xff] }
 0x35a   :  { %v1211_v31 = vsel %vm222_vm5, %v3672_v50, %v1195_v47  ;;  %v1378_v24 = vrot.slane %v1371_v25, 4  ;;  %v2624_v47 = vld [vmem:[%s4108_s4 + $0xb8] sm:$0xff]  ;;  %v2621_v25 = vld [vmem:[%s4108_s4 + $0xa0] sm:$0xff] }
 0x35b   :  { %v1212_v39 = vsel %vm230_vm9, %v1211_v31, %v3668_v11  ;;  %1617 = vmatmul.bf16.vlgmr.msra.gmra.mxu2 %v1432_v42  ;;  %v2602_v11 = vld [vmem:[%s4108_s4 + $0x8] sm:$0xff]  ;;  %v2623_v42 = vld [vmem:[%s4108_s4 + $0xb0] sm:$0xff] }
 0x35c   :  { %1384 = vst [vmem:[#allocation3 + $0x48] sm:$0x30] %v1378_v24  ;;  %v1213_v58 = vsel %vm953_vm4, %v1212_v39, %v1198_v53  ;;  %1711 = vmatpush.bf16.msra.mxu0 %v2602_v11  ;;  %1949 = vmatpush.bf16.msra.mxu2 %v2618_v13  ;;  %v2619_v53 = vld [vmem:[%s4108_s4 + $0x90] sm:$0xff]  ;;  %v2626_v31 = vld [vmem:[%s4108_s4 + $0xc8] sm:$0xff]  ;;  %v2628_v39 = vld [vmem:[%s4108_s4 + $0xd8] sm:$0xff] }
 0x35d   :  { %1217 = vst [vmem:[#allocation3 + $0x30] sm:$0x3] %v1213_v58  ;;  %v2630_v24 = vld [vmem:[%s4108_s4 + $0xe8] sm:$0xff]  ;;  %v2632_v58 = vld [vmem:[%s4108_s4 + $0xf8] sm:$0xff]  ;;  %v2200_v11 = vld [vmem:[%s4109_s1] sm:$0x3] }
 0x35f   :  { %v1306_v32 = vpop.permute.xlu1 %1305 }
 0x360   :  { %v1322_v4 = vsel %vm222_vm5, %v3700_v52, %v1306_v32  ;;  %v2601_v52 = vld [vmem:[%s4108_s4] sm:$0xff]  ;;  %1950 = vmatpush.bf16.msra.mxu2 %v2617_v6 }
 0x361   :  { %v1309_v46 = vpop.permute.xlu0 %1308  ;;  %v1323_v33 = vsel %vm230_vm9, %v1322_v4, %v3777_v16  ;;  %1712 = vmatpush.bf16.msra.mxu0 %v2601_v52  ;;  %v2604_v16 = vld [vmem:[%s4108_s4 + $0x18] sm:$0xff]  ;;  %v2625_v32 = vld [vmem:[%s4108_s4 + $0xc0] sm:$0xff] }
 0x362   :  { %v1324_v26 = vsel %vm953_vm4, %v1323_v33, %v1309_v46  ;;  %1683 = vmatpush.bf16.msrb.mxu3 %v2604_v16  ;;  %v2629_v4 = vld [vmem:[%s4108_s4 + $0xe0] sm:$0xff]  ;;  %v2627_v46 = vld [vmem:[%s4108_s4 + $0xd0] sm:$0xff]  ;;  %v2673_v16 = vmov 0  }
 0x363   :  { %1328 = vst [vmem:[#allocation3 + $0x48] sm:$0x3] %v1324_v26  ;;  %v2631_v33 = vld [vmem:[%s4108_s4 + $0xf0] sm:$0xff]  ;;  %2660 = vset.pattern.permute.xlu1 %v2673_v16  ;;  %2661 = vset.pattern.permute.xlu0 %v2673_v16 }
 0x364   :  { %v1422_v50 = vld [vmem:[#allocation3 + $0x30] sm:$0xff]  ;;  %2203 = vperm.xlu1 %2660, %v2200_v11  }
 0x365   :  { %1848 = vmatpush.bf16.msrb.mxu0 %v2612_v3 }
 0x366   :  { %1684 = vmatpush.bf16.msrb.mxu3 %v2603_v44 }
 0x369   :  { %1849 = vmatpush.bf16.msrb.mxu0 %v2611_v21 }
 0x36a   :  { %v1425_v17 = vld [vmem:[#allocation3 + $0x48] sm:$0xff]  ;;  %1744 = vmatpush.bf16.msra.mxu3 %v2606_v48 }
 0x36b   :  { %v1431_v0 = vpack.c.bf16 %v1425_v17, %v1422_v50 }
 0x36d   :  { %1598 = vmatmul.bf16.gmra.mxu1 %v1431_v0  ;;  %v1637_v0 = vpop.f32.mrf.mxu3 }
 0x36e   :  { %1745 = vmatpush.bf16.msra.mxu3 %v2605_v8 }
 0x375   :  { %v1639_v21 = vpop.f32.mrf.mxu3 }
 0x382   :  { %v1594_v15 = vpop.f32.mrf.mxu1 }
 0x383   :  { %v1595_v28 = vadd.f32 %v1594_v15, %v3995_v23 }
 0x38a   :  { %v1596_v7 = vpop.f32.mrf.mxu1 }
 0x38b   :  { %v1597_v12 = vadd.f32 %v1596_v7, %v3995_v23 }
 0x398   :  { %v1613_v38 = vpop.f32.mrf.mxu0 }
 0x399   :  { %v1614_v54 = vadd.f32 %v1613_v38, %v1595_v28 }
 0x39b   :  { %v1633_v5 = vadd.f32 %v1632_v1, %v1614_v54 }
 0x39d   :  { %v1642_v10 = vmax.f32 %v1633_v5, 0.0 }
 0x39f   :  { %v1646_v49 = vpack.c.bf16 %v1642_v10, %v1642_v10 }
 0x3a0   :  { %v1615_v9 = vpop.f32.mrf.mxu0 }
 0x3a1   :  { %v1659_v37 = vunpack.c.l.b16 %v1646_v49  ;;  %v1616_v57 = vadd.f32 %v1615_v9, %v1597_v12  ;;  %2420 = vmatmul.msk.bf16.vlgmr.msra.gmra.mxu0 %vm222_vm5, %v1646_v49 }
 0x3a2   :  { %1986 = vmatpush.bf16.msra.mxu0 %v2620_v2 }
 0x3a3   :  { %v1660_v35 = vpack.c.b16 %v1659_v37, %v1659_v37  ;;  %v1635_v62 = vadd.f32 %v1634_v41, %v1616_v57 }
 0x3a5   :  { %v1643_v43 = vmax.f32 %v1635_v62, 0.0  ;;  %v1661_v19 = vrot.slane %v1660_v35, 1  ;;  %v1756_v56 = vrot.slane %v1660_v35, 3  ;;  %v1722_v34 = vrot.slane %v1660_v35, 2 }
 0x3a6   :  { %1987 = vmatpush.bf16.msra.mxu0 %v2619_v53  ;;  %v2638_v53 = vld [vmem:[%s4110_s5 + $0x28] sm:$0xff] }
 0x3a7   :  { %v1647_v14 = vpack.c.bf16 %v1643_v43, %v1643_v43  ;;  %2411 = vmatmul.msk.bf16.vlgmr.msrb.gmra.mxu3 %vm222_vm5, %v1661_v19  ;;  %2438 = vmatmul.msk.bf16.vlgmr.msrb.gmra.mxu1 %vm222_vm5, %v1756_v56 }
 0x3a8   :  { %1882 = vmatpush.bf16.msrb.mxu3 %v2614_v29  ;;  %2054 = vmatpush.bf16.msrb.mxu1 %v2624_v47  ;;  %v2640_v47 = vld [vmem:[%s4110_s5 + $0x38] sm:$0xff] }
 0x3a9   :  { %v1824_v55 = vunpack.c.l.b16 %v1647_v14  ;;  %2447 = vmatmul.msk.bf16.vlgmr.msrb.gmra.mxu2 %vm222_vm5, %v1647_v14 }
 0x3aa   :  { %2087 = vmatpush.bf16.msrb.mxu2 %v2626_v31  ;;  %v2636_v31 = vld [vmem:[%s4110_s5 + $0x18] sm:$0xff] }
 0x3ab   :  { %v1825_v40 = vpack.c.b16 %v1824_v55, %v1824_v55 }
 0x3ac   :  { %1883 = vmatpush.bf16.msrb.mxu3 %v2613_v45  ;;  %2055 = vmatpush.bf16.msrb.mxu1 %v2623_v42  ;;  %v2637_v42 = vld [vmem:[%s4110_s5 + $0x20] sm:$0xff] }
 0x3ad   :  { %v1826_v51 = vrot.slane %v1825_v40, 1  ;;  %v1894_v60 = vrot.slane %v1825_v40, 3  ;;  %v1860_v30 = vrot.slane %v1825_v40, 2 }
 0x3ae   :  { %2088 = vmatpush.bf16.msrb.mxu2 %v2625_v32 }
 0x3b1   :  { %2456 = vmatmul.msk.bf16.vlgmr.msrb.gmra.mxu0 %vm222_vm5, %v1826_v51 }
 0x3b2   :  { %2124 = vmatpush.bf16.msrb.mxu0 %v2628_v39  ;;  %v2634_v39 = vld [vmem:[%s4110_s5 + $0x8] sm:$0xff] }
 0x3b6   :  { %2125 = vmatpush.bf16.msrb.mxu0 %v2627_v46  ;;  %v2633_v46 = vld [vmem:[%s4110_s5] sm:$0xff] }
 0x3b7   :  { %2429 = vmatmul.msk.bf16.vlgmr.msra.gmra.mxu3 %vm222_vm5, %v1722_v34  ;;  %2474 = vmatmul.msk.bf16.vlgmr.msra.gmra.mxu1 %vm222_vm5, %v1894_v60 }
 0x3b8   :  { %2020 = vmatpush.bf16.msra.mxu3 %v2622_v59  ;;  %2192 = vmatpush.bf16.msra.mxu1 %v2632_v58 }
 0x3bc   :  { %2021 = vmatpush.bf16.msra.mxu3 %v2621_v25  ;;  %2193 = vmatpush.bf16.msra.mxu1 %v2631_v33  ;;  %v2639_v25 = vld [vmem:[%s4110_s5 + $0x30] sm:$0xff] }
 0x3c7   :  { %2465 = vmatmul.msk.bf16.vlgmr.msrb.gmra.mxu3 %vm222_vm5, %v1860_v30 }
 0x3c8   :  { %2158 = vmatpush.bf16.msrb.mxu3 %v2630_v24  ;;  %v2635_v24 = vld [vmem:[%s4110_s5 + $0x10] sm:$0xff] }
 0x3cc   :  { %2159 = vmatpush.bf16.msrb.mxu3 %v2629_v4 }
 0x3de   :  { %v1618_v26 = vpop.f32.mrf.mxu2 }
 0x3e6   :  { %v1620_v3 = vpop.f32.mrf.mxu2 }
 0x3ea   :  { %v1599_v50 = vpop.f32.mrf.mxu1 }
 0x3eb   :  { %v1600_v17 = vadd.f32 %v1599_v50, %v3995_v23 }
 0x3ed   :  { %v1619_v52 = vadd.f32 %v1618_v26, %v1600_v17 }
 0x3ef   :  { %v1638_v36 = vadd.f32 %v1637_v0, %v1619_v52 }
 0x3f1   :  { %v1644_v18 = vmax.f32 %v1638_v36, 0.0 }
 0x3f2   :  { %v1601_v44 = vpop.f32.mrf.mxu1 }
 0x3f3   :  { %v1648_v27 = vpack.c.bf16 %v1644_v18, %v1644_v18  ;;  %v1602_v22 = vadd.f32 %v1601_v44, %v3995_v23 }
 0x3f5   :  { %v1962_v48 = vunpack.c.l.b16 %v1648_v27  ;;  %v1621_v61 = vadd.f32 %v1620_v3, %v1602_v22  ;;  %2483 = vmatmul.msk.bf16.vlgmr.msra.gmra.mxu2 %vm222_vm5, %v1648_v27  ;;  %v2206_v3 = vperm.slane %v3992_v20, 3 }
 0x3f6   :  { %2278 = vmatpush.bf16.msra.mxu2 %v2640_v47 }
 0x3f7   :  { %v1963_v8 = vpack.c.b16 %v1962_v48, %v1962_v48  ;;  %v1640_v63 = vadd.f32 %v1639_v21, %v1621_v61  ;;  %v2204_v48 = vpop.permute.xlu1 %2203 }
 0x3f9   :  { %v1645_v15 = vmax.f32 %v1640_v63, 0.0  ;;  %v1964_v28 = vrot.slane %v1963_v8, 1  ;;  %v1998_v1 = vrot.slane %v1963_v8, 2  ;;  %v2032_v38 = vrot.slane %v1963_v8, 3 }
 0x3fa   :  { %2279 = vmatpush.bf16.msra.mxu2 %v2639_v25  ;;  %v2207_v63 = vmul.f32 %v2206_v3, %v2204_v48 }
 0x3fb   :  { %2492 = vmatmul.msk.bf16.vlgmr.msra.gmra.mxu0 %vm222_vm5, %v1964_v28  ;;  %2501 = vmatmul.msk.bf16.vlgmr.msra.gmra.mxu3 %vm222_vm5, %v1998_v1  ;;  %v1649_v54 = vpack.c.bf16 %v1645_v15, %v1645_v15 }
 0x3fc   :  { %2510 = vmatmul.msk.bf16.vlgmr.msrb.gmra.mxu1 %vm222_vm5, %v2032_v38  ;;  %v2209_v38 = vperm.slane %v3992_v20, 2 }
 0x3fd   :  { %v2100_v23 = vunpack.c.l.b16 %v1649_v54 }
 0x3fe   :  { %2280 = vmatpush.bf16.msra.mxu2 %v2638_v53 }
 0x3ff   :  { %v2101_v5 = vpack.c.b16 %v2100_v23, %v2100_v23 }
 0x401   :  { %v2102_v7 = vrot.slane %v2101_v5, 1  ;;  %v2136_v10 = vrot.slane %v2101_v5, 2  ;;  %v2170_v12 = vrot.slane %v2101_v5, 3 }
 0x402   :  { %2281 = vmatpush.bf16.msra.mxu2 %v2637_v42 }
 0x405   :  { %2519 = vmatmul.msk.bf16.vlgmr.msrb.gmra.mxu2 %vm222_vm5, %v1649_v54 }
 0x406   :  { %2282 = vmatpush.bf16.msra.mxu2 %v2636_v31 }
 0x40a   :  { %2283 = vmatpush.bf16.msra.mxu2 %v2635_v24 }
 0x40b   :  { %2528 = vmatmul.msk.bf16.vlgmr.msrb.gmra.mxu0 %vm222_vm5, %v2102_v7  ;;  %2537 = vmatmul.msk.bf16.vlgmr.msrb.gmra.mxu3 %vm222_vm5, %v2136_v10 }
 0x40c   :  { %2546 = vmatmul.msk.bf16.vlgmr.msra.gmra.mxu1 %vm222_vm5, %v2170_v12 }
 0x40e   :  { %2284 = vmatpush.bf16.msra.mxu2 %v2634_v39 }
 0x412   :  { %2285 = vmatpush.bf16.msra.mxu2 %v2633_v46 }
 0x41e   :  { %v1714_v49 = vpop.f32.mrf.mxu0 }
 0x424   :  { %v1781_v9 = vpop.f32.mrf.mxu1 }
 0x426   :  { %v1716_v37 = vpop.f32.mrf.mxu0 }
 0x42a   :  { %v1686_v57 = vpop.f32.mrf.mxu3 }
 0x42b   :  { %v1715_v41 = vadd.f32 %v1714_v49, %v1686_v57  ;;  %v2229_v49 = vperm.slane %v3992_v20, 4 }
 0x42c   :  { %v1783_v35 = vpop.f32.mrf.mxu1  ;;  %v1814_v62 = vpop.f32.mrf.mxu2 }
 0x42e   :  { %v1851_v29 = vpop.f32.mrf.mxu0 }
 0x432   :  { %v1688_v43 = vpop.f32.mrf.mxu3 }
 0x434   :  { %v1816_v19 = vpop.f32.mrf.mxu2  ;;  %v1919_v56 = vpop.f32.mrf.mxu1 }
 0x436   :  { %v1853_v14 = vpop.f32.mrf.mxu0 }
 0x43a   :  { %v1747_v45 = vpop.f32.mrf.mxu3 }
 0x43b   :  { %v1751_v55 = vadd.f32 %v1747_v45, %v1715_v41 }
 0x43c   :  { %v1921_v40 = vpop.f32.mrf.mxu1 }
 0x43d   :  { %v1785_v51 = vadd.f32 %v1781_v9, %v1751_v55 }
 0x43f   :  { %v1818_v34 = vadd.f32 %v1814_v62, %v1785_v51 }
 0x441   :  { %v1855_v60 = vadd.f32 %v1851_v29, %v1818_v34 }
 0x442   :  { %v1749_v30 = vpop.f32.mrf.mxu3 }
 0x44a   :  { %v1885_v13 = vpop.f32.mrf.mxu3 }
 0x44b   :  { %v1889_v6 = vadd.f32 %v1885_v13, %v1855_v60 }
 0x44d   :  { %v1923_v59 = vadd.f32 %v1919_v56, %v1889_v6 }
 0x452   :  { %v1887_v2 = vpop.f32.mrf.mxu3 }
 0x478   :  { %v1952_v58 = vpop.f32.mrf.mxu2  ;;  %v1989_v32 = vpop.f32.mrf.mxu0 }
 0x479   :  { %v2057_v4 = vpop.f32.mrf.mxu1  ;;  %v1956_v33 = vadd.f32 %v1952_v58, %v1923_v59 }
 0x47b   :  { %v1993_v0 = vadd.f32 %v1989_v32, %v1956_v33 }
 0x47e   :  { %v2023_v26 = vpop.f32.mrf.mxu3 }
 0x47f   :  { %v2027_v52 = vadd.f32 %v2023_v26, %v1993_v0 }
 0x480   :  { %v1954_v50 = vpop.f32.mrf.mxu2  ;;  %v1991_v17 = vpop.f32.mrf.mxu0 }
 0x481   :  { %v2059_v11 = vpop.f32.mrf.mxu1  ;;  %v2061_v36 = vadd.f32 %v2057_v4, %v2027_v52 }
 0x486   :  { %v2025_v16 = vpop.f32.mrf.mxu3 }
 0x488   :  { %v2090_v18 = vpop.f32.mrf.mxu2  ;;  %v2127_v44 = vpop.f32.mrf.mxu0 }
 0x489   :  { %v2094_v27 = vadd.f32 %v2090_v18, %v2061_v36  ;;  %v2195_v22 = vpop.f32.mrf.mxu1 }
 0x48b   :  { %v2131_v61 = vadd.f32 %v2127_v44, %v2094_v27 }
 0x48e   :  { %v2161_v21 = vpop.f32.mrf.mxu3 }
 0x48f   :  { %v2165_v8 = vadd.f32 %v2161_v21, %v2131_v61 }
 0x490   :  { %v2092_v15 = vpop.f32.mrf.mxu2  ;;  %v2129_v28 = vpop.f32.mrf.mxu0 }
 0x491   :  { %v2199_v1 = vadd.f32 %v2195_v22, %v2165_v8  ;;  %v2197_v54 = vpop.f32.mrf.mxu1 }
 0x493   :  { %v2208_v23 = vadd.f32 %v2207_v63, %v2199_v1 }
 0x495   :  { %v2210_v5 = vadd.f32 %v2209_v38, %v2208_v23 }
 0x496   :  { %v2163_v7 = vpop.f32.mrf.mxu3 }
 0x497   :  { %v2211_v10 = vmax.f32 %v2210_v5, 0.0 }
 0x499   :  { %v2212_v12 = vpack.c.bf16 %v2211_v10, %v2211_v10 }
 0x49b   :  { %2286 = vmatmul.bf16.vlgmr.msra.gmra.mxu2 %v2212_v12 }
 0x51e   :  { %v2287_v9 = vpop.f32.mrf.mxu2 }
 0x51f   :  { %v2288_v37 = vadd.f32 %v2287_v9, %v2229_v49 }
 0x521   :  { %2291 = vst [vmem:[%s4111_s7] sm:$0x3] %v2288_v37 }
 0x526   :  { %v2289_v57 = vpop.f32.mrf.mxu2 }

</bundles_post_ra>
